<compile_context>
chip_gen: v5e
topology: v5e:2x2
jax: 0.10.0
libtpu: 0.0.40
codegen_flags: <defaults>
</compile_context>

<pallas_src>
import jax
import jax.numpy as jnp
from jax import lax
from jax.experimental import pallas as pl
from jax.experimental.pallas import tpu as pltpu


def _make_fused_head_kernel(hw_valid, hw_tile, needs_mask):
    """1x1 conv (BN folded) + SiLU + global-avg-pool, with Linear + softmax fused into
    the last-tile epilogue."""
    inv_hw = 1.0 / float(hw_valid)

    def kernel(x_ref, wconv_ref, bnbias_ref, wlin_ref, blin_ref,
               probs_ref, logits_ref, acc_ref):
        t = pl.program_id(1)

        @pl.when(t == 0)
        def _init():
            acc_ref[...] = jnp.zeros_like(acc_ref)

        x = x_ref[0]                 # (C1, hw_tile) f32
        w = wconv_ref[...]           # (C1, C_)      f32, BN scale folded, lane-dense

        # 1x1 conv on the MXU: contract the C1 dim of both operands so the result is
        # (hw_tile, C_) -- spatial on sublanes, channels lane-dense.
        h = lax.dot_general(x, w, (((0,), (0,)), ((), ())),
                            preferred_element_type=jnp.float32)       # (hw_tile, C_)
        h = h + bnbias_ref[...]                                       # (1, C_) sublane bcast
        # SiLU: exp + approx reciprocal both occupy the (otherwise idle) EUP slot.
        h = h * pl.reciprocal(1.0 + jnp.exp(-h), approx=True)

        if needs_mask:
            # Tail tile: padded positions would contribute SiLU(bn_bias); mask them out
            # before the pooling sum. Static no-op when HW divides evenly.
            pos = t * hw_tile + lax.broadcasted_iota(jnp.int32, (hw_tile, 1), 0)
            h = jnp.where(pos < hw_valid, h, 0.0)

        # Global average pool: accumulate spatial sums into a lane-dense (1, C_) row.
        acc_ref[...] += jnp.sum(h, axis=0, keepdims=True)

        @pl.when(t == pl.num_programs(1) - 1)
        def _epilogue():
            pooled = acc_ref[...] * inv_hw                             # (1, C_)
            # Linear head: weight kept in native PyTorch (c2, C_) layout -> contract dim 1.
            logits = lax.dot_general(pooled, wlin_ref[...],
                                     (((1,), (1,)), ((), ())),
                                     preferred_element_type=jnp.float32)   # (1, c2)
            logits = logits + blin_ref[...]
            logits_ref[0] = logits
            m = jnp.max(logits, axis=-1, keepdims=True)
            e = jnp.exp(logits - m)
            probs_ref[0] = e / jnp.sum(e, axis=-1, keepdims=True)      # exact division

    return kernel


def _pick_hw_tile(hw, c_):
    """Largest spatial tile whose (hw_tile, C_) f32 intermediates (~4 live copies) fit a
    conservative VMEM budget that is safe on v5e / v6e / v7x."""
    budget = 24 * 1024 * 1024
    cap = (budget // (4 * 4 * c_)) // 128 * 128
    cap = max(128, min(1024, cap))
    if hw <= cap:
        return hw                       # single full-width tile (full-dim block)
    for cand in (1024, 512, 256, 128):
        if cand <= cap and hw % cand == 0:
            return cand                 # even split, no tail mask
    return min(cap, 512)                # padded + in-kernel-masked tail tile


def classify_forward(x_nchw, wconv_oc, bn_gamma, bn_beta, bn_mean, bn_var,
                     wlin, blin, eps=1e-3):
    """
    x_nchw:   (B, C1, H, W) f32
    wconv_oc: (C_, C1)  Conv2d(C1, C_, 1, bias=False) weight (PyTorch layout, squeezed)
    wlin:     (c2, C_)  Linear weight in native PyTorch (out, in) layout
    blin:     (c2,)     Linear bias
    Returns (probs, logits), each (B, c2) f32.
    """
    B, C1, H, W = x_nchw.shape
    HW = H * W
    C_ = wconv_oc.shape[0]
    c2 = wlin.shape[0]
    f32 = jnp.float32

    # ---- fold BatchNorm (eval stats) into the conv weight + one (1, C_) bias row ----
    inv_std = lax.rsqrt(bn_var.astype(f32) + eps)
    scale = bn_gamma.astype(f32) * inv_std                             # (C_,)
    w_fold = (wconv_oc.astype(f32) * scale[:, None]).T                 # (C1, C_) lane-dense
    bn_bias = (bn_beta.astype(f32) - bn_mean.astype(f32) * scale).reshape(1, C_)

    # ---- NCHW -> (B, C1, HW) is a free reshape (no transpose round-trip of x) ----
    x = x_nchw.reshape(B, C1, HW).astype(f32)

    hw_tile = _pick_hw_tile(HW, C_)
    n_hw = -(-HW // hw_tile)
    hw_pad = n_hw * hw_tile
    needs_mask = hw_pad != HW
    if needs_mask:
        x = jnp.pad(x, ((0, 0), (0, 0), (0, hw_pad - HW)))

    wlin2 = wlin.astype(f32)                                           # (c2, C_)
    blin2 = blin.reshape(1, c2).astype(f32)

    kernel = _make_fused_head_kernel(HW, hw_tile, needs_mask)
    probs, logits = pl.pallas_call(
        kernel,
        out_shape=(jax.ShapeDtypeStruct((B, 1, c2), f32),
                   jax.ShapeDtypeStruct((B, 1, c2), f32)),
        grid_spec=pltpu.PrefetchScalarGridSpec(
            num_scalar_prefetch=0,
            grid=(B, n_hw),
            in_specs=[
                pl.BlockSpec((1, C1, hw_tile), lambda b, t: (b, 0, t)),    # x
                pl.BlockSpec((C1, C_), lambda b, t: (0, 0)),               # folded conv w
                pl.BlockSpec((1, C_), lambda b, t: (0, 0)),                # folded BN bias
                pl.BlockSpec((c2, C_), lambda b, t: (0, 0)),               # linear weight
                pl.BlockSpec((1, c2), lambda b, t: (0, 0)),                # linear bias
            ],
            out_specs=[
                pl.BlockSpec((1, 1, c2), lambda b, t: (b, 0, 0)),          # probs
                pl.BlockSpec((1, 1, c2), lambda b, t: (b, 0, 0)),          # logits
            ],
            scratch_shapes=[pltpu.VMEM((1, C_), jnp.float32)],
        ),
        compiler_params=pltpu.CompilerParams(
            dimension_semantics=("parallel", "arbitrary"),
            vmem_limit_bytes=48 * 1024 * 1024),
    )(x, w_fold, bn_bias, wlin2, blin2)
    return probs.reshape(B, c2), logits.reshape(B, c2)


def _reference(x, wconv, bn_gamma, bn_beta, bn_mean, bn_var, wlin, blin, eps=1e-3):
    """Pure-JAX reference of the same head (everything f32, exact sigmoid)."""
    B, C1, H, W = x.shape
    scale = bn_gamma / jnp.sqrt(bn_var + eps)
    w_fold = wconv * scale[:, None]                                    # (C_, C1)
    bias = bn_beta - bn_mean * scale                                   # (C_,)
    xr = x.reshape(B, C1, H * W)
    h = jnp.einsum("oc,bcs->bos", w_fold, xr) + bias[None, :, None]
    h = h * jax.nn.sigmoid(h)
    pooled = jnp.mean(h, axis=2)                                       # (B, C_)
    logits = pooled @ wlin.T + blin
    probs = jax.nn.softmax(logits, axis=-1)
    return probs, logits


if __name__ == "__main__":
    def run_case(key, B, C1, H, W, C_, c2):
        ks = jax.random.split(key, 8)
        x = jax.random.normal(ks[0], (B, C1, H, W), jnp.float32)
        wconv = 0.1 * jax.random.normal(ks[1], (C_, C1), jnp.float32)
        bn_gamma = 1.0 + 0.2 * jax.random.normal(ks[2], (C_,), jnp.float32)
        bn_beta = 0.1 * jax.random.normal(ks[3], (C_,), jnp.float32)
        bn_mean = 0.1 * jax.random.normal(ks[4], (C_,), jnp.float32)
        bn_var = 0.5 + jax.random.uniform(ks[5], (C_,), jnp.float32)
        wlin = 0.05 * jax.random.normal(ks[6], (c2, C_), jnp.float32)
        blin = 0.01 * jax.random.normal(ks[7], (c2,), jnp.float32)

        probs, logits = classify_forward(x, wconv, bn_gamma, bn_beta, bn_mean, bn_var,
                                         wlin, blin)
        jax.block_until_ready((probs, logits))
        probs_r, logits_r = _reference(x, wconv, bn_gamma, bn_beta, bn_mean, bn_var,
                                       wlin, blin)
        assert probs.shape == (B, c2) and logits.shape == (B, c2)
        # Tolerances cover the approx-reciprocal SiLU and f32 accumulation-order differences.
        assert jnp.allclose(logits, logits_r, atol=5e-3, rtol=5e-3), \
            float(jnp.max(jnp.abs(logits - logits_r)))
        assert jnp.allclose(probs, probs_r, atol=2e-3, rtol=2e-3), \
            float(jnp.max(jnp.abs(probs - probs_r)))

    key = jax.random.PRNGKey(0)
    # Case 1: small shapes, single spatial tile (matches the module-style head sizes).
    run_case(jax.random.fold_in(key, 1), B=2, C1=4, H=16, W=16, C_=1280, c2=10)
    # Case 2: non-divisible spatial extent -> multi-tile accumulation + masked tail tile.
    run_case(jax.random.fold_in(key, 2), B=2, C1=8, H=40, W=40, C_=512, c2=16)
    print("KERNEL_OK")
</pallas_src>

<mosaic_0001>
module attributes {stable_mosaic.version = 11 : i64} {
  func.func @kernel(%arg0: i32, %arg1: i32, %arg2: memref<1x4x256xf32, #tpu.memory_space<vmem>>, %arg3: memref<4x1280xf32, #tpu.memory_space<vmem>>, %arg4: memref<1x1280xf32, #tpu.memory_space<vmem>>, %arg5: memref<10x1280xf32, #tpu.memory_space<vmem>>, %arg6: memref<1x10xf32, #tpu.memory_space<vmem>>, %arg7: memref<1x1x10xf32, #tpu.memory_space<vmem>>, %arg8: memref<1x1x10xf32, #tpu.memory_space<vmem>>, %arg9: memref<1x1280xf32, #tpu.memory_space<vmem>>) attributes {dimension_semantics = [#tpu.dimension_semantics<parallel>, #tpu.dimension_semantics<arbitrary>], iteration_bounds = array<i64: 2, 1>, scalar_prefetch = 0 : i64, scratch_operands = 1 : i64, tpu.core_type = #tpu.core_type<tc>, window_params = [{transform_indices = @transform_0, window_bounds = array<i64: 1, 4, 256>}, {pipeline_mode = #tpu.pipeline_mode<synchronous>, transform_indices = @transform_1, window_bounds = array<i64: 4, 1280>}, {pipeline_mode = #tpu.pipeline_mode<synchronous>, transform_indices = @transform_2, window_bounds = array<i64: 1, 1280>}, {pipeline_mode = #tpu.pipeline_mode<synchronous>, transform_indices = @transform_3, window_bounds = array<i64: 10, 1280>}, {pipeline_mode = #tpu.pipeline_mode<synchronous>, transform_indices = @transform_4, window_bounds = array<i64: 1, 10>}, {transform_indices = @transform_5, window_bounds = array<i64: 1, 1, 10>}, {transform_indices = @transform_6, window_bounds = array<i64: 1, 1, 10>}]} {
    %c0_i32 = arith.constant 0 : i32
    %0 = arith.cmpi eq, %arg1, %c0_i32 : i32
    %1 = arith.extui %0 : i1 to i32
    %c0_i32_0 = arith.constant 0 : i32
    %2 = arith.cmpi ne, %1, %c0_i32_0 : i32
    scf.if %2 {
      %cst_16 = arith.constant 0.000000e+00 : f32
      %25 = vector.broadcast %cst_16 : f32 to vector<1x1280xf32>
      %c0_17 = arith.constant 0 : index
      %c0_18 = arith.constant 0 : index
      %26 = vector.load %arg9[%c0_17, %c0_18] : memref<1x1280xf32, #tpu.memory_space<vmem>>, vector<1x1280xf32>
      tpu.vector_store %arg9[%c0_17, %c0_18], %25 {strides = array<i32>} : memref<1x1280xf32, #tpu.memory_space<vmem>>, vector<1x1280xf32>,
    } else {
    }
    %c0 = arith.constant 0 : index
    %c0_1 = arith.constant 0 : index
    %c0_2 = arith.constant 0 : index
    %3 = vector.load %arg2[%c0, %c0_1, %c0_2] : memref<1x4x256xf32, #tpu.memory_space<vmem>>, vector<1x4x256xf32>
    %4 = vector.shape_cast %3 : vector<1x4x256xf32> to vector<4x256xf32>
    %c0_3 = arith.constant 0 : index
    %c0_4 = arith.constant 0 : index
    %5 = vector.load %arg3[%c0_3, %c0_4] : memref<4x1280xf32, #tpu.memory_space<vmem>>, vector<4x1280xf32>
    %cst = arith.constant dense<0.000000e+00> : vector<256x1280xf32>
    %6 = tpu.matmul %4, %5, %cst {dimension_numbers = #tpu.dot_dimension_numbers<[0], [0], [1], [1], [0, 1, 1, 1], [], []>} : vector<4x256xf32>, vector<4x1280xf32>, vector<256x1280xf32> -> vector<256x1280xf32>
    %c0_5 = arith.constant 0 : index
    %c0_6 = arith.constant 0 : index
    %7 = vector.load %arg4[%c0_5, %c0_6] : memref<1x1280xf32, #tpu.memory_space<vmem>>, vector<1x1280xf32>
    %8 = vector.broadcast %7 : vector<1x1280xf32> to vector<256x1280xf32>
    %9 = arith.addf %6, %8 : vector<256x1280xf32>
    %cst_7 = arith.constant 0.000000e+00 : f32
    %10 = vector.broadcast %cst_7 : f32 to vector<256x1280xf32>
    %11 = arith.subf %10, %9 : vector<256x1280xf32>
    %12 = math.exp %11 : vector<256x1280xf32>
    %cst_8 = arith.constant 1.000000e+00 : f32
    %13 = vector.broadcast %cst_8 : f32 to vector<256x1280xf32>
    %14 = arith.addf %13, %12 : vector<256x1280xf32>
    %15 = tpu.reciprocal %14 {approx = true} : vector<256x1280xf32> -> vector<256x1280xf32>
    %16 = arith.mulf %9, %15 : vector<256x1280xf32>
    %c0_9 = arith.constant 0 : index
    %c0_10 = arith.constant 0 : index
    %17 = vector.load %arg9[%c0_9, %c0_10] : memref<1x1280xf32, #tpu.memory_space<vmem>>, vector<1x1280xf32>
    %cst_11 = arith.constant dense<0.000000e+00> : vector<1280xf32>
    %18 = vector.multi_reduction <add>, %16, %cst_11 [0] : vector<256x1280xf32> to vector<1280xf32>
    %19 = vector.shape_cast %18 : vector<1280xf32> to vector<1x1280xf32>
    %20 = arith.addf %17, %19 : vector<1x1280xf32>
    %c0_12 = arith.constant 0 : index
    %c0_13 = arith.constant 0 : index
    %21 = vector.load %arg9[%c0_12, %c0_13] : memref<1x1280xf32, #tpu.memory_space<vmem>>, vector<1x1280xf32>
    tpu.vector_store %arg9[%c0_12, %c0_13], %20 {strides = array<i32>} : memref<1x1280xf32, #tpu.memory_space<vmem>>, vector<1x1280xf32>,
    %c0_i32_14 = arith.constant 0 : i32
    %22 = arith.cmpi eq, %arg1, %c0_i32_14 : i32
    %23 = arith.extui %22 : i1 to i32
    %c0_i32_15 = arith.constant 0 : i32
    %24 = arith.cmpi ne, %23, %c0_i32_15 : i32
    scf.if %24 {
      %c0_16 = arith.constant 0 : index
      %c0_17 = arith.constant 0 : index
      %25 = vector.load %arg9[%c0_16, %c0_17] : memref<1x1280xf32, #tpu.memory_space<vmem>>, vector<1x1280xf32>
      %cst_18 = arith.constant 3.906250e-03 : f32
      %26 = vector.broadcast %cst_18 : f32 to vector<1x1280xf32>
      %27 = arith.mulf %25, %26 : vector<1x1280xf32>
      %c0_19 = arith.constant 0 : index
      %c0_20 = arith.constant 0 : index
      %28 = vector.load %arg5[%c0_19, %c0_20] : memref<10x1280xf32, #tpu.memory_space<vmem>>, vector<10x1280xf32>
      %cst_21 = arith.constant dense<0.000000e+00> : vector<1x10xf32>
      %29 = tpu.matmul %27, %28, %cst_21 {dimension_numbers = #tpu.dot_dimension_numbers<[1], [1], [0], [0], [0, 0, 1, 0], [], []>} : vector<1x1280xf32>, vector<10x1280xf32>, vector<1x10xf32> -> vector<1x10xf32>
      %c0_22 = arith.constant 0 : index
      %c0_23 = arith.constant 0 : index
      %30 = vector.load %arg6[%c0_22, %c0_23] : memref<1x10xf32, #tpu.memory_space<vmem>>, vector<1x10xf32>
      %31 = arith.addf %29, %30 : vector<1x10xf32>
      %c0_24 = arith.constant 0 : index
      %c0_25 = arith.constant 0 : index
      %c0_26 = arith.constant 0 : index
      %32 = vector.load %arg8[%c0_24, %c0_25, %c0_26] : memref<1x1x10xf32, #tpu.memory_space<vmem>>, vector<1x1x10xf32>
      %33 = vector.shape_cast %32 : vector<1x1x10xf32> to vector<1x10xf32>
      %34 = vector.shape_cast %31 : vector<1x10xf32> to vector<1x1x10xf32>
      tpu.vector_store %arg8[%c0_24, %c0_25, %c0_26], %34 {strides = array<i32>} : memref<1x1x10xf32, #tpu.memory_space<vmem>>, vector<1x1x10xf32>,
      %cst_27 = arith.constant dense<0xFF800000> : vector<1xf32>
      %35 = vector.multi_reduction <maximumf>, %31, %cst_27 [1] : vector<1x10xf32> to vector<1xf32>
      %36 = vector.shape_cast %35 : vector<1xf32> to vector<1x1xf32>
      %37 = vector.broadcast %36 : vector<1x1xf32> to vector<1x10xf32>
      %38 = arith.subf %31, %37 : vector<1x10xf32>
      %39 = math.exp %38 : vector<1x10xf32>
      %cst_28 = arith.constant dense<0.000000e+00> : vector<1xf32>
      %40 = vector.multi_reduction <add>, %39, %cst_28 [1] : vector<1x10xf32> to vector<1xf32>
      %41 = vector.shape_cast %40 : vector<1xf32> to vector<1x1xf32>
      %42 = vector.broadcast %41 : vector<1x1xf32> to vector<1x10xf32>
      %43 = arith.divf %39, %42 : vector<1x10xf32>
      %c0_29 = arith.constant 0 : index
      %c0_30 = arith.constant 0 : index
      %c0_31 = arith.constant 0 : index
      %44 = vector.load %arg7[%c0_29, %c0_30, %c0_31] : memref<1x1x10xf32, #tpu.memory_space<vmem>>, vector<1x1x10xf32>
      %45 = vector.shape_cast %44 : vector<1x1x10xf32> to vector<1x10xf32>
      %46 = vector.shape_cast %43 : vector<1x10xf32> to vector<1x1x10xf32>
      tpu.vector_store %arg7[%c0_29, %c0_30, %c0_31], %46 {strides = array<i32>} : memref<1x1x10xf32, #tpu.memory_space<vmem>>, vector<1x1x10xf32>,
    } else {
    }
    return
  }
  func.func @transform_0(%arg0: i32, %arg1: i32) -> (i32, i32, i32) {
    %c0_i32 = arith.constant 0 : i32
    %c0_i32_0 = arith.constant 0 : i32
    return %arg0, %c0_i32, %arg1 : i32, i32, i32
  }
  func.func @transform_1(%arg0: i32, %arg1: i32) -> (i32, i32) {
    %c0_i32 = arith.constant 0 : i32
    %c0_i32_0 = arith.constant 0 : i32
    %c0_i32_1 = arith.constant 0 : i32
    return %c0_i32, %c0_i32_0 : i32, i32
  }
  func.func @transform_2(%arg0: i32, %arg1: i32) -> (i32, i32) {
    %c0_i32 = arith.constant 0 : i32
    %c0_i32_0 = arith.constant 0 : i32
    %c0_i32_1 = arith.constant 0 : i32
    return %c0_i32, %c0_i32_0 : i32, i32
  }
  func.func @transform_3(%arg0: i32, %arg1: i32) -> (i32, i32) {
    %c0_i32 = arith.constant 0 : i32
    %c0_i32_0 = arith.constant 0 : i32
    %c0_i32_1 = arith.constant 0 : i32
    return %c0_i32, %c0_i32_0 : i32, i32
  }
  func.func @transform_4(%arg0: i32, %arg1: i32) -> (i32, i32) {
    %c0_i32 = arith.constant 0 : i32
    %c0_i32_0 = arith.constant 0 : i32
    %c0_i32_1 = arith.constant 0 : i32
    return %c0_i32, %c0_i32_0 : i32, i32
  }
  func.func @transform_5(%arg0: i32, %arg1: i32) -> (i32, i32, i32) {
    %c0_i32 = arith.constant 0 : i32
    %c0_i32_0 = arith.constant 0 : i32
    %c0_i32_1 = arith.constant 0 : i32
    return %arg0, %c0_i32, %c0_i32_0 : i32, i32, i32
  }
  func.func @transform_6(%arg0: i32, %arg1: i32) -> (i32, i32, i32) {
    %c0_i32 = arith.constant 0 : i32
    %c0_i32_0 = arith.constant 0 : i32
    %c0_i32_1 = arith.constant 0 : i32
    return %arg0, %c0_i32, %c0_i32_0 : i32, i32, i32
  }
}

</mosaic_0001>

<bundles_post_ra>
// kernel: tpu_custom_call.1
= control target key start
LH: loop header
LB: loop body
LE: loop exit
PB: predicated region body
PF: predicated region fallthrough
CT: control target
= control target key end

     0   :  { %s9553_s0 = inlined_call_operand.hbm [shape: f32[2,4,256], index: 0, kind: input, shape index: {}]   ;;  %s9554_s1 = inlined_call_operand.hbm [shape: f32[4,1280], index: 1, kind: input, shape index: {}]   ;;  %s9555_s2 = inlined_call_operand.hbm [shape: f32[1,1280], index: 2, kind: input, shape index: {}]   ;;  %s9556_s3 = inlined_call_operand.hbm [shape: f32[10,1280], index: 3, kind: input, shape index: {}]   ;;  %s9557_s4 = inlined_call_operand.vmem [shape: f32[1,10], index: 4, kind: input, shape index: {}]   ;;  %s9558_s5 = inlined_call_operand.hbm [shape: f32[2,1,10], index: 5, kind: output, shape index: {0}]   ;;  %s9559_s6 = inlined_call_operand.hbm [shape: f32[2,1,10], index: 6, kind: output, shape index: {1}]  }
   0x1   :  { %9660 = sst [smem:[#allocation80_spill]] %s9554_s1 }
   0x2   :  { %9661 = sst [smem:[#allocation81_spill]] %s9555_s2 }
   0x3   :  { %12 = vsyncpa [#allocation4], 0 }
   0x4   :  { %14 = vsyncpa [#allocation4 + $0x1], 0 }
   0x5   :  { %15 = vsyncpa [#allocation7], 0 }
   0x6   :  { %16 = vsyncpa [#allocation10], 0 }
   0x7   :  { %17 = vsyncpa [#allocation5], 0 }
   0x8   :  { %19 = vsyncpa [#allocation5 + $0x1], 0 }
   0x9   :  { %20 = vsyncpa [#allocation13], 0 }
   0xa   :  { %22 = vsyncpa [#allocation13 + $0x1], 0  ;;  %s6520_s21 = smov 0   ;;  %s6522_s22 = smov 0  }
   0xb   :  { %s6524_s23 = smov 0   ;;  %s6526_s24 = smov 0  }
   0xc   :  { %s6528_s25 = smov 0   ;;  %s6530_s26 = smov 0  }
   0xd LB: > { %s4498_s27 = sadd.s32 4294967295, %s6477_s26   ;;  %s4499_s28 = sadd.s32 4294967294, %s6477_s26   ;;  %s6477_s26 = sphi %s6530_s26, %s28_s26   ;;  %s6473_s25 = sphi %s6528_s25, %s9844_s25   ;;  %s6469_s24 = sphi %s6526_s24, %s9843_s24   ;;  %s6465_s23 = sphi %s6524_s23, %s9842_s23   ;;  %s6461_s22 = sphi %s6522_s22, %s9841_s22   ;;  %s6457_s21 = sphi %s6520_s21, %s9840_s21  }
   0xe   : > { %p62_p0 = scmp.ne.s32.totalorder %s6461_s22, %s6457_s21  ;;  %p6554_p1 = scmp.eq.s32.totalorder %s4498_s27, 0 }
   0xf   : > { %p6558_p2 = scmp.eq.s32.totalorder %s4498_s27, 1  ;;  %p176_p3 = scmp.eq.s32.totalorder %s4499_s28, 1 }
  0x10   : > { %p6564_p4 = por %p6554_p1, %p62_p0  ;;  %p4500_p5 = scmp.ge.s32.totalorder %s6477_s26, 1 }
  0x11   : > { %p6569_p6 = por %p176_p3, %p62_p0  ;;  %p209_p7 = scmp.lt.s32.totalorder %s6477_s26, 3 }
  0x12   : > { %s9666_s1 = sld [smem:[#allocation80_spill]]  ;;  %p4504_p9 = scmp.ge.s32.totalorder %s6477_s26, 2 }
  0x13   : > { %p6577_p8 = pnand %p4500_p5, %p209_p7  ;;  %s6479_s13 = smov [#allocation6]  }
  0x14   : > { %s223_s14 = sshll.u32 %s6479_s13, 4  ;;  %s9668_s2 = sld [smem:[#allocation81_spill]]  ;;  %s224_s14 = int_to_ptr.vmem [resolvable:$true] %s223_s14 }
  0x15   : > { %p4866_p10 = pneg %p6577_p8  ;;  %s244_s27 = sshll.u32 %s9556_s3, 4  ;;  %s245_s27 = int_to_ptr.hbm [resolvable:$true] %s244_s27 }
  0x16   : > { %s6480_s28 = smov [#allocation8]   ;;  %s6481_s10 = smov [#allocation9]  }
  0x17   : > { %p6589_p11 = pnand %p4866_p10, %p6554_p1  ;;  %s235_s9 = sshll.u32 %s6480_s28, 4  ;;  %s236_s9 = int_to_ptr.vmem [resolvable:$true] %s235_s9 }
  0x18   : > { %s221_s11 = sshll.u32 %s9666_s1, 4  ;;  %s246_s13 = sshll.u32 %s6481_s10, 4  ;;  %s222_s11 = int_to_ptr.hbm [resolvable:$true] %s221_s11  ;;  %s247_s13 = int_to_ptr.vmem [resolvable:$true] %s246_s13 }
  0x19   : > { %4869 = dma.hbm_to_vmem [thread:$0]  (!%p6589_p11), %s222_s11, 640, %s224_s14, [#allocation7]  }
  0x1a   : > { %s233_s17 = sshll.u32 %s9668_s2, 4  ;;  %s6482_s15 = smov 1280   ;;  %s234_s17 = int_to_ptr.hbm [resolvable:$true] %s233_s17 }
  0x1b   : > { %4872 = dma.hbm_to_vmem [thread:$0]  (!%p6589_p11), %s234_s17, 160, %s236_s9, [#allocation7]  }
  0x1c   : > { %s6483_s16 = smov 80   ;;  %s49_s19 = sadd.s32 1, %s6465_s23 }
  0x1d   : > { %4875 = dma.hbm_to_vmem [thread:$0]  (!%p6589_p11), %s245_s27, 2560, %s247_s13, [#allocation10], %s6482_s15, %s6482_s15, %s6483_s16  }
  0x1e   : > { %s40_s20 = sadd.s32 1, %s6473_s25  ;;  %p56_p12 = scmp.ne.s32.totalorder %s6465_s23, %s6461_s22 }
  0x1f   : > { %p42_p13 = scmp.ge.s32.totalorder %s40_s20, 2  ;;  %p57_p0 = scmp.eq.s32.totalorder %s6477_s26, 0 }
  0x20   : > { %p6609_p3 = por %p6558_p2, %p56_p12  ;;  %p4890_p5 = scmp.lt.s32.totalorder %s6477_s26, 2 }
  0x21   : > { %s9846_s20 = smov (%p42_p13, %s40_s20), 0  ;;  %p6616_p7 = por %p57_p0, %p56_p12 }
  0x22   : > { %s263_s17 = sand.u32 1, %s6465_s23   ;;  %s44_s18 = ssub.s32 %s6473_s25, %s9846_s20 }
  0x23   : > { %p47_p10 = scmp.eq.s32.totalorder %s44_s18, 0  ;;  %s4505_s27 = sshll.u32 %s263_s17, 3 }
  0x24   : > { %s4845_s28 = sshll.u32 %s6473_s25, 3  ;;  %s267_s15 = scalar_lea.vmem [#allocation3], %s4505_s27 }
  0x25   : > { %s6625_s30 = scalar_select %p47_p10, %s6465_s23, %s49_s19  }
  0x26   : > { %s274_s13 = scalar_lea.hbm %s9553_s0, %s4845_s28  ;;  %s278_s16 = sshll.u32 %s267_s15, 4  ;;  %s279_s16 = int_to_ptr.vmem [resolvable:$true] %s278_s16 }
  0x27   : > { %s276_s1 = sshll.u32 %s274_s13, 4  ;;  %p4877_p2 = pnand %p4890_p5, %p6616_p7  ;;  %s277_s1 = int_to_ptr.hbm [resolvable:$true] %s276_s1 }
  0x28   : > { %s264_s2 = scalar_lea.sflag [#allocation4], %s263_s17  ;;  %287 = sbr.rel (%p6577_p8) target bundleno = 1636 (0x664), region = 40 }
  0x29   : > { %4879 = dma.hbm_to_vmem [thread:$0]  (!%p4877_p2), %s277_s1, 128, %s279_s16, %s264_s2  }
  0x2d   : > { %s6637_s19 = sand.u32 1, %s6461_s22  }
  0x2e   : > { %s4509_s18 = sshll.u32 %s6637_s19, 3  ;;  %s290_s27 = scalar_lea.sflag [#allocation4], %s6637_s19 }
  0x2f   : > { %s293_s28 = scalar_lea.vmem [#allocation3], %s4509_s18 }
  0x30   : > { %6436 = dma.done.wait (%p6564_p4), %s290_s27, 128  }
  0x31   : > { %6438 = vsyncadd (%p6564_p4), %s290_s27, 4294967168 }
  0x32   : > { %6440 = dma.done.wait (%p6554_p1), [#allocation7], 800  }
  0x33   : > { %6442 = vsyncadd (%p6554_p1), [#allocation7], 4294966496 }
  0x34   : > { %6444 = dma.done.wait (%p6554_p1), [#allocation10], 2560  }
  0x35   : > { %6446 = vsyncadd (%p6554_p1), [#allocation10], 4294964736  ;;  %v352_v0 = vld [vmem:[%s293_s28] sm:$0xff]  ;;  %v353_v1 = vld [vmem:[#allocation6] sm:$0xff]  ;;  %vm572_vm0 = vcmask 1043456   ;;  %vm475_vm1 = vcmask 31744   ;;  %s4360_s14 = scalar_lea.hbm %s9559_s6, %s6469_s24 }
  0x36   : > { %383 = vst [vmem:[#allocation1] ss:$2 sm:$0xff] %v352_v0  ;;  %v357_v5 = vld [vmem:[#allocation6 + $0x20] sm:$0xff]  ;;  %v354_v18 = vld [vmem:[#allocation6 + $0x8] sm:$0xff]  ;;  %v355_v23 = vld [vmem:[#allocation6 + $0x10] sm:$0xff]  ;;  %vm4033_vm2 = vcmask 1040384  }
  0x37   : > { %459 = vst [vmem:[#allocation1 + $0x10] ss:$2 sm:$0xff] %v354_v18  ;;  %v6825_v47 = vld [vmem:[#allocation8] sm:$0xff]  ;;  %vm4035_vm3 = vcmask 1042434   ;;  %vm4037_vm4 = vcmask 1041408   ;;  %vm4039_vm5 = vcmask 1044484  }
  0x38   : > { %461 = vst [vmem:[#allocation1 + $0x20] ss:$2 sm:$0xff] %v355_v23  ;;  %v6830_v49 = vperm.slane %v6825_v47, 0  ;;  %v6844_v53 = vperm.slane %v6825_v47, 1  ;;  %vm4041_vm6 = vcmask 1046534   ;;  %vm4043_vm7 = vcmask 1045508  }
  0x39   : > { %vm4307_vm9 = vcmask 73728   ;;  %s340_s29 = scalar_lea.vmem [#allocation12], %s6637_s19  ;;  %s4364_s9 = sshll.u32 %s4360_s14, 4  ;;  %s4365_s9 = int_to_ptr.hbm [resolvable:$true] %s4364_s9 }
  0x3a   : > { %s4362_s17 = sshll.u32 %s340_s29, 4  ;;  %s4339_s10 = scalar_lea.sflag [#allocation13], %s6637_s19  ;;  %s4363_s17 = int_to_ptr.vmem [resolvable:$true] %s4362_s17 }
  0x3b   : > { %s6369_s13 = sshra.s32 %s4365_s9, 4  ;;  %s6375_s27 = scalar_lea.hbm %s9559_s6, 2  ;;  %s6370_s13 = int_to_ptr.hbm [resolvable:$true] %s6369_s13 }
  0x3c   : > { %s6371_s15 = scalar_lea.hbm %s6370_s13, 1  ;;  %p6376_p11 = scmp.lt.s32.totalorder %s6370_s13, %s9559_s6 }
  0x3d   : > { %v385_v2 = vld.sshfl [vmem:[#allocation1 + $0x8] sm:$0xff pattern:$0x75316420]  ;;  %v384_v3 = vld.sshfl [vmem:[#allocation1] sm:$0xff pattern:$0x75316420]  ;;  %p6372_p1 = scmp.ne.s32.totalorder %s6370_s13, %s6371_s15  ;;  %p6377_p12 = scmp.lt.s32.totalorder %s6375_s27, %s6371_s15 }
  0x3e   : > { %420 = vxpose.xlu0.b32.start.end [1/1] (short) %v385_v2, 128  ;;  %457 = vst [vmem:[#allocation1] ss:$2 sm:$0xff] %v353_v1  ;;  %v466_v20 = vld.sshfl [vmem:[#allocation1 + $0x10] sm:$0xff pattern:$0x75316420] }
  0x3f   : > { %v467_v21 = vld.sshfl [vmem:[#allocation1 + $0x18] sm:$0xff pattern:$0x75316420]  ;;  %v469_v25 = vld.sshfl [vmem:[#allocation1 + $0x28] sm:$0xff pattern:$0x75316420]  ;;  %p6373_p4 = pnand %p6372_p1, %p6609_p3  ;;  %p6378_p13 = por %p6377_p12, %p6376_p11 }
  0x40   : > { %v468_v26 = vld.sshfl [vmem:[#allocation1 + $0x20] sm:$0xff pattern:$0x75316420] }
  0x41   : > { %p6374_p8 = pneg %p6373_p4 }
  0x43   : > { %p6379_p0 = pnand %p6378_p13, %p6374_p8 }
  0x45   : > { %v464_v4 = vld.sshfl [vmem:[#allocation1] sm:$0xff pattern:$0x75316420]  ;;  %v465_v6 = vld.sshfl [vmem:[#allocation1 + $0x8] sm:$0xff pattern:$0x75316420] }
  0x46   : > { %4846 = vmatpush.msk.msra.mxu2 %vm572_vm0, %v464_v4  ;;  %4513 = vmatpush.msk.msra.mxu0 %vm572_vm0, %v464_v4  ;;  %472 = vst [vmem:[#allocation1] ss:$2 sm:$0xff] %v357_v5 }
  0x47   : > { %4847 = vmatpush.msk.msra.mxu3 %vm572_vm0, %v465_v6  ;;  %4546 = vmatpush.msk.msra.mxu1 %vm572_vm0, %v465_v6 }
  0x48   : > { %4579 = vmatpush.msk.msrb.mxu2 %vm572_vm0, %v466_v20  ;;  %4645 = vmatpush.msk.msrb.mxu0 %vm572_vm0, %v468_v26 }
  0x49   : > { %4612 = vmatpush.msk.msrb.mxu3 %vm572_vm0, %v467_v21  ;;  %4678 = vmatpush.msk.msrb.mxu1 %vm572_vm0, %v469_v25 }
  0xbe   : > { %388 = vxpose.xlu0.b32.start.end [1/1] (short) %v384_v3, 128 }
  0xe2   : > { %v6657_v7 = vpop.trf.xlu0 }
  0xe3   : > { %9672 = vst [vmem:[#allocation19_spill] sm:$0xff] %v6657_v7 }
  0xea   : > { %v6659_v8 = vpop.trf.xlu0 }
  0xeb   : > { %9673 = vst [vmem:[#allocation20_spill] sm:$0xff] %v6659_v8 }
  0xf2   : > { %v6661_v9 = vpop.trf.xlu0 }
  0xf3   : > { %9674 = vst [vmem:[#allocation21_spill] sm:$0xff] %v6661_v9 }
  0xfa   : > { %v6663_v10 = vpop.trf.xlu0 }
  0xfb   : > { %4533 = vmatmul.msk.f32.vlgmr.msra.gmra.mxu2 %vm475_vm1, %v6663_v10  ;;  %4566 = vmatmul.msk.f32.vlgmr.msra.gmra.mxu3 %vm475_vm1, %v6663_v10 }
 0x102   : > { %v6669_v11 = vpop.trf.xlu0 }
 0x103   : > { %9675 = vst [vmem:[#allocation22_spill] sm:$0xff] %v6669_v11  ;;  %4534 = vmatmul.msk.f32.gmra.mxu2 %vm475_vm1, %v6669_v11  ;;  %4567 = vmatmul.msk.f32.gmra.mxu3 %vm475_vm1, %v6669_v11 }
 0x10a   : > { %v6675_v12 = vpop.trf.xlu0 }
 0x10b   : > { %9676 = vst [vmem:[#allocation23_spill] sm:$0xff] %v6675_v12  ;;  %4535 = vmatmul.msk.f32.gmra.mxu2 %vm475_vm1, %v6675_v12  ;;  %4568 = vmatmul.msk.f32.gmra.mxu3 %vm475_vm1, %v6675_v12 }
 0x112   : > { %v6681_v13 = vpop.trf.xlu0 }
 0x113   : > { %9677 = vst [vmem:[#allocation24_spill] sm:$0xff] %v6681_v13  ;;  %4536 = vmatmul.msk.f32.gmra.mxu2 %vm475_vm1, %v6681_v13  ;;  %4569 = vmatmul.msk.f32.gmra.mxu3 %vm475_vm1, %v6681_v13 }
 0x11a   : > { %v6687_v14 = vpop.trf.xlu0 }
 0x11b   : > { %9678 = vst [vmem:[#allocation25_spill] sm:$0xff] %v6687_v14  ;;  %4537 = vmatmul.msk.f32.gmra.mxu2 %vm475_vm1, %v6687_v14  ;;  %4570 = vmatmul.msk.f32.gmra.mxu3 %vm475_vm1, %v6687_v14 }
 0x122   : > { %v6693_v15 = vpop.trf.xlu0 }
 0x123   : > { %9679 = vst [vmem:[#allocation26_spill] sm:$0xff] %v6693_v15  ;;  %4538 = vmatmul.msk.f32.gmra.mxu2 %vm475_vm1, %v6693_v15  ;;  %4571 = vmatmul.msk.f32.gmra.mxu3 %vm475_vm1, %v6693_v15 }
 0x12a   : > { %v6699_v16 = vpop.trf.xlu0 }
 0x12b   : > { %9680 = vst [vmem:[#allocation27_spill] sm:$0xff] %v6699_v16  ;;  %4539 = vmatmul.msk.f32.gmra.mxu2 %vm475_vm1, %v6699_v16  ;;  %4572 = vmatmul.msk.f32.gmra.mxu3 %vm475_vm1, %v6699_v16 }
 0x132   : > { %v6705_v17 = vpop.trf.xlu0 }
 0x133   : > { %9681 = vst [vmem:[#allocation28_spill] sm:$0xff] %v6705_v17  ;;  %4540 = vmatmul.msk.f32.gmra.mxu2 %vm475_vm1, %v6705_v17  ;;  %4573 = vmatmul.msk.f32.gmra.mxu3 %vm475_vm1, %v6705_v17 }
 0x13a   : > { %v6711_v19 = vpop.trf.xlu0 }
 0x13b   : > { %9682 = vst [vmem:[#allocation29_spill] sm:$0xff] %v6711_v19  ;;  %4541 = vmatmul.msk.f32.gmra.mxu2 %vm475_vm1, %v6711_v19  ;;  %4574 = vmatmul.msk.f32.gmra.mxu3 %vm475_vm1, %v6711_v19 }
 0x142   : > { %v6717_v22 = vpop.trf.xlu0 }
 0x143   : > { %9683 = vst [vmem:[#allocation30_spill] sm:$0xff] %v6717_v22  ;;  %4542 = vmatmul.msk.f32.gmra.mxu2 %vm475_vm1, %v6717_v22  ;;  %4575 = vmatmul.msk.f32.gmra.mxu3 %vm475_vm1, %v6717_v22 }
 0x14a   : > { %v6725_v24 = vpop.trf.xlu0 }
 0x14b   : > { %9684 = vst [vmem:[#allocation31_spill] sm:$0xff] %v6725_v24  ;;  %4543 = vmatmul.msk.f32.gmra.mxu2 %vm475_vm1, %v6725_v24  ;;  %4576 = vmatmul.msk.f32.gmra.mxu3 %vm475_vm1, %v6725_v24 }
 0x152   : > { %v6733_v27 = vpop.trf.xlu0 }
 0x153   : > { %9685 = vst [vmem:[#allocation32_spill] sm:$0xff] %v6733_v27  ;;  %4544 = vmatmul.msk.f32.gmra.mxu2 %vm475_vm1, %v6733_v27  ;;  %4577 = vmatmul.msk.f32.gmra.mxu3 %vm475_vm1, %v6733_v27 }
 0x15a   : > { %v6739_v28 = vpop.trf.xlu0 }
 0x15b   : > { %9686 = vst [vmem:[#allocation33_spill] sm:$0xff] %v6739_v28  ;;  %4545 = vmatmul.msk.f32.gmra.mxu2 %vm475_vm1, %v6739_v28  ;;  %4578 = vmatmul.msk.f32.gmra.mxu3 %vm475_vm1, %v6739_v28 }
 0x162   : > { %v6745_v29 = vpop.trf.xlu0 }
 0x163   : > { %9687 = vst [vmem:[#allocation34_spill] sm:$0xff] %v6745_v29  ;;  %4514 = vmatmul.msk.f32.vlgmr.msra.gmra.mxu0 %vm475_vm1, %v6745_v29  ;;  %4547 = vmatmul.msk.f32.vlgmr.msra.gmra.mxu1 %vm475_vm1, %v6745_v29 }
 0x164   : > { %4580 = vmatmul.msk.f32.vlgmr.msrb.gmra.mxu2 %vm475_vm1, %v6745_v29  ;;  %4613 = vmatmul.msk.f32.vlgmr.msrb.gmra.mxu3 %vm475_vm1, %v6745_v29 }
 0x16a   : > { %v6755_v30 = vpop.trf.xlu0 }
 0x16b   : > { %9688 = vst [vmem:[#allocation35_spill] sm:$0xff] %v6755_v30  ;;  %4515 = vmatmul.msk.f32.gmra.mxu0 %vm475_vm1, %v6755_v30  ;;  %4548 = vmatmul.msk.f32.gmra.mxu1 %vm475_vm1, %v6755_v30 }
 0x16c   : > { %4581 = vmatmul.msk.f32.gmra.mxu2 %vm475_vm1, %v6755_v30  ;;  %4614 = vmatmul.msk.f32.gmra.mxu3 %vm475_vm1, %v6755_v30 }
 0x172   : > { %v6765_v31 = vpop.trf.xlu0 }
 0x173   : > { %9689 = vst [vmem:[#allocation36_spill] sm:$0xff] %v6765_v31  ;;  %4516 = vmatmul.msk.f32.gmra.mxu0 %vm475_vm1, %v6765_v31  ;;  %4549 = vmatmul.msk.f32.gmra.mxu1 %vm475_vm1, %v6765_v31 }
 0x174   : > { %4582 = vmatmul.msk.f32.gmra.mxu2 %vm475_vm1, %v6765_v31  ;;  %4615 = vmatmul.msk.f32.gmra.mxu3 %vm475_vm1, %v6765_v31 }
 0x17a   : > { %v6775_v32 = vpop.trf.xlu0 }
 0x17b   : > { %9690 = vst [vmem:[#allocation37_spill] sm:$0xff] %v6775_v32  ;;  %4517 = vmatmul.msk.f32.gmra.mxu0 %vm475_vm1, %v6775_v32  ;;  %4550 = vmatmul.msk.f32.gmra.mxu1 %vm475_vm1, %v6775_v32 }
 0x17c   : > { %4583 = vmatmul.msk.f32.gmra.mxu2 %vm475_vm1, %v6775_v32  ;;  %4616 = vmatmul.msk.f32.gmra.mxu3 %vm475_vm1, %v6775_v32 }
 0x17e   : > { %v667_v33 = vpop.f32.mrf.mxu2  ;;  %v780_v34 = vpop.f32.mrf.mxu3 }
 0x17f   : > { %v6841_v52 = vadd.f32 %v667_v33, %v6830_v49  ;;  %v6858_v56 = vadd.f32 %v780_v34, %v6844_v53 }
 0x181   : > { %v1913_v55 = vsub.f32 0.0, %v6841_v52  ;;  %v1914_v62 = vsub.f32 0.0, %v6858_v56 }
 0x182   : > { %v6785_v35 = vpop.trf.xlu0 }
 0x183   : > { %9691 = vst [vmem:[#allocation38_spill] sm:$0xff] %v6785_v35  ;;  %4518 = vmatmul.msk.f32.gmra.mxu0 %vm475_vm1, %v6785_v35  ;;  %4551 = vmatmul.msk.f32.gmra.mxu1 %vm475_vm1, %v6785_v35  ;;  %v2423_v59 = vmul.f32 1.442695, %v1913_v55  ;;  %v2425_v4 = vmul.f32 1.442695, %v1914_v62 }
 0x184   : > { %4584 = vmatmul.msk.f32.gmra.mxu2 %vm475_vm1, %v6785_v35  ;;  %4617 = vmatmul.msk.f32.gmra.mxu3 %vm475_vm1, %v6785_v35 }
 0x185   : > { %4949 = vpow2.f32 %v2423_v59 }
 0x186   : > { %v670_v36 = vpop.f32.mrf.mxu2  ;;  %v783_v37 = vpop.f32.mrf.mxu3  ;;  %4951 = vpow2.f32 %v2425_v4 }
 0x187   : > { %v6861_v60 = vadd.f32 %v670_v36, %v6830_v49  ;;  %v6864_v61 = vadd.f32 %v783_v37, %v6844_v53 }
 0x189   : > { %v1923_v1 = vsub.f32 0.0, %v6861_v60  ;;  %v1924_v3 = vsub.f32 0.0, %v6864_v61 }
 0x18a   : > { %v6795_v38 = vpop.trf.xlu0 }
 0x18b   : > { %9692 = vst [vmem:[#allocation39_spill] sm:$0xff] %v6795_v38  ;;  %4519 = vmatmul.msk.f32.gmra.mxu0 %vm475_vm1, %v6795_v38  ;;  %4552 = vmatmul.msk.f32.gmra.mxu1 %vm475_vm1, %v6795_v38  ;;  %v2443_v23 = vmul.f32 1.442695, %v1923_v1  ;;  %v2445_v33 = vmul.f32 1.442695, %v1924_v3  ;;  %v4950_v36 = vpop.eup %4949 }
 0x18c   : > { %4585 = vmatmul.msk.f32.gmra.mxu2 %vm475_vm1, %v6795_v38  ;;  %4618 = vmatmul.msk.f32.gmra.mxu3 %vm475_vm1, %v6795_v38 }
 0x18d   : > { %4953 = vpow2.f32 %v2443_v23 }
 0x18e   : > { %v673_v39 = vpop.f32.mrf.mxu2  ;;  %v786_v40 = vpop.f32.mrf.mxu3  ;;  %4955 = vpow2.f32 %v2445_v33 }
 0x18f   : > { %v6868_v63 = vadd.f32 %v673_v39, %v6830_v49  ;;  %v6874_v2 = vadd.f32 %v786_v40, %v6844_v53 }
 0x191   : > { %v1933_v5 = vsub.f32 0.0, %v6868_v63  ;;  %v1934_v25 = vsub.f32 0.0, %v6874_v2 }
 0x192   : > { %v6805_v41 = vpop.trf.xlu0 }
 0x193   : > { %9693 = vst [vmem:[#allocation40_spill] sm:$0xff] %v6805_v41  ;;  %4520 = vmatmul.msk.f32.gmra.mxu0 %vm475_vm1, %v6805_v41  ;;  %4553 = vmatmul.msk.f32.gmra.mxu1 %vm475_vm1, %v6805_v41  ;;  %v2463_v37 = vmul.f32 1.442695, %v1933_v5  ;;  %v2465_v55 = vmul.f32 1.442695, %v1934_v25  ;;  %v4952_v5 = vpop.eup %4951 }
 0x194   : > { %4586 = vmatmul.msk.f32.gmra.mxu2 %vm475_vm1, %v6805_v41  ;;  %4619 = vmatmul.msk.f32.gmra.mxu3 %vm475_vm1, %v6805_v41  ;;  %v4954_v28 = vpop.eup %4953  ;;  %v2874_v27 = vadd.f32 1.0, %v4952_v5 }
 0x195   : > { %4957 = vpow2.f32 %v2463_v37 }
 0x196   : > { %v676_v42 = vpop.f32.mrf.mxu2  ;;  %v789_v43 = vpop.f32.mrf.mxu3  ;;  %4959 = vpow2.f32 %v2465_v55 }
 0x197   : > { %v6887_v6 = vadd.f32 %v676_v42, %v6830_v49  ;;  %v6890_v18 = vadd.f32 %v789_v43, %v6844_v53 }
 0x199   : > { %v1943_v39 = vsub.f32 0.0, %v6887_v6  ;;  %v1944_v42 = vsub.f32 0.0, %v6890_v18 }
 0x19a   : > { %v6815_v44 = vpop.trf.xlu0 }
 0x19b   : > { %9694 = vst [vmem:[#allocation41_spill] sm:$0xff] %v6815_v44  ;;  %4521 = vmatmul.msk.f32.gmra.mxu0 %vm475_vm1, %v6815_v44  ;;  %4554 = vmatmul.msk.f32.gmra.mxu1 %vm475_vm1, %v6815_v44  ;;  %v2483_v62 = vmul.f32 1.442695, %v1943_v39  ;;  %v2485_v1 = vmul.f32 1.442695, %v1944_v42  ;;  %v4956_v42 = vpop.eup %4955 }
 0x19c   : > { %4587 = vmatmul.msk.f32.gmra.mxu2 %vm475_vm1, %v6815_v44  ;;  %4620 = vmatmul.msk.f32.gmra.mxu3 %vm475_vm1, %v6815_v44  ;;  %v4958_v55 = vpop.eup %4957 }
 0x19e   : > { %v679_v45 = vpop.f32.mrf.mxu2  ;;  %v792_v46 = vpop.f32.mrf.mxu3 }
 0x19f   : > { %v6896_v26 = vadd.f32 %v679_v45, %v6830_v49  ;;  %v6899_v34 = vadd.f32 %v792_v46, %v6844_v53  ;;  %v2873_v46 = vadd.f32 1.0, %v4950_v36 }
 0x1a1   : > { %v1953_v45 = vsub.f32 0.0, %v6896_v26  ;;  %4961 = vrcp.f32 %v2873_v46  ;;  %v2884_v46 = vadd.f32 1.0, %v4956_v42 }
 0x1a2   : > { %v6827_v48 = vpop.trf.xlu0  ;;  %4963 = vpow2.f32 %v2483_v62 }
 0x1a3   : > { %9695 = vst [vmem:[#allocation42_spill] sm:$0xff] %v6827_v48  ;;  %4522 = vmatmul.msk.f32.gmra.mxu0 %vm475_vm1, %v6827_v48  ;;  %4555 = vmatmul.msk.f32.gmra.mxu1 %vm475_vm1, %v6827_v48  ;;  %v2503_v23 = vmul.f32 1.442695, %v1953_v45  ;;  %4965 = vpow2.f32 %v2485_v1  ;;  %v2893_v1 = vadd.f32 1.0, %v4958_v55 }
 0x1a4   : > { %4588 = vmatmul.msk.f32.gmra.mxu2 %vm475_vm1, %v6827_v48  ;;  %4621 = vmatmul.msk.f32.gmra.mxu3 %vm475_vm1, %v6827_v48 }
 0x1a5   : > { %4967 = vpow2.f32 %v2503_v23 }
 0x1a6   : > { %v682_v50 = vpop.f32.mrf.mxu2  ;;  %v795_v51 = vpop.f32.mrf.mxu3 }
 0x1a7   : > { %v6903_v40 = vadd.f32 %v682_v50, %v6830_v49  ;;  %v6910_v59 = vadd.f32 %v795_v51, %v6844_v53  ;;  %v1954_v50 = vsub.f32 0.0, %v6899_v34 }
 0x1a9   : > { %v1963_v51 = vsub.f32 0.0, %v6903_v40  ;;  %v1964_v25 = vsub.f32 0.0, %v6910_v59  ;;  %v2505_v36 = vmul.f32 1.442695, %v1954_v50 }
 0x1aa   : > { %v6846_v54 = vpop.trf.xlu0 }
 0x1ab   : > { %9696 = vst [vmem:[#allocation43_spill] sm:$0xff] %v6846_v54  ;;  %4523 = vmatmul.msk.f32.gmra.mxu0 %vm475_vm1, %v6846_v54  ;;  %4556 = vmatmul.msk.f32.gmra.mxu1 %vm475_vm1, %v6846_v54  ;;  %v2523_v37 = vmul.f32 1.442695, %v1963_v51  ;;  %v2525_v45 = vmul.f32 1.442695, %v1964_v25  ;;  %4969 = vpow2.f32 %v2505_v36  ;;  %v356_v36 = vld [vmem:[#allocation6 + $0x18] sm:$0xff] }
 0x1ac   : > { %4589 = vmatmul.msk.f32.gmra.mxu2 %vm475_vm1, %v6846_v54  ;;  %4622 = vmatmul.msk.f32.gmra.mxu3 %vm475_vm1, %v6846_v54  ;;  %463 = vst [vmem:[#allocation1 + $0x30] ss:$2 sm:$0xff] %v356_v36 }
 0x1ad   : > { %4971 = vpow2.f32 %v2523_v37 }
 0x1ae   : > { %v685_v57 = vpop.f32.mrf.mxu2  ;;  %v798_v58 = vpop.f32.mrf.mxu3  ;;  %4973 = vrcp.f32 %v2874_v27 }
 0x1af   : > { %v6926_v33 = vadd.f32 %v685_v57, %v6830_v49  ;;  %v6929_v39 = vadd.f32 %v798_v58, %v6844_v53  ;;  %v2883_v57 = vadd.f32 1.0, %v4954_v28  ;;  %v4960_v58 = vpop.eup %4959  ;;  %4975 = vpow2.f32 %v2525_v45 }
 0x1b0   : > { %v6946_v51 = vpop.eup %4961 }
 0x1b1   : > { %v1973_v24 = vsub.f32 0.0, %v6926_v33  ;;  %v1974_v50 = vsub.f32 0.0, %v6929_v39  ;;  %v4964_v23 = vpop.eup %4963  ;;  %4977 = vrcp.f32 %v2883_v57 }
 0x1b2   : > { %v6870_v0 = vpop.trf.xlu0  ;;  %4979 = vrcp.f32 %v2884_v46  ;;  %v2903_v55 = vadd.f32 1.0, %v4964_v23 }
 0x1b3   : > { %9697 = vst [vmem:[#allocation44_spill] sm:$0xff] %v6870_v0  ;;  %4524 = vmatmul.msk.f32.gmra.mxu0 %vm475_vm1, %v6870_v0  ;;  %4557 = vmatmul.msk.f32.gmra.mxu1 %vm475_vm1, %v6870_v0  ;;  %v2543_v25 = vmul.f32 1.442695, %v1973_v24  ;;  %v2545_v42 = vmul.f32 1.442695, %v1974_v50  ;;  %4981 = vrcp.f32 %v2893_v1 }
 0x1b4   : > { %4590 = vmatmul.msk.f32.gmra.mxu2 %vm475_vm1, %v6870_v0  ;;  %4623 = vmatmul.msk.f32.gmra.mxu3 %vm475_vm1, %v6870_v0  ;;  %v4966_v0 = vpop.eup %4965 }
 0x1b5   : > { %v4968_v37 = vpop.eup %4967  ;;  %4983 = vpow2.f32 %v2543_v25 }
 0x1b6   : > { %v688_v20 = vpop.f32.mrf.mxu2  ;;  %v6892_v21 = vpop.f32.mrf.mxu3 }
 0x1b7   : > { %v6944_v62 = vadd.f32 %v688_v20, %v6830_v49  ;;  %v6951_v22 = vadd.f32 %v6892_v21, %v6844_v53  ;;  %v4970_v27 = vpop.eup %4969  ;;  %v2913_v21 = vadd.f32 1.0, %v4968_v37 }
 0x1b8   : > { %v4972_v57 = vpop.eup %4971 }
 0x1b9   : > { %v1983_v20 = vsub.f32 0.0, %v6944_v62  ;;  %v6962_v46 = vpop.eup %4973  ;;  %v1984_v50 = vsub.f32 0.0, %v6951_v22  ;;  %v2923_v25 = vadd.f32 1.0, %v4972_v57 }
 0x1ba   : > { %v6906_v43 = vpop.trf.xlu0 }
 0x1bb   : > { %9698 = vst [vmem:[#allocation45_spill] sm:$0xff] %v6906_v43  ;;  %4525 = vmatmul.msk.f32.gmra.mxu0 %vm475_vm1, %v6906_v43  ;;  %4558 = vmatmul.msk.f32.gmra.mxu1 %vm475_vm1, %v6906_v43  ;;  %v2565_v57 = vmul.f32 1.442695, %v1984_v50 }
 0x1bc   : > { %4591 = vmatmul.msk.f32.gmra.mxu2 %vm475_vm1, %v6906_v43  ;;  %4624 = vmatmul.msk.f32.gmra.mxu3 %vm475_vm1, %v6906_v43 }
 0x1be   : > { %v691_v3 = vpop.f32.mrf.mxu2  ;;  %v6922_v4 = vpop.f32.mrf.mxu3 }
 0x1bf   : > { %v6954_v45 = vadd.f32 %v691_v3, %v6830_v49  ;;  %v4976_v3 = vpop.eup %4975  ;;  %v6971_v1 = vadd.f32 %v6922_v4, %v6844_v53 }
 0x1c0   : > { %v6973_v23 = vpop.eup %4977  ;;  %v2924_v4 = vadd.f32 1.0, %v4976_v3 }
 0x1c1   : > { %9701 = vst [vmem:[#allocation48_spill] sm:$0xff] %v6971_v1  ;;  %v1993_v36 = vsub.f32 0.0, %v6954_v45  ;;  %v6976_v19 = vpop.eup %4979 }
 0x1c2   : > { %v6931_v43 = vpop.trf.xlu0  ;;  %v6981_v48 = vpop.eup %4981 }
 0x1c3   : > { %9699 = vst [vmem:[#allocation46_spill] sm:$0xff] %v6931_v43  ;;  %4526 = vmatmul.msk.f32.gmra.mxu0 %vm475_vm1, %v6931_v43  ;;  %4559 = vmatmul.msk.f32.gmra.mxu1 %vm475_vm1, %v6931_v43 }
 0x1c4   : > { %4592 = vmatmul.msk.f32.gmra.mxu2 %vm475_vm1, %v6931_v43  ;;  %4625 = vmatmul.msk.f32.gmra.mxu3 %vm475_vm1, %v6931_v43  ;;  %v2894_v43 = vadd.f32 1.0, %v4960_v58  ;;  %v2904_v58 = vadd.f32 1.0, %v4966_v0  ;;  %v2563_v0 = vmul.f32 1.442695, %v1983_v20 }
 0x1c5   : > { %v470_v20 = vld.sshfl [vmem:[#allocation1 + $0x30] sm:$0xff pattern:$0x75316420] }
 0x1c6   : > { %v694_v28 = vpop.f32.mrf.mxu2  ;;  %v807_v5 = vpop.f32.mrf.mxu3  ;;  %4985 = vrcp.f32 %v2894_v43  ;;  %v2914_v43 = vadd.f32 1.0, %v4970_v27  ;;  %4711 = vmatpush.msk.msra.mxu2 %vm572_vm0, %v470_v20 }
 0x1c7   : > { %4987 = vpow2.f32 %v2545_v42  ;;  %v6979_v42 = vadd.f32 %v694_v28, %v6830_v49  ;;  %v4984_v27 = vpop.eup %4983 }
 0x1c8   : > { %4989 = vrcp.f32 %v2903_v55  ;;  %v6984_v55 = vadd.f32 %v807_v5, %v6844_v53  ;;  %v2933_v50 = vadd.f32 1.0, %v4984_v27 }
 0x1c9   : > { %4991 = vrcp.f32 %v2904_v58  ;;  %9702 = vst [vmem:[#allocation49_spill] sm:$0xff] %v6979_v42  ;;  %v1994_v58 = vsub.f32 0.0, %v6971_v1  ;;  %v2003_v20 = vsub.f32 0.0, %v6979_v42 }
 0x1ca   : > { %v6956_v24 = vpop.trf.xlu0  ;;  %4993 = vrcp.f32 %v2913_v21  ;;  %9703 = vst [vmem:[#allocation50_spill] sm:$0xff] %v6984_v55  ;;  %v2583_v21 = vmul.f32 1.442695, %v1993_v36 }
 0x1cb   : > { %9700 = vst [vmem:[#allocation47_spill] sm:$0xff] %v6956_v24  ;;  %4527 = vmatmul.msk.f32.gmra.mxu0 %vm475_vm1, %v6956_v24  ;;  %4560 = vmatmul.msk.f32.gmra.mxu1 %vm475_vm1, %v6956_v24  ;;  %4995 = vpow2.f32 %v2563_v0  ;;  %v2603_v41 = vmul.f32 1.442695, %v2003_v20 }
 0x1cc   : > { %4593 = vmatmul.msk.f32.gmra.mxu2 %vm475_vm1, %v6956_v24  ;;  %4626 = vmatmul.msk.f32.gmra.mxu3 %vm475_vm1, %v6956_v24  ;;  %v471_v24 = vld.sshfl [vmem:[#allocation1 + $0x38] sm:$0xff pattern:$0x75316420]  ;;  %v6992_v17 = vpop.eup %4985  ;;  %4997 = vrcp.f32 %v2914_v43  ;;  %v2004_v43 = vsub.f32 0.0, %v6984_v55 }
 0x1cd   : > { %4744 = vmatpush.msk.msra.mxu3 %vm572_vm0, %v471_v24  ;;  %v4988_v5 = vpop.eup %4987  ;;  %4999 = vrcp.f32 %v2923_v25  ;;  %v2585_v25 = vmul.f32 1.442695, %v1994_v58 }
 0x1ce   : > { %v697_v37 = vpop.f32.mrf.mxu2  ;;  %v810_v54 = vpop.f32.mrf.mxu3  ;;  %5001 = vrcp.f32 %v2924_v4  ;;  %v2934_v44 = vadd.f32 1.0, %v4988_v5  ;;  %v2605_v58 = vmul.f32 1.442695, %v2004_v43 }
 0x1cf   : > { %v6990_v28 = vadd.f32 %v697_v37, %v6830_v49  ;;  %v6998_v24 = vadd.f32 %v810_v54, %v6844_v53  ;;  %v7004_v0 = vpop.eup %4989  ;;  %5003 = vpow2.f32 %v2565_v57 }
 0x1d0   : > { %v7011_v54 = vpop.eup %4991  ;;  %5005 = vpow2.f32 %v2583_v21 }
 0x1d1   : > { %9704 = vst [vmem:[#allocation51_spill] sm:$0xff] %v6990_v28  ;;  %v2013_v36 = vsub.f32 0.0, %v6990_v28  ;;  %v7014_v37 = vpop.eup %4993  ;;  %v2014_v15 = vsub.f32 0.0, %v6998_v24  ;;  %5007 = vrcp.f32 %v2933_v50 }
 0x1d2   : > { %v6994_v3 = vpop.trf.xlu0  ;;  %9706 = vst [vmem:[#allocation53_spill] sm:$0xff] %v6998_v24  ;;  %v4996_v16 = vpop.eup %4995  ;;  %5009 = vpow2.f32 %v2585_v25 }
 0x1d3   : > { %9705 = vst [vmem:[#allocation52_spill] sm:$0xff] %v6994_v3  ;;  %4528 = vmatmul.msk.f32.gmra.mxu0 %vm475_vm1, %v6994_v3  ;;  %4561 = vmatmul.msk.f32.gmra.mxu1 %vm475_vm1, %v6994_v3  ;;  %v7023_v57 = vpop.eup %4997  ;;  %v2623_v21 = vmul.f32 1.442695, %v2013_v36  ;;  %5011 = vrcp.f32 %v2934_v44  ;;  %v2943_v20 = vadd.f32 1.0, %v4996_v16 }
 0x1d4   : > { %4594 = vmatmul.msk.f32.gmra.mxu2 %vm475_vm1, %v6994_v3  ;;  %4627 = vmatmul.msk.f32.gmra.mxu3 %vm475_vm1, %v6994_v3  ;;  %v7025_v28 = vpop.eup %4999  ;;  %5013 = vpow2.f32 %v2603_v41 }
 0x1d5   : > { %v7028_v55 = vpop.eup %5001  ;;  %5015 = vpow2.f32 %v2605_v58 }
 0x1d6   : > { %v700_v4 = vpop.f32.mrf.mxu2  ;;  %v813_v27 = vpop.f32.mrf.mxu3  ;;  %5017 = vpow2.f32 %v2623_v21 }
 0x1d7   : > { %v7018_v38 = vadd.f32 %v700_v4, %v6830_v49  ;;  %v7021_v3 = vadd.f32 %v813_v27, %v6844_v53  ;;  %v5004_v4 = vpop.eup %5003  ;;  %v2625_v27 = vmul.f32 1.442695, %v2014_v15  ;;  %5019 = vrcp.f32 %v2943_v20 }
 0x1d8   : > { %v5006_v50 = vpop.eup %5005  ;;  %v2944_v15 = vadd.f32 1.0, %v5004_v4 }
 0x1d9   : > { %9707 = vst [vmem:[#allocation54_spill] sm:$0xff] %v7018_v38  ;;  %v2023_v5 = vsub.f32 0.0, %v7018_v38  ;;  %v2024_v14 = vsub.f32 0.0, %v7021_v3  ;;  %v7041_v16 = vpop.eup %5007  ;;  %5021 = vpow2.f32 %v2625_v27  ;;  %v2953_v38 = vadd.f32 1.0, %v5006_v50 }
 0x1da   : > { %9708 = vst [vmem:[#allocation55_spill] sm:$0xff] %v7021_v3  ;;  %v7030_v24 = vpop.trf.xlu0  ;;  %v5010_v25 = vpop.eup %5009 }
 0x1db   : > { %9709 = vst [vmem:[#allocation56_spill] sm:$0xff] %v7030_v24  ;;  %4529 = vmatmul.msk.f32.gmra.mxu0 %vm475_vm1, %v7030_v24  ;;  %4562 = vmatmul.msk.f32.gmra.mxu1 %vm475_vm1, %v7030_v24  ;;  %v2643_v43 = vmul.f32 1.442695, %v2023_v5  ;;  %v2645_v36 = vmul.f32 1.442695, %v2024_v14  ;;  %v7049_v5 = vpop.eup %5011 }
 0x1dc   : > { %4595 = vmatmul.msk.f32.gmra.mxu2 %vm475_vm1, %v7030_v24  ;;  %4628 = vmatmul.msk.f32.gmra.mxu3 %vm475_vm1, %v7030_v24  ;;  %v5014_v35 = vpop.eup %5013 }
 0x1dd   : > { %5023 = vpow2.f32 %v2643_v43 }
 0x1de   : > { %v703_v41 = vpop.f32.mrf.mxu2  ;;  %v816_v44 = vpop.f32.mrf.mxu3  ;;  %5025 = vrcp.f32 %v2944_v15  ;;  %v7071_v15 = vperm.slane %v6825_v47, 2 }
 0x1df   : > { %v7044_v3 = vadd.f32 %v703_v41, %v6830_v49  ;;  %v7047_v58 = vadd.f32 %v816_v44, %v6844_v53  ;;  %v5016_v41 = vpop.eup %5015  ;;  %v2954_v44 = vadd.f32 1.0, %v5010_v25  ;;  %5027 = vpow2.f32 %v2645_v36 }
 0x1e0   : > { %v610_v21 = vpop.f32.mrf.mxu0  ;;  %v723_v24 = vpop.f32.mrf.mxu1  ;;  %5029 = vrcp.f32 %v2953_v38  ;;  %v7074_v25 = vperm.slane %v6825_v47, 3 }
 0x1e1   : > { %9710 = vst [vmem:[#allocation57_spill] sm:$0xff] %v7044_v3  ;;  %v2033_v20 = vsub.f32 0.0, %v7044_v3  ;;  %v2034_v4 = vsub.f32 0.0, %v7047_v58  ;;  %v7054_v27 = vadd.f32 %v610_v21, %v6830_v49  ;;  %v7057_v14 = vadd.f32 %v723_v24, %v6844_v53  ;;  %v5018_v42 = vpop.eup %5017 }
 0x1e2   : > { %9711 = vst [vmem:[#allocation58_spill] sm:$0xff] %v7047_v58  ;;  %v7064_v21 = vpop.eup %5019  ;;  %v2963_v24 = vadd.f32 1.0, %v5014_v35  ;;  %v2973_v35 = vadd.f32 1.0, %v5018_v42 }
 0x1e3   : > { %9712 = vst [vmem:[#allocation59_spill] sm:$0xff] %v7054_v27  ;;  %v2663_v50 = vmul.f32 1.442695, %v2033_v20  ;;  %v2665_v43 = vmul.f32 1.442695, %v2034_v4  ;;  %v1723_v13 = vsub.f32 0.0, %v7054_v27  ;;  %4530 = vmatmul.msk.f32.gmra.mxu0 %vm475_vm1, %v6657_v7  ;;  %4563 = vmatmul.msk.f32.gmra.mxu1 %vm475_vm1, %v6657_v7  ;;  %v5022_v36 = vpop.eup %5021 }
 0x1e4   : > { %9713 = vst [vmem:[#allocation60_spill] sm:$0xff] %v7057_v14  ;;  %4596 = vmatmul.msk.f32.gmra.mxu2 %vm475_vm1, %v6657_v7  ;;  %4629 = vmatmul.msk.f32.gmra.mxu3 %vm475_vm1, %v6657_v7  ;;  %v2964_v20 = vadd.f32 1.0, %v5016_v41  ;;  %v1724_v4 = vsub.f32 0.0, %v7057_v14  ;;  %v5024_v3 = vpop.eup %5023  ;;  %v2974_v7 = vadd.f32 1.0, %v5022_v36 }
 0x1e5   : > { %5031 = vpow2.f32 %v2663_v50  ;;  %v2043_v38 = vmul.f32 1.442695, %v1723_v13  ;;  %v7077_v32 = vpop.eup %5025 }
 0x1e6   : > { %5033 = vrcp.f32 %v2954_v44  ;;  %v5028_v14 = vpop.eup %5027  ;;  %v2045_v44 = vmul.f32 1.442695, %v1724_v4 }
 0x1e7   : > { %5035 = vpow2.f32 %v2665_v43  ;;  %v836_v58 = vpop.f32.mrf.mxu2  ;;  %v949_v27 = vpop.f32.mrf.mxu3  ;;  %v2984_v4 = vadd.f32 1.0, %v5028_v14 }
 0x1e8   : > { %5037 = vrcp.f32 %v2963_v24  ;;  %v7080_v12 = vadd.f32 %v836_v58, %v7071_v15  ;;  %v7083_v47 = vadd.f32 %v949_v27, %v7074_v25  ;;  %v613_v41 = vpop.f32.mrf.mxu0  ;;  %v726_v50 = vpop.f32.mrf.mxu1  ;;  %v2983_v24 = vadd.f32 1.0, %v5024_v3 }
 0x1e9   : > { %5039 = vrcp.f32 %v2964_v20  ;;  %v7086_v42 = vadd.f32 %v613_v41, %v6830_v49  ;;  %v7089_v13 = vadd.f32 %v726_v50, %v6844_v53  ;;  %v7091_v43 = vpop.eup %5029 }
 0x1ea   : > { %9715 = vst [vmem:[#allocation62_spill] sm:$0xff] %v7091_v43  ;;  %5041 = vrcp.f32 %v2973_v35  ;;  %v1725_v58 = vsub.f32 0.0, %v7080_v12  ;;  %v1726_v27 = vsub.f32 0.0, %v7083_v47 }
 0x1eb   : > { %9714 = vst [vmem:[#allocation61_spill] sm:$0xff] %v7086_v42  ;;  %v5032_v36 = vpop.eup %5031  ;;  %5043 = vpow2.f32 %v2043_v38  ;;  %4531 = vmatmul.msk.f32.gmra.mxu0 %vm475_vm1, %v6659_v8  ;;  %4564 = vmatmul.msk.f32.gmra.mxu1 %vm475_vm1, %v6659_v8  ;;  %v1733_v35 = vsub.f32 0.0, %v7086_v42  ;;  %v1734_v50 = vsub.f32 0.0, %v7089_v13 }
 0x1ec   : > { %v7099_v20 = vpop.eup %5033  ;;  %5045 = vrcp.f32 %v2974_v7  ;;  %v2047_v41 = vmul.f32 1.442695, %v1725_v58  ;;  %4597 = vmatmul.msk.f32.gmra.mxu2 %vm475_vm1, %v6659_v8  ;;  %4630 = vmatmul.msk.f32.gmra.mxu3 %vm475_vm1, %v6659_v8  ;;  %v2049_v38 = vmul.f32 1.442695, %v1726_v27 }
 0x1ed   : > { %9716 = vst [vmem:[#allocation63_spill] sm:$0xff] %v7099_v20  ;;  %v5036_v3 = vpop.eup %5035  ;;  %5047 = vpow2.f32 %v2045_v44  ;;  %v2993_v20 = vadd.f32 1.0, %v5032_v36  ;;  %v2063_v43 = vmul.f32 1.442695, %v1733_v35  ;;  %v2065_v36 = vmul.f32 1.442695, %v1734_v50 }
 0x1ee   : > { %v7107_v31 = vpop.eup %5037  ;;  %5049 = vrcp.f32 %v2983_v24  ;;  %v2994_v14 = vadd.f32 1.0, %v5036_v3 }
 0x1ef   : > { %9717 = vst [vmem:[#allocation64_spill] sm:$0xff] %v7107_v31  ;;  %v7109_v7 = vpop.eup %5039  ;;  %5051 = vpow2.f32 %v2047_v41  ;;  %v839_v58 = vpop.f32.mrf.mxu2 }
 0x1f0   : > { %9718 = vst [vmem:[#allocation65_spill] sm:$0xff] %v7109_v7  ;;  %v952_v42 = vpop.f32.mrf.mxu3  ;;  %v7111_v1 = vpop.eup %5041  ;;  %5053 = vrcp.f32 %v2984_v4  ;;  %v7114_v8 = vadd.f32 %v839_v58, %v7071_v15 }
 0x1f1   : > { %9719 = vst [vmem:[#allocation66_spill] sm:$0xff] %v7111_v1  ;;  %v7117_v44 = vadd.f32 %v952_v42, %v7074_v25  ;;  %v616_v27 = vpop.f32.mrf.mxu0  ;;  %v729_v31 = vpop.f32.mrf.mxu1  ;;  %5055 = vpow2.f32 %v2049_v38 }
 0x1f2   : > { %v5044_v24 = vpop.eup %5043  ;;  %v7120_v3 = vadd.f32 %v616_v27, %v6830_v49  ;;  %v7123_v41 = vadd.f32 %v729_v31, %v6844_v53  ;;  %5057 = vrcp.f32 %v2993_v20  ;;  %v1735_v4 = vsub.f32 0.0, %v7114_v8 }
 0x1f3   : > { %v7125_v1 = vpop.eup %5045  ;;  %v1736_v35 = vsub.f32 0.0, %v7117_v44  ;;  %5059 = vrcp.f32 %v2994_v14  ;;  %4532 = vmatmul.msk.f32.gmra.mxu0 %vm475_vm1, %v6661_v9  ;;  %4565 = vmatmul.msk.f32.gmra.mxu1 %vm475_vm1, %v6661_v9  ;;  %v2683_v31 = vadd.f32 1.0, %v5044_v24 }
 0x1f4   : > { %9720 = vst [vmem:[#allocation67_spill] sm:$0xff] %v7125_v1  ;;  %v5048_v42 = vpop.eup %5047  ;;  %v1743_v58 = vsub.f32 0.0, %v7120_v3  ;;  %5061 = vpow2.f32 %v2063_v43  ;;  %v2067_v50 = vmul.f32 1.442695, %v1735_v4  ;;  %4598 = vmatmul.msk.f32.gmra.mxu2 %vm475_vm1, %v6661_v9  ;;  %4631 = vmatmul.msk.f32.gmra.mxu3 %vm475_vm1, %v6661_v9  ;;  %v1744_v1 = vsub.f32 0.0, %v7123_v41 }
 0x1f5   : > { %v7134_v38 = vpop.eup %5049  ;;  %v2069_v20 = vmul.f32 1.442695, %v1736_v35  ;;  %5063 = vpow2.f32 %v2065_v36  ;;  %v2684_v43 = vadd.f32 1.0, %v5048_v42  ;;  %v7149_v4 = vmul.f32 %v6962_v46, %v6858_v56 }
 0x1f6   : > { %9721 = vst [vmem:[#allocation68_spill] sm:$0xff] %v7134_v38  ;;  %v5052_v14 = vpop.eup %5051  ;;  %v2083_v27 = vmul.f32 1.442695, %v1743_v58  ;;  %v7145_v38 = vmul.f32 %v6946_v51, %v6841_v52  ;;  %5065 = vpow2.f32 %v2067_v50  ;;  %v7153_v35 = vmul.f32 %v6973_v23, %v6861_v60  ;;  %v474_v50 = vld.sshfl [vmem:[#allocation1 + $0x8] sm:$0xff pattern:$0x75316420] }
 0x1f7   : > { %v7141_v7 = vpop.eup %5053  ;;  %9723 = vst [vmem:[#allocation70_spill] sm:$0xff] %v7149_v4  ;;  %v2685_v36 = vadd.f32 1.0, %v5052_v14  ;;  %5067 = vpow2.f32 %v2069_v20  ;;  %v842_v58 = vpop.f32.mrf.mxu2  ;;  %v7167_v60 = vmul.f32 %v6976_v19, %v6864_v61  ;;  %v2085_v23 = vmul.f32 1.442695, %v1744_v1  ;;  %4810 = vmatpush.msk.msra.mxu1 %vm572_vm0, %v474_v50 }
 0x1f8   : > { %9722 = vst [vmem:[#allocation69_spill] sm:$0xff] %v7141_v7  ;;  %v5056_v24 = vpop.eup %5055  ;;  %v955_v9 = vpop.f32.mrf.mxu3  ;;  %5069 = vrcp.f32 %v2683_v31  ;;  %v7158_v51 = vadd.f32 %v842_v58, %v7071_v15  ;;  %v473_v20 = vld.sshfl [vmem:[#allocation1] sm:$0xff pattern:$0x75316420]  ;;  %v7184_v61 = vmul.f32 %v6992_v17, %v6874_v2  ;;  %v7201_v17 = vmul.f32 %v7014_v37, %v6896_v26 }
 0x1f9   : > { %v7155_v7 = vpop.eup %5057  ;;  %v2686_v52 = vadd.f32 1.0, %v5056_v24  ;;  %v7161_v42 = vadd.f32 %v955_v9, %v7074_v25  ;;  %v619_v56 = vpop.f32.mrf.mxu0  ;;  %5071 = vpow2.f32 %v2083_v27  ;;  %v7175_v9 = vmul.f32 %v6981_v48, %v6868_v63  ;;  %4777 = vmatpush.msk.msra.mxu0 %vm572_vm0, %v473_v20 }
 0x1fa   : > { %9724 = vst [vmem:[#allocation71_spill] sm:$0xff] %v7155_v7  ;;  %v732_v46 = vpop.f32.mrf.mxu1  ;;  %v7163_v4 = vpop.eup %5059  ;;  %v7170_v31 = vadd.f32 %v619_v56, %v6830_v49  ;;  %5073 = vrcp.f32 %v2684_v43  ;;  %v1745_v24 = vsub.f32 0.0, %v7158_v51  ;;  %v7193_v63 = vmul.f32 %v7004_v0, %v6887_v6 }
 0x1fb   : > { %v5062_v14 = vpop.eup %5061  ;;  %v7179_v58 = vadd.f32 %v732_v46, %v6844_v53  ;;  %5075 = vrcp.f32 %v2685_v36  ;;  %v1746_v27 = vsub.f32 0.0, %v7161_v42  ;;  %4646 = vmatmul.msk.f32.vlgmr.msrb.gmra.mxu0 %vm475_vm1, %v6745_v29  ;;  %4679 = vmatmul.msk.f32.vlgmr.msrb.gmra.mxu1 %vm475_vm1, %v6745_v29  ;;  %v7197_v43 = vmul.f32 %v7011_v54, %v6890_v18  ;;  %9725 = vst [vmem:[#allocation72_spill] sm:$0xff] %v7201_v17 }
 0x1fc   : > { %v5064_v19 = vpop.eup %5063  ;;  %v2693_v1 = vadd.f32 1.0, %v5062_v14  ;;  %5077 = vrcp.f32 %v2686_v52  ;;  %4599 = vmatmul.msk.f32.gmra.mxu2 %vm475_vm1, %v6663_v10  ;;  %4632 = vmatmul.msk.f32.gmra.mxu3 %vm475_vm1, %v6663_v10  ;;  %v2087_v6 = vmul.f32 1.442695, %v1745_v24  ;;  %v1753_v0 = vsub.f32 0.0, %v7170_v31 }
 0x1fd   : > { %v5066_v48 = vpop.eup %5065  ;;  %5079 = vpow2.f32 %v2085_v23  ;;  %v2694_v18 = vadd.f32 1.0, %v5064_v19  ;;  %v1754_v26 = vsub.f32 0.0, %v7179_v58  ;;  %v7213_v52 = vmul.f32 %v7023_v57, %v6899_v34 }
 0x1fe   : > { %v5068_v2 = vpop.eup %5067  ;;  %v2695_v36 = vadd.f32 1.0, %v5066_v48  ;;  %5081 = vrcp.f32 %v2693_v1  ;;  %v7217_v46 = vmul.f32 %v7025_v28, %v6903_v40  ;;  %v2089_v50 = vmul.f32 1.442695, %v1746_v27 }
 0x1ff   : > { %v7208_v56 = vpop.eup %5069  ;;  %v2696_v54 = vadd.f32 1.0, %v5068_v2  ;;  %9726 = vst [vmem:[#allocation73_spill] sm:$0xff] %v7213_v52  ;;  %v845_v23 = vpop.f32.mrf.mxu2  ;;  %v2103_v40 = vmul.f32 1.442695, %v1753_v0 }
 0x200   : > { %v5072_v37 = vpop.eup %5071  ;;  %9727 = vst [vmem:[#allocation74_spill] sm:$0xff] %v7217_v46  ;;  %5083 = vrcp.f32 %v2695_v36  ;;  %v958_v20 = vpop.f32.mrf.mxu3  ;;  %v7222_v19 = vadd.f32 %v845_v23, %v7071_v15  ;;  %v2105_v36 = vmul.f32 1.442695, %v1754_v26  ;;  %v7247_v26 = vmul.f32 %v7041_v16, %v6926_v33 }
 0x201   : > { %v7219_v14 = vpop.eup %5073  ;;  %5085 = vrcp.f32 %v2696_v54  ;;  %v2703_v24 = vadd.f32 1.0, %v5072_v37  ;;  %v7225_v1 = vadd.f32 %v958_v20, %v7074_v25  ;;  %v622_v34 = vpop.f32.mrf.mxu0  ;;  %v7237_v20 = vmul.f32 %v7028_v55, %v6910_v59 }
 0x202   : > { %v735_v57 = vpop.f32.mrf.mxu1  ;;  %v5076_v48 = vpop.eup %5075  ;;  %5087 = vpow2.f32 %v2087_v6  ;;  %v7228_v28 = vadd.f32 %v622_v34, %v6830_v49  ;;  %v1755_v54 = vsub.f32 0.0, %v7222_v19  ;;  %9729 = vst [vmem:[#allocation76_spill] sm:$0xff] %v7247_v26 }
 0x203   : > { %v7231_v27 = vadd.f32 %v735_v57, %v6844_v53  ;;  %v5078_v2 = vpop.eup %5077  ;;  %5089 = vrcp.f32 %v2694_v18  ;;  %v1756_v37 = vsub.f32 0.0, %v7225_v1  ;;  %9728 = vst [vmem:[#allocation75_spill] sm:$0xff] %v7237_v20  ;;  %4647 = vmatmul.msk.f32.gmra.mxu0 %vm475_vm1, %v6755_v30  ;;  %4680 = vmatmul.msk.f32.gmra.mxu1 %vm475_vm1, %v6755_v30  ;;  %v7259_v57 = vmul.f32 %v7064_v21, %v6944_v62 }
 0x204   : > { %v5080_v23 = vpop.eup %5079  ;;  %5091 = vpow2.f32 %v2089_v50  ;;  %v1763_v6 = vsub.f32 0.0, %v7228_v28  ;;  %v2107_v34 = vmul.f32 1.442695, %v1755_v54  ;;  %4600 = vmatmul.msk.f32.gmra.mxu2 %vm475_vm1, %v6669_v11  ;;  %4633 = vmatmul.msk.f32.gmra.mxu3 %vm475_vm1, %v6669_v11  ;;  %v7255_v50 = vmul.f32 %v7049_v5, %v6929_v39 }
 0x205   : > { %v1764_v0 = vsub.f32 0.0, %v7231_v27  ;;  %v5082_v18 = vpop.eup %5081  ;;  %5093 = vrcp.f32 %v2703_v24  ;;  %v2109_v59 = vmul.f32 1.442695, %v1756_v37  ;;  %9731 = vst [vmem:[#allocation78_spill] sm:$0xff] %v7259_v57  ;;  %v7263_v24 = vmul.f32 %v7077_v32, %v6951_v22 }
 0x206   : > { %v5084_v55 = vpop.eup %5083  ;;  %9730 = vst [vmem:[#allocation77_spill] sm:$0xff] %v7255_v50  ;;  %5095 = vpow2.f32 %v2103_v40  ;;  %v2123_v33 = vmul.f32 1.442695, %v1763_v6  ;;  %v3325_v54 = vmul.f32 %v5076_v48, %v7080_v12  ;;  %v3326_v39 = vmul.f32 %v5078_v2, %v7083_v47 }
 0x207   : > { %v5086_v16 = vpop.eup %5085  ;;  %9732 = vst [vmem:[#allocation79_spill] sm:$0xff] %v7263_v24  ;;  %v3335_v37 = vmul.f32 %v5084_v55, %v7114_v8  ;;  %5097 = vpow2.f32 %v2105_v36  ;;  %v2125_v62 = vmul.f32 1.442695, %v1764_v0  ;;  %v848_v21 = vpop.f32.mrf.mxu2  ;;  %v2704_v47 = vadd.f32 1.0, %v5080_v23  ;;  %v9736_v23 = vld [vmem:[#allocation63_spill] sm:$0xff] }
 0x208   : > { %v5088_v7 = vpop.eup %5087  ;;  %v3336_v5 = vmul.f32 %v5086_v16, %v7117_v44  ;;  %5099 = vpow2.f32 %v2107_v34  ;;  %v961_v40 = vpop.f32.mrf.mxu3  ;;  %v7272_v22 = vadd.f32 %v848_v21, %v7071_v15  ;;  %v9735_v16 = vld [vmem:[#allocation48_spill] sm:$0xff] }
 0x209   : > { %v5090_v6 = vpop.eup %5089  ;;  %v7269_v57 = vadd.f32 %v3335_v37, %v3325_v54  ;;  %v2705_v50 = vadd.f32 1.0, %v5088_v7  ;;  %5101 = vpow2.f32 %v2109_v59  ;;  %v625_v12 = vpop.f32.mrf.mxu0  ;;  %v7277_v44 = vadd.f32 %v961_v40, %v7074_v25  ;;  %v9733_v59 = vld [vmem:[#allocation62_spill] sm:$0xff]  ;;  %v9738_v37 = vld [vmem:[#allocation36_spill] sm:$0xff]  ;;  %v9740_v40 = vld [vmem:[#allocation23_spill] sm:$0xff] }
 0x20a   : > { %v738_v8 = vpop.f32.mrf.mxu1  ;;  %v5092_v32 = vpop.eup %5091  ;;  %v7274_v48 = vadd.f32 %v3336_v5, %v3326_v39  ;;  %5103 = vpow2.f32 %v2123_v33  ;;  %v1765_v7 = vsub.f32 0.0, %v7272_v22  ;;  %v7283_v0 = vadd.f32 %v625_v12, %v6830_v49  ;;  %v9739_v39 = vld [vmem:[#allocation61_spill] sm:$0xff] }
 0x20b   : > { %v7279_v2 = vpop.eup %5093  ;;  %5105 = vrcp.f32 %v2705_v50  ;;  %v2706_v36 = vadd.f32 1.0, %v5092_v32  ;;  %v7287_v55 = vmul.f32 %v9733_v59, %v6954_v45  ;;  %v7291_v33 = vmul.f32 %v9736_v23, %v9735_v16  ;;  %4648 = vmatmul.msk.f32.gmra.mxu0 %vm475_vm1, %v9738_v37  ;;  %4681 = vmatmul.msk.f32.gmra.mxu1 %vm475_vm1, %v9738_v37 }
 0x20c   : > { %v5096_v34 = vpop.eup %5095  ;;  %5107 = vpow2.f32 %v2125_v62  ;;  %v1766_v54 = vsub.f32 0.0, %v7277_v44  ;;  %v3333_v5 = vmul.f32 %v5082_v18, %v9739_v39  ;;  %v1773_v45 = vsub.f32 0.0, %v7283_v0  ;;  %4601 = vmatmul.msk.f32.gmra.mxu2 %vm475_vm1, %v9740_v40  ;;  %4634 = vmatmul.msk.f32.gmra.mxu3 %vm475_vm1, %v9740_v40 }
 0x20d   : > { %9734 = vst [vmem:[#allocation62_spill] sm:$0xff] %v7287_v55  ;;  %v5098_v50 = vpop.eup %5097  ;;  %5109 = vrcp.f32 %v2706_v36  ;;  %v2713_v21 = vadd.f32 1.0, %v5096_v34  ;;  %v3334_v12 = vmul.f32 %v5090_v6, %v7089_v13  ;;  %v7306_v59 = vadd.f32 %v738_v8, %v6844_v53 }
 0x20e   : > { %9737 = vst [vmem:[#allocation48_spill] sm:$0xff] %v7291_v33  ;;  %v5100_v62 = vpop.eup %5099  ;;  %5111 = vrcp.f32 %v2704_v47  ;;  %v2714_v32 = vadd.f32 1.0, %v5098_v50  ;;  %v2127_v36 = vmul.f32 1.442695, %v1765_v7  ;;  %v2129_v34 = vmul.f32 1.442695, %v1766_v54 }
 0x20f   : > { %v5102_v16 = vpop.eup %5101  ;;  %5113 = vrcp.f32 %v2713_v21  ;;  %v2715_v18 = vadd.f32 1.0, %v5100_v62  ;;  %v2143_v33 = vmul.f32 1.442695, %v1773_v45  ;;  %v1774_v55 = vsub.f32 0.0, %v7306_v59  ;;  %v851_v40 = vpop.f32.mrf.mxu2 }
 0x210   : > { %v5104_v23 = vpop.eup %5103  ;;  %5115 = vrcp.f32 %v2714_v32  ;;  %v2716_v39 = vadd.f32 1.0, %v5102_v16  ;;  %v964_v24 = vpop.f32.mrf.mxu3  ;;  %v7310_v6 = vadd.f32 %v851_v40, %v7071_v15  ;;  %v3343_v52 = vmul.f32 %v7279_v2, %v7120_v3 }
 0x211   : > { %v5106_v26 = vpop.eup %5105  ;;  %5117 = vrcp.f32 %v2715_v18  ;;  %v2723_v13 = vadd.f32 1.0, %v5104_v23  ;;  %v7313_v8 = vadd.f32 %v964_v24, %v7074_v25  ;;  %v628_v47 = vpop.f32.mrf.mxu0  ;;  %v2145_v21 = vmul.f32 1.442695, %v1774_v55 }
 0x212   : > { %v741_v7 = vpop.f32.mrf.mxu1  ;;  %v5108_v54 = vpop.eup %5107  ;;  %v3345_v50 = vmul.f32 %v5106_v26, %v7158_v51  ;;  %5119 = vrcp.f32 %v2716_v39  ;;  %v7317_v45 = vadd.f32 %v628_v47, %v6830_v49  ;;  %v1775_v16 = vsub.f32 0.0, %v7310_v6  ;;  %v9741_v26 = vld [vmem:[#allocation37_spill] sm:$0xff]  ;;  %v9742_v39 = vld [vmem:[#allocation59_spill] sm:$0xff] }
 0x213   : > { %v5110_v62 = vpop.eup %5109  ;;  %5121 = vrcp.f32 %v2723_v13  ;;  %v2724_v32 = vadd.f32 1.0, %v5108_v54  ;;  %v1776_v40 = vsub.f32 0.0, %v7313_v8  ;;  %4649 = vmatmul.msk.f32.gmra.mxu0 %vm475_vm1, %v9741_v26  ;;  %4682 = vmatmul.msk.f32.gmra.mxu1 %vm475_vm1, %v9741_v26  ;;  %v3323_v13 = vmul.f32 %v7208_v56, %v9742_v39 }
 0x214   : > { %v5112_v18 = vpop.eup %5111  ;;  %v3720_v24 = vadd.f32 %v7269_v57, %v3345_v50  ;;  %v3346_v23 = vmul.f32 %v5110_v62, %v7161_v42  ;;  %5123 = vpow2.f32 %v2127_v36  ;;  %v1783_v51 = vsub.f32 0.0, %v7317_v45  ;;  %v9743_v57 = vld [vmem:[#allocation24_spill] sm:$0xff] }
 0x215   : > { %v5114_v55 = vpop.eup %5113  ;;  %5125 = vrcp.f32 %v2724_v32  ;;  %v2147_v47 = vmul.f32 1.442695, %v1775_v16  ;;  %v7331_v54 = vadd.f32 %v741_v7, %v6844_v53  ;;  %4602 = vmatmul.msk.f32.gmra.mxu2 %vm475_vm1, %v9743_v57  ;;  %4635 = vmatmul.msk.f32.gmra.mxu3 %vm475_vm1, %v9743_v57  ;;  %v9744_v36 = vld [vmem:[#allocation60_spill] sm:$0xff]  ;;  %v2149_v20 = vmul.f32 1.442695, %v1776_v40 }
 0x216   : > { %v5116_v42 = vpop.eup %5115  ;;  %v3324_v50 = vmul.f32 %v7219_v14, %v9744_v36  ;;  %v3757_v62 = vadd.f32 %v7274_v48, %v3346_v23  ;;  %5127 = vpow2.f32 %v2129_v34  ;;  %v3645_v32 = vadd.f32 %v3333_v5, %v3323_v13  ;;  %v9746_v13 = vld [vmem:[#allocation64_spill] sm:$0xff] }
 0x217   : > { %v5118_v56 = vpop.eup %5117  ;;  %5129 = vpow2.f32 %v2143_v33  ;;  %v2163_v16 = vmul.f32 1.442695, %v1783_v51  ;;  %v1784_v7 = vsub.f32 0.0, %v7331_v54  ;;  %v854_v17 = vpop.f32.mrf.mxu2  ;;  %v3344_v48 = vmul.f32 %v5112_v18, %v7123_v41  ;;  %v9745_v18 = vld [vmem:[#allocation49_spill] sm:$0xff] }
 0x218   : > { %v5120_v39 = vpop.eup %5119  ;;  %v3682_v46 = vadd.f32 %v3334_v12, %v3324_v50  ;;  %v3355_v57 = vmul.f32 %v5118_v56, %v7222_v19  ;;  %5131 = vpow2.f32 %v2145_v21  ;;  %v967_v14 = vpop.f32.mrf.mxu3  ;;  %v3353_v12 = vmul.f32 %v5114_v55, %v7170_v31 }
 0x219   : > { %v7344_v36 = vpop.eup %5121  ;;  %v3356_v5 = vmul.f32 %v5120_v39, %v7225_v1  ;;  %5133 = vpow2.f32 %v2147_v47  ;;  %v2165_v33 = vmul.f32 1.442695, %v1784_v7  ;;  %v631_v34 = vpop.f32.mrf.mxu0  ;;  %v7352_v3 = vadd.f32 %v854_v17, %v7071_v15  ;;  %v9751_v7 = vld [vmem:[#allocation65_spill] sm:$0xff] }
 0x21a   : > { %v744_v40 = vpop.f32.mrf.mxu1  ;;  %v5124_v23 = vpop.eup %5123  ;;  %v7349_v51 = vadd.f32 %v3720_v24, %v3355_v57  ;;  %5135 = vpow2.f32 %v2149_v20  ;;  %v7357_v41 = vadd.f32 %v967_v14, %v7074_v25  ;;  %v7361_v47 = vmul.f32 %v9746_v13, %v9745_v18  ;;  %v9748_v20 = vld [vmem:[#allocation38_spill] sm:$0xff] }
 0x21b   : > { %v5126_v19 = vpop.eup %5125  ;;  %v7354_v2 = vadd.f32 %v3757_v62, %v3356_v5  ;;  %v2725_v21 = vadd.f32 1.0, %v5124_v23  ;;  %5137 = vpow2.f32 %v2163_v16  ;;  %v3646_v31 = vadd.f32 %v3645_v32, %v3343_v52  ;;  %4650 = vmatmul.msk.f32.gmra.mxu0 %vm475_vm1, %v9748_v20  ;;  %4683 = vmatmul.msk.f32.gmra.mxu1 %vm475_vm1, %v9748_v20  ;;  %v9749_v62 = vld [vmem:[#allocation25_spill] sm:$0xff]  ;;  %v9750_v16 = vld [vmem:[#allocation50_spill] sm:$0xff] }
 0x21c   : > { %v5128_v1 = vpop.eup %5127  ;;  %9747 = vst [vmem:[#allocation63_spill] sm:$0xff] %v7361_v47  ;;  %v3354_v24 = vmul.f32 %v5116_v42, %v7179_v58  ;;  %5139 = vpow2.f32 %v2165_v33  ;;  %v3683_v55 = vadd.f32 %v3682_v46, %v3344_v48  ;;  %v7369_v50 = vadd.f32 %v631_v34, %v6830_v49 }
 0x21d   : > { %v5130_v17 = vpop.eup %5129  ;;  %5141 = vrcp.f32 %v2725_v21  ;;  %v2726_v57 = vadd.f32 1.0, %v5128_v1  ;;  %4603 = vmatmul.msk.f32.gmra.mxu2 %vm475_vm1, %v9749_v62  ;;  %4636 = vmatmul.msk.f32.gmra.mxu3 %vm475_vm1, %v9749_v62  ;;  %v1785_v42 = vsub.f32 0.0, %v7352_v3  ;;  %v1786_v56 = vsub.f32 0.0, %v7357_v41 }
 0x21e   : > { %v5132_v58 = vpop.eup %5131  ;;  %v2733_v52 = vadd.f32 1.0, %v5130_v17  ;;  %v7378_v32 = vadd.f32 %v744_v40, %v6844_v53  ;;  %v7382_v39 = vmul.f32 %v9751_v7, %v9750_v16  ;;  %v7384_v14 = vadd.f32 %v3646_v31, %v3353_v12 }
 0x21f   : > { %v5134_v46 = vpop.eup %5133  ;;  %5143 = vrcp.f32 %v2726_v57  ;;  %v2734_v48 = vadd.f32 1.0, %v5132_v58  ;;  %v3684_v33 = vadd.f32 %v3683_v55, %v3354_v24  ;;  %v1793_v23 = vsub.f32 0.0, %v7369_v50  ;;  %v857_v21 = vpop.f32.mrf.mxu2 }
 0x220   : > { %9752 = vst [vmem:[#allocation61_spill] sm:$0xff] %v7382_v39  ;;  %v5136_v5 = vpop.eup %5135  ;;  %5145 = vrcp.f32 %v2733_v52  ;;  %v2735_v34 = vadd.f32 1.0, %v5134_v46  ;;  %v970_v1 = vpop.f32.mrf.mxu3  ;;  %v1794_v13 = vsub.f32 0.0, %v7378_v32  ;;  %v7389_v17 = vadd.f32 %v857_v21, %v7071_v15 }
 0x221   : > { %v5138_v18 = vpop.eup %5137  ;;  %5147 = vrcp.f32 %v2734_v48  ;;  %v2736_v40 = vadd.f32 1.0, %v5136_v5  ;;  %v634_v12 = vpop.f32.mrf.mxu0  ;;  %v2167_v58 = vmul.f32 1.442695, %v1785_v42  ;;  %v2169_v24 = vmul.f32 1.442695, %v1786_v56  ;;  %v9753_v42 = vld [vmem:[#allocation39_spill] sm:$0xff] }
 0x222   : > { %v747_v31 = vpop.f32.mrf.mxu1  ;;  %v5140_v57 = vpop.eup %5139  ;;  %5149 = vrcp.f32 %v2735_v34  ;;  %v7392_v55 = vadd.f32 %v970_v1, %v7074_v25  ;;  %v1795_v16 = vsub.f32 0.0, %v7389_v17  ;;  %v7396_v7 = vadd.f32 %v634_v12, %v6830_v49 }
 0x223   : > { %v5142_v52 = vpop.eup %5141  ;;  %5151 = vrcp.f32 %v2736_v40  ;;  %v2744_v46 = vadd.f32 1.0, %v5140_v57  ;;  %v2183_v5 = vmul.f32 1.442695, %v1793_v23  ;;  %v7401_v34 = vadd.f32 %v747_v31, %v6844_v53  ;;  %4651 = vmatmul.msk.f32.gmra.mxu0 %vm475_vm1, %v9753_v42  ;;  %4684 = vmatmul.msk.f32.gmra.mxu1 %vm475_vm1, %v9753_v42 }
 0x224   : > { %v3365_v48 = vmul.f32 %v5142_v52, %v7272_v22  ;;  %v1796_v21 = vsub.f32 0.0, %v7392_v55  ;;  %v3364_v1 = vmul.f32 %v5126_v19, %v7231_v27  ;;  %v2185_v40 = vmul.f32 1.442695, %v1794_v13  ;;  %v9754_v22 = vld [vmem:[#allocation26_spill] sm:$0xff] }
 0x225   : > { %v5144_v56 = vpop.eup %5143  ;;  %5153 = vrcp.f32 %v2744_v46  ;;  %v1803_v12 = vsub.f32 0.0, %v7396_v7  ;;  %4604 = vmatmul.msk.f32.gmra.mxu2 %vm475_vm1, %v9754_v22  ;;  %4637 = vmatmul.msk.f32.gmra.mxu3 %vm475_vm1, %v9754_v22  ;;  %v2187_v52 = vmul.f32 1.442695, %v1795_v16  ;;  %v3363_v27 = vmul.f32 %v7344_v36, %v7228_v28 }
 0x226   : > { %v5146_v23 = vpop.eup %5145  ;;  %v3722_v31 = vadd.f32 %v7349_v51, %v3365_v48  ;;  %v3366_v57 = vmul.f32 %v5144_v56, %v7277_v44  ;;  %5155 = vpow2.f32 %v2167_v58  ;;  %v2189_v19 = vmul.f32 1.442695, %v1796_v21 }
 0x227   : > { %v5148_v62 = vpop.eup %5147  ;;  %5157 = vpow2.f32 %v2169_v24  ;;  %v1804_v13 = vsub.f32 0.0, %v7401_v34  ;;  %v2203_v47 = vmul.f32 1.442695, %v1803_v12  ;;  %v860_v51 = vpop.f32.mrf.mxu2  ;;  %v3685_v58 = vadd.f32 %v3684_v33, %v3364_v1 }
 0x228   : > { %v5150_v46 = vpop.eup %5149  ;;  %v3759_v39 = vadd.f32 %v7354_v2, %v3366_v57  ;;  %v3374_v22 = vmul.f32 %v5148_v62, %v7306_v59  ;;  %5159 = vpow2.f32 %v2183_v5  ;;  %v973_v48 = vpop.f32.mrf.mxu3  ;;  %v2743_v21 = vadd.f32 1.0, %v5138_v18  ;;  %v9755_v18 = vld [vmem:[#allocation40_spill] sm:$0xff] }
 0x229   : > { %v5152_v44 = vpop.eup %5151  ;;  %v3375_v16 = vmul.f32 %v5150_v46, %v7310_v6  ;;  %5161 = vpow2.f32 %v2185_v40  ;;  %v2205_v56 = vmul.f32 1.442695, %v1804_v13  ;;  %v637_v28 = vpop.f32.mrf.mxu0  ;;  %v7423_v2 = vadd.f32 %v860_v51, %v7071_v15 }
 0x22a   : > { %v750_v36 = vpop.f32.mrf.mxu1  ;;  %v3376_v24 = vmul.f32 %v5152_v44, %v7313_v8  ;;  %5163 = vpow2.f32 %v2187_v52  ;;  %v3686_v62 = vadd.f32 %v3685_v58, %v3374_v22  ;;  %v7428_v33 = vadd.f32 %v973_v48, %v7074_v25  ;;  %v9756_v22 = vld [vmem:[#allocation51_spill] sm:$0xff] }
 0x22b   : > { %v5154_v59 = vpop.eup %5153  ;;  %v7425_v5 = vadd.f32 %v3722_v31, %v3375_v16  ;;  %5165 = vpow2.f32 %v2189_v19  ;;  %v1805_v8 = vsub.f32 0.0, %v7423_v2  ;;  %4652 = vmatmul.msk.f32.gmra.mxu0 %vm475_vm1, %v9755_v18  ;;  %4685 = vmatmul.msk.f32.gmra.mxu1 %vm475_vm1, %v9755_v18  ;;  %v9757_v31 = vld [vmem:[#allocation66_spill] sm:$0xff]  ;;  %v3648_v52 = vadd.f32 %v7384_v14, %v3363_v27  ;;  %v9759_v19 = vld [vmem:[#allocation27_spill] sm:$0xff] }
 0x22c   : > { %v5156_v6 = vpop.eup %5155  ;;  %v7430_v1 = vadd.f32 %v3759_v39, %v3376_v24  ;;  %v3384_v40 = vmul.f32 %v5154_v59, %v7331_v54  ;;  %5167 = vpow2.f32 %v2203_v47  ;;  %v7440_v57 = vmul.f32 %v9757_v31, %v9756_v22 }
 0x22d   : > { %v5158_v12 = vpop.eup %5157  ;;  %v2745_v39 = vadd.f32 1.0, %v5156_v6  ;;  %5169 = vpow2.f32 %v2205_v56  ;;  %4605 = vmatmul.msk.f32.gmra.mxu2 %vm475_vm1, %v9759_v19  ;;  %4638 = vmatmul.msk.f32.gmra.mxu3 %vm475_vm1, %v9759_v19  ;;  %v7450_v46 = vadd.f32 %v637_v28, %v6830_v49  ;;  %v1806_v14 = vsub.f32 0.0, %v7428_v33 }
 0x22e   : > { %9758 = vst [vmem:[#allocation59_spill] sm:$0xff] %v7440_v57  ;;  %v5160_v54 = vpop.eup %5159  ;;  %5171 = vrcp.f32 %v2743_v21  ;;  %v7447_v47 = vadd.f32 %v3686_v62, %v3384_v40  ;;  %v2746_v13 = vadd.f32 1.0, %v5158_v12  ;;  %v7454_v27 = vadd.f32 %v750_v36, %v6844_v53 }
 0x22f   : > { %v5162_v51 = vpop.eup %5161  ;;  %5173 = vrcp.f32 %v2745_v39  ;;  %v2753_v48 = vadd.f32 1.0, %v5160_v54  ;;  %v3373_v58 = vmul.f32 %v5146_v23, %v7283_v0  ;;  %v2207_v56 = vmul.f32 1.442695, %v1805_v8  ;;  %v863_v24 = vpop.f32.mrf.mxu2 }
 0x230   : > { %v5164_v44 = vpop.eup %5163  ;;  %5175 = vrcp.f32 %v2746_v13  ;;  %v2754_v16 = vadd.f32 1.0, %v5162_v51  ;;  %v976_v21 = vpop.f32.mrf.mxu3  ;;  %v1813_v62 = vsub.f32 0.0, %v7450_v46  ;;  %v7459_v6 = vadd.f32 %v863_v24, %v7071_v15 }
 0x231   : > { %v5166_v59 = vpop.eup %5165  ;;  %5177 = vrcp.f32 %v2753_v48  ;;  %v2755_v28 = vadd.f32 1.0, %v5164_v44  ;;  %v640_v40 = vpop.f32.mrf.mxu0  ;;  %v1814_v0 = vsub.f32 0.0, %v7454_v27  ;;  %v7463_v23 = vadd.f32 %v976_v21, %v7074_v25 }
 0x232   : > { %v753_v12 = vpop.f32.mrf.mxu1  ;;  %v5168_v36 = vpop.eup %5167  ;;  %5179 = vrcp.f32 %v2754_v16  ;;  %v2756_v22 = vadd.f32 1.0, %v5166_v59  ;;  %v2209_v39 = vmul.f32 1.442695, %v1806_v14  ;;  %v1815_v54 = vsub.f32 0.0, %v7459_v6  ;;  %v9760_v16 = vld [vmem:[#allocation41_spill] sm:$0xff] }
 0x233   : > { %v5170_v8 = vpop.eup %5169  ;;  %5181 = vrcp.f32 %v2755_v28  ;;  %v2763_v31 = vadd.f32 1.0, %v5168_v36  ;;  %v1816_v48 = vsub.f32 0.0, %v7463_v23  ;;  %v7468_v44 = vadd.f32 %v640_v40, %v6830_v49  ;;  %4653 = vmatmul.msk.f32.gmra.mxu0 %vm475_vm1, %v9760_v16  ;;  %4686 = vmatmul.msk.f32.gmra.mxu1 %vm475_vm1, %v9760_v16  ;;  %v9761_v28 = vld [vmem:[#allocation28_spill] sm:$0xff] }
 0x234   : > { %v5172_v13 = vpop.eup %5171  ;;  %5183 = vrcp.f32 %v2756_v22  ;;  %v2764_v51 = vadd.f32 1.0, %v5170_v8  ;;  %v3649_v21 = vadd.f32 %v3648_v52, %v3373_v58  ;;  %v2223_v14 = vmul.f32 1.442695, %v1813_v62 }
 0x235   : > { %v5174_v24 = vpop.eup %5173  ;;  %5185 = vrcp.f32 %v2763_v31  ;;  %v7475_v59 = vadd.f32 %v753_v12, %v6844_v53  ;;  %4606 = vmatmul.msk.f32.gmra.mxu2 %vm475_vm1, %v9761_v28  ;;  %4639 = vmatmul.msk.f32.gmra.mxu3 %vm475_vm1, %v9761_v28  ;;  %v2225_v22 = vmul.f32 1.442695, %v1814_v0  ;;  %v1823_v8 = vsub.f32 0.0, %v7468_v44 }
 0x236   : > { %v5176_v40 = vpop.eup %5175  ;;  %v3385_v36 = vmul.f32 %v5174_v24, %v7352_v3  ;;  %5187 = vrcp.f32 %v2764_v51  ;;  %v2227_v58 = vmul.f32 1.442695, %v1815_v54  ;;  %v3383_v31 = vmul.f32 %v5172_v13, %v7317_v45 }
 0x237   : > { %v5178_v19 = vpop.eup %5177  ;;  %v3386_v52 = vmul.f32 %v5176_v40, %v7357_v41  ;;  %5189 = vpow2.f32 %v2207_v56  ;;  %v1824_v62 = vsub.f32 0.0, %v7475_v59  ;;  %v2229_v28 = vmul.f32 1.442695, %v1816_v48  ;;  %v866_v16 = vpop.f32.mrf.mxu2 }
 0x238   : > { %v5180_v12 = vpop.eup %5179  ;;  %v3724_v57 = vadd.f32 %v7425_v5, %v3385_v36  ;;  %5191 = vpow2.f32 %v2209_v39  ;;  %v979_v3 = vpop.f32.mrf.mxu3  ;;  %v2243_v41 = vmul.f32 1.442695, %v1823_v8  ;;  %v3393_v11 = vmul.f32 %v5178_v19, %v7369_v50 }
 0x239   : > { %v5182_v51 = vpop.eup %5181  ;;  %v3761_v0 = vadd.f32 %v7430_v1, %v3386_v52  ;;  %v3394_v24 = vmul.f32 %v5180_v12, %v7378_v32  ;;  %5193 = vpow2.f32 %v2223_v14  ;;  %v643_v56 = vpop.f32.mrf.mxu0  ;;  %v2245_v5 = vmul.f32 1.442695, %v1824_v62 }
 0x23a   : > { %v756_v54 = vpop.f32.mrf.mxu1  ;;  %v5184_v40 = vpop.eup %5183  ;;  %v3395_v45 = vmul.f32 %v5182_v51, %v7389_v17  ;;  %5195 = vpow2.f32 %v2225_v22  ;;  %v7494_v1 = vadd.f32 %v866_v16, %v7071_v15  ;;  %v3650_v14 = vadd.f32 %v3649_v21, %v3383_v31  ;;  %v9762_v17 = vld [vmem:[#allocation42_spill] sm:$0xff]  ;;  %v9766_v21 = vld [vmem:[#allocation29_spill] sm:$0xff] }
 0x23b   : > { %v5186_v39 = vpop.eup %5185  ;;  %v3688_v13 = vadd.f32 %v7447_v47, %v3394_v24  ;;  %v3396_v48 = vmul.f32 %v5184_v40, %v7392_v55  ;;  %5197 = vpow2.f32 %v2227_v58  ;;  %v7499_v50 = vadd.f32 %v979_v3, %v7074_v25  ;;  %4654 = vmatmul.msk.f32.gmra.mxu0 %vm475_vm1, %v9762_v17  ;;  %4687 = vmatmul.msk.f32.gmra.mxu1 %vm475_vm1, %v9762_v17  ;;  %v9763_v55 = vld [vmem:[#allocation53_spill] sm:$0xff]  ;;  %v9764_v47 = vld [vmem:[#allocation67_spill] sm:$0xff] }
 0x23c   : > { %v5188_v32 = vpop.eup %5187  ;;  %v7496_v36 = vadd.f32 %v3724_v57, %v3395_v45  ;;  %5199 = vpow2.f32 %v2229_v28  ;;  %v7507_v22 = vmul.f32 %v9764_v47, %v9763_v55  ;;  %v3651_v8 = vadd.f32 %v3650_v14, %v3393_v11 }
 0x23d   : > { %v5190_v19 = vpop.eup %5189  ;;  %v7509_v16 = vadd.f32 %v3761_v0, %v3396_v48  ;;  %v3404_v57 = vmul.f32 %v5188_v32, %v7401_v34  ;;  %5201 = vpow2.f32 %v2243_v41  ;;  %4607 = vmatmul.msk.f32.gmra.mxu2 %vm475_vm1, %v9766_v21  ;;  %4640 = vmatmul.msk.f32.gmra.mxu3 %vm475_vm1, %v9766_v21  ;;  %v3403_v52 = vmul.f32 %v5186_v39, %v7396_v7 }
 0x23e   : > { %9765 = vst [vmem:[#allocation60_spill] sm:$0xff] %v7507_v22  ;;  %v5192_v28 = vpop.eup %5191  ;;  %v2765_v58 = vadd.f32 1.0, %v5190_v19  ;;  %5203 = vpow2.f32 %v2245_v5  ;;  %v1825_v3 = vsub.f32 0.0, %v7494_v1  ;;  %v7521_v34 = vadd.f32 %v643_v56, %v6830_v49 }
 0x23f   : > { %v5194_v62 = vpop.eup %5193  ;;  %v7517_v12 = vadd.f32 %v3688_v13, %v3404_v57  ;;  %v2766_v31 = vadd.f32 1.0, %v5192_v28  ;;  %v1826_v24 = vsub.f32 0.0, %v7499_v50  ;;  %v7525_v11 = vadd.f32 %v756_v54, %v6844_v53  ;;  %v869_v7 = vpop.f32.mrf.mxu2 }
 0x240   : > { %v5196_v51 = vpop.eup %5195  ;;  %5205 = vrcp.f32 %v2765_v58  ;;  %v2773_v0 = vadd.f32 1.0, %v5194_v62  ;;  %v982_v41 = vpop.f32.mrf.mxu3  ;;  %v1833_v5 = vsub.f32 0.0, %v7521_v34  ;;  %v7529_v39 = vadd.f32 %v869_v7, %v7071_v15 }
 0x241   : > { %v5198_v40 = vpop.eup %5197  ;;  %5207 = vrcp.f32 %v2766_v31  ;;  %v2774_v45 = vadd.f32 1.0, %v5196_v51  ;;  %v646_v56 = vpop.f32.mrf.mxu0  ;;  %v1834_v14 = vsub.f32 0.0, %v7525_v11  ;;  %v7533_v54 = vadd.f32 %v982_v41, %v7074_v25  ;;  %v9767_v51 = vld [vmem:[#allocation43_spill] sm:$0xff] }
 0x242   : > { %v759_v13 = vpop.f32.mrf.mxu1  ;;  %v5200_v48 = vpop.eup %5199  ;;  %5209 = vrcp.f32 %v2773_v0  ;;  %v2775_v32 = vadd.f32 1.0, %v5198_v40  ;;  %v3652_v55 = vadd.f32 %v3651_v8, %v3403_v52  ;;  %v1835_v57 = vsub.f32 0.0, %v7529_v39  ;;  %v9768_v52 = vld [vmem:[#allocation30_spill] sm:$0xff] }
 0x243   : > { %v5202_v19 = vpop.eup %5201  ;;  %5211 = vrcp.f32 %v2774_v45  ;;  %v2776_v47 = vadd.f32 1.0, %v5200_v48  ;;  %v2247_v62 = vmul.f32 1.442695, %v1825_v3  ;;  %v1836_v31 = vsub.f32 0.0, %v7533_v54  ;;  %4655 = vmatmul.msk.f32.gmra.mxu0 %vm475_vm1, %v9767_v51  ;;  %4688 = vmatmul.msk.f32.gmra.mxu1 %vm475_vm1, %v9767_v51 }
 0x244   : > { %v5204_v28 = vpop.eup %5203  ;;  %5213 = vrcp.f32 %v2775_v32  ;;  %v2783_v58 = vadd.f32 1.0, %v5202_v19  ;;  %v2249_v7 = vmul.f32 1.442695, %v1826_v24  ;;  %v7542_v8 = vadd.f32 %v646_v56, %v6830_v49 }
 0x245   : > { %5215 = vrcp.f32 %v2776_v47  ;;  %v2784_v0 = vadd.f32 1.0, %v5204_v28  ;;  %4608 = vmatmul.msk.f32.gmra.mxu2 %vm475_vm1, %v9768_v52  ;;  %4641 = vmatmul.msk.f32.gmra.mxu3 %vm475_vm1, %v9768_v52  ;;  %v2263_v41 = vmul.f32 1.442695, %v1833_v5  ;;  %v2265_v40 = vmul.f32 1.442695, %v1834_v14 }
 0x246   : > { %v5206_v3 = vpop.eup %5205  ;;  %5217 = vrcp.f32 %v2783_v58  ;;  %v7549_v45 = vadd.f32 %v759_v13, %v6844_v53  ;;  %v2267_v24 = vmul.f32 1.442695, %v1835_v57  ;;  %v1843_v56 = vsub.f32 0.0, %v7542_v8 }
 0x247   : > { %v5208_v48 = vpop.eup %5207  ;;  %v3405_v32 = vmul.f32 %v5206_v3, %v7423_v2  ;;  %5219 = vrcp.f32 %v2784_v0  ;;  %v2269_v28 = vmul.f32 1.442695, %v1836_v31  ;;  %v872_v58 = vpop.f32.mrf.mxu2 }
 0x248   : > { %v5210_v19 = vpop.eup %5209  ;;  %v3406_v47 = vmul.f32 %v5208_v48, %v7428_v33  ;;  %5221 = vpow2.f32 %v2247_v62  ;;  %v1844_v52 = vsub.f32 0.0, %v7549_v45  ;;  %v985_v5 = vpop.f32.mrf.mxu3  ;;  %v2283_v2 = vmul.f32 1.442695, %v1843_v56  ;;  %v9775_v56 = vld [vmem:[#allocation69_spill] sm:$0xff] }
 0x249   : > { %v5212_v14 = vpop.eup %5211  ;;  %v3726_v13 = vadd.f32 %v7496_v36, %v3405_v32  ;;  %v3413_v21 = vmul.f32 %v5210_v19, %v7450_v46  ;;  %5223 = vpow2.f32 %v2249_v7  ;;  %v649_v0 = vpop.f32.mrf.mxu0  ;;  %v7561_v36 = vadd.f32 %v872_v58, %v7071_v15 }
 0x24a   : > { %v762_v57 = vpop.f32.mrf.mxu1  ;;  %v5214_v3 = vpop.eup %5213  ;;  %v3763_v51 = vadd.f32 %v7509_v16, %v3406_v47  ;;  %v3414_v33 = vmul.f32 %v5212_v14, %v7454_v27  ;;  %5225 = vpow2.f32 %v2263_v41  ;;  %v2285_v62 = vmul.f32 1.442695, %v1844_v52  ;;  %v9769_v27 = vld [vmem:[#allocation44_spill] sm:$0xff] }
 0x24b   : > { %v5216_v31 = vpop.eup %5215  ;;  %v3653_v48 = vadd.f32 %v3652_v55, %v3413_v21  ;;  %v3415_v22 = vmul.f32 %v5214_v3, %v7459_v6  ;;  %5227 = vpow2.f32 %v2265_v40  ;;  %v7566_v16 = vadd.f32 %v985_v5, %v7074_v25  ;;  %4656 = vmatmul.msk.f32.gmra.mxu0 %vm475_vm1, %v9769_v27  ;;  %4689 = vmatmul.msk.f32.gmra.mxu1 %vm475_vm1, %v9769_v27  ;;  %v9770_v21 = vld [vmem:[#allocation54_spill] sm:$0xff]  ;;  %v9771_v55 = vld [vmem:[#allocation68_spill] sm:$0xff] }
 0x24c   : > { %v5218_v46 = vpop.eup %5217  ;;  %v3690_v7 = vadd.f32 %v7517_v12, %v3414_v33  ;;  %v3416_v32 = vmul.f32 %v5216_v31, %v7463_v23  ;;  %5229 = vpow2.f32 %v2267_v24  ;;  %v7574_v52 = vmul.f32 %v9771_v55, %v9770_v21  ;;  %v9773_v23 = vld [vmem:[#allocation31_spill] sm:$0xff] }
 0x24d   : > { %v5220_v6 = vpop.eup %5219  ;;  %v7576_v41 = vadd.f32 %v3726_v13, %v3415_v22  ;;  %v3423_v12 = vmul.f32 %v5218_v46, %v7468_v44  ;;  %5231 = vpow2.f32 %v2269_v28  ;;  %4609 = vmatmul.msk.f32.gmra.mxu2 %vm475_vm1, %v9773_v23  ;;  %4642 = vmatmul.msk.f32.gmra.mxu3 %vm475_vm1, %v9773_v23  ;;  %v9774_v24 = vld [vmem:[#allocation55_spill] sm:$0xff]  ;;  %v1845_v28 = vsub.f32 0.0, %v7561_v36 }
 0x24e   : > { %9772 = vst [vmem:[#allocation49_spill] sm:$0xff] %v7574_v52  ;;  %v5222_v40 = vpop.eup %5221  ;;  %v7585_v19 = vmul.f32 %v9775_v56, %v9774_v24  ;;  %v7587_v47 = vadd.f32 %v3763_v51, %v3416_v32  ;;  %v3424_v58 = vmul.f32 %v5220_v6, %v7475_v59  ;;  %5233 = vpow2.f32 %v2283_v2 }
 0x24f   : > { %v5224_v22 = vpop.eup %5223  ;;  %v7590_v5 = vadd.f32 %v3653_v48, %v3423_v12  ;;  %v2785_v44 = vadd.f32 1.0, %v5222_v40  ;;  %5235 = vpow2.f32 %v2285_v62  ;;  %v1846_v33 = vsub.f32 0.0, %v7566_v16  ;;  %v875_v51 = vpop.f32.mrf.mxu2 }
 0x250   : > { %9776 = vst [vmem:[#allocation64_spill] sm:$0xff] %v7585_v19  ;;  %v5226_v14 = vpop.eup %5225  ;;  %v7593_v13 = vadd.f32 %v3690_v7, %v3424_v58  ;;  %v2786_v3 = vadd.f32 1.0, %v5224_v22  ;;  %v7597_v31 = vadd.f32 %v649_v0, %v6830_v49  ;;  %v988_v46 = vpop.f32.mrf.mxu3  ;;  %v7600_v48 = vadd.f32 %v762_v57, %v6844_v53  ;;  %v9777_v58 = vld [vmem:[#allocation58_spill] sm:$0xff] }
 0x251   : > { %v5228_v59 = vpop.eup %5227  ;;  %5237 = vrcp.f32 %v2785_v44  ;;  %v2793_v2 = vadd.f32 1.0, %v5226_v14  ;;  %v7603_v62 = vadd.f32 %v875_v51, %v7071_v15  ;;  %v652_v32 = vpop.f32.mrf.mxu0  ;;  %v7607_v0 = vadd.f32 %v988_v46, %v7074_v25 }
 0x252   : > { %v765_v7 = vpop.f32.mrf.mxu1  ;;  %v5230_v6 = vpop.eup %5229  ;;  %5239 = vrcp.f32 %v2786_v3  ;;  %v2794_v21 = vadd.f32 1.0, %v5228_v59  ;;  %v1853_v55 = vsub.f32 0.0, %v7597_v31  ;;  %v1854_v24 = vsub.f32 0.0, %v7600_v48  ;;  %v9779_v3 = vld [vmem:[#allocation45_spill] sm:$0xff] }
 0x253   : > { %v5232_v12 = vpop.eup %5231  ;;  %5241 = vrcp.f32 %v2793_v2  ;;  %v2795_v40 = vadd.f32 1.0, %v5230_v6  ;;  %v1855_v57 = vsub.f32 0.0, %v7603_v62  ;;  %v7613_v22 = vmul.f32 %v7163_v4, %v9777_v58  ;;  %4657 = vmatmul.msk.f32.gmra.mxu0 %vm475_vm1, %v9779_v3  ;;  %4690 = vmatmul.msk.f32.gmra.mxu1 %vm475_vm1, %v9779_v3  ;;  %v9780_v6 = vld [vmem:[#allocation32_spill] sm:$0xff] }
 0x254   : > { %v5234_v56 = vpop.eup %5233  ;;  %5243 = vrcp.f32 %v2794_v21  ;;  %v2796_v44 = vadd.f32 1.0, %v5232_v12  ;;  %v1856_v14 = vsub.f32 0.0, %v7607_v0  ;;  %v2287_v59 = vmul.f32 1.442695, %v1845_v28 }
 0x255   : > { %9778 = vst [vmem:[#allocation50_spill] sm:$0xff] %v7613_v22  ;;  %v5236_v51 = vpop.eup %5235  ;;  %5245 = vrcp.f32 %v2795_v40  ;;  %v2803_v46 = vadd.f32 1.0, %v5234_v56  ;;  %v2289_v2 = vmul.f32 1.442695, %v1846_v33  ;;  %4610 = vmatmul.msk.f32.gmra.mxu2 %vm475_vm1, %v9780_v6  ;;  %4643 = vmatmul.msk.f32.gmra.mxu3 %vm475_vm1, %v9780_v6  ;;  %v2303_v21 = vmul.f32 1.442695, %v1853_v55 }
 0x256   : > { %5247 = vrcp.f32 %v2796_v44  ;;  %v2804_v4 = vadd.f32 1.0, %v5236_v51  ;;  %v7625_v12 = vadd.f32 %v652_v32, %v6830_v49  ;;  %v2305_v23 = vmul.f32 1.442695, %v1854_v24 }
 0x257   : > { %v5238_v58 = vpop.eup %5237  ;;  %5249 = vrcp.f32 %v2803_v46  ;;  %v2307_v3 = vmul.f32 1.442695, %v1855_v57  ;;  %v7628_v40 = vadd.f32 %v765_v7, %v6844_v53  ;;  %v2309_v56 = vmul.f32 1.442695, %v1856_v14  ;;  %v878_v44 = vpop.f32.mrf.mxu2 }
 0x258   : > { %v5240_v28 = vpop.eup %5239  ;;  %v3425_v33 = vmul.f32 %v5238_v58, %v7494_v1  ;;  %5251 = vrcp.f32 %v2804_v4  ;;  %v1863_v6 = vsub.f32 0.0, %v7625_v12  ;;  %v991_v51 = vpop.f32.mrf.mxu3  ;;  %v7635_v24 = vadd.f32 %v878_v44, %v7071_v15 }
 0x259   : > { %v5242_v55 = vpop.eup %5241  ;;  %v3426_v32 = vmul.f32 %v5240_v28, %v7499_v50  ;;  %5253 = vpow2.f32 %v2287_v59  ;;  %v1864_v46 = vsub.f32 0.0, %v7628_v40  ;;  %v655_v7 = vpop.f32.mrf.mxu0 }
 0x25a   : > { %v768_v57 = vpop.f32.mrf.mxu1  ;;  %v5244_v27 = vpop.eup %5243  ;;  %v3728_v1 = vadd.f32 %v7576_v41, %v3425_v33  ;;  %v3433_v14 = vmul.f32 %v5242_v55, %v7521_v34  ;;  %5255 = vpow2.f32 %v2289_v2  ;;  %v2323_v4 = vmul.f32 1.442695, %v1863_v6  ;;  %v9781_v41 = vld [vmem:[#allocation46_spill] sm:$0xff] }
 0x25b   : > { %v5246_v58 = vpop.eup %5245  ;;  %v3765_v22 = vadd.f32 %v7587_v47, %v3426_v32  ;;  %v3434_v50 = vmul.f32 %v5244_v27, %v7525_v11  ;;  %5257 = vpow2.f32 %v2303_v21  ;;  %v2325_v59 = vmul.f32 1.442695, %v1864_v46  ;;  %4658 = vmatmul.msk.f32.gmra.mxu0 %vm475_vm1, %v9781_v41  ;;  %4691 = vmatmul.msk.f32.gmra.mxu1 %vm475_vm1, %v9781_v41 }
 0x25c   : > { %v5248_v28 = vpop.eup %5247  ;;  %v3655_v44 = vadd.f32 %v7590_v5, %v3433_v14  ;;  %v3435_v19 = vmul.f32 %v5246_v58, %v7529_v39  ;;  %5259 = vpow2.f32 %v2305_v23  ;;  %v1865_v52 = vsub.f32 0.0, %v7635_v24  ;;  %v9782_v5 = vld [vmem:[#allocation33_spill] sm:$0xff] }
 0x25d   : > { %v5250_v34 = vpop.eup %5249  ;;  %v3692_v47 = vadd.f32 %v7593_v13, %v3434_v50  ;;  %v3436_v11 = vmul.f32 %v5248_v28, %v7533_v54  ;;  %5261 = vpow2.f32 %v2307_v3  ;;  %v7651_v27 = vadd.f32 %v991_v51, %v7074_v25  ;;  %4611 = vmatmul.msk.f32.gmra.mxu2 %vm475_vm1, %v9782_v5  ;;  %4644 = vmatmul.msk.f32.gmra.mxu3 %vm475_vm1, %v9782_v5 }
 0x25e   : > { %v5252_v39 = vpop.eup %5251  ;;  %v7657_v23 = vadd.f32 %v3728_v1, %v3435_v19  ;;  %v3443_v2 = vmul.f32 %v5250_v34, %v7542_v8  ;;  %5263 = vpow2.f32 %v2309_v56  ;;  %v2327_v6 = vmul.f32 1.442695, %v1865_v52 }
 0x25f   : > { %v5254_v13 = vpop.eup %5253  ;;  %v7660_v21 = vadd.f32 %v3765_v22, %v3436_v11  ;;  %v3444_v54 = vmul.f32 %v5252_v39, %v7549_v45  ;;  %5265 = vpow2.f32 %v2323_v4  ;;  %v1866_v3 = vsub.f32 0.0, %v7651_v27  ;;  %v881_v32 = vpop.f32.mrf.mxu2 }
 0x260   : > { %v5256_v33 = vpop.eup %5255  ;;  %v7664_v51 = vadd.f32 %v3655_v44, %v3443_v2  ;;  %v2805_v55 = vadd.f32 1.0, %v5254_v13  ;;  %5267 = vpow2.f32 %v2325_v59  ;;  %v7667_v19 = vadd.f32 %v655_v7, %v6830_v49  ;;  %v994_v8 = vpop.f32.mrf.mxu3  ;;  %v9783_v2 = vld [vmem:[#allocation47_spill] sm:$0xff] }
 0x261   : > { %v5258_v56 = vpop.eup %5257  ;;  %v7669_v52 = vadd.f32 %v3692_v47, %v3444_v54  ;;  %v2806_v22 = vadd.f32 1.0, %v5256_v33  ;;  %5269 = vpow2.f32 %v2327_v6  ;;  %v2329_v46 = vmul.f32 1.442695, %v1866_v3  ;;  %v658_v45 = vpop.f32.mrf.mxu0 }
 0x262   : > { %v771_v1 = vpop.f32.mrf.mxu1  ;;  %v5260_v14 = vpop.eup %5259  ;;  %5271 = vrcp.f32 %v2805_v55  ;;  %v2813_v4 = vadd.f32 1.0, %v5258_v56  ;;  %v1873_v58 = vsub.f32 0.0, %v7667_v19  ;;  %v7673_v50 = vadd.f32 %v768_v57, %v6844_v53 }
 0x263   : > { %v5262_v7 = vpop.eup %5261  ;;  %5273 = vrcp.f32 %v2806_v22  ;;  %v2814_v59 = vadd.f32 1.0, %v5260_v14  ;;  %v7676_v28 = vadd.f32 %v881_v32, %v7071_v15  ;;  %v7679_v44 = vadd.f32 %v994_v8, %v7074_v25  ;;  %4659 = vmatmul.msk.f32.gmra.mxu0 %vm475_vm1, %v9783_v2  ;;  %4692 = vmatmul.msk.f32.gmra.mxu1 %vm475_vm1, %v9783_v2 }
 0x264   : > { %v5264_v34 = vpop.eup %5263  ;;  %5275 = vrcp.f32 %v2813_v4  ;;  %v2815_v47 = vadd.f32 1.0, %v5262_v7  ;;  %v2343_v11 = vmul.f32 1.442695, %v1873_v58  ;;  %v1874_v39 = vsub.f32 0.0, %v7673_v50 }
 0x265   : > { %v5266_v57 = vpop.eup %5265  ;;  %5277 = vrcp.f32 %v2814_v59  ;;  %v2816_v6 = vadd.f32 1.0, %v5264_v34  ;;  %v1875_v13 = vsub.f32 0.0, %v7676_v28  ;;  %v1876_v54 = vsub.f32 0.0, %v7679_v44  ;;  %4712 = vmatmul.msk.f32.vlgmr.msra.gmra.mxu2 %vm475_vm1, %v6745_v29  ;;  %4745 = vmatmul.msk.f32.vlgmr.msra.gmra.mxu3 %vm475_vm1, %v6745_v29 }
 0x266   : > { %v5268_v3 = vpop.eup %5267  ;;  %5279 = vrcp.f32 %v2815_v47  ;;  %v2823_v33 = vadd.f32 1.0, %v5266_v57  ;;  %v2345_v55 = vmul.f32 1.442695, %v1874_v39  ;;  %v7693_v32 = vadd.f32 %v658_v45, %v6830_v49 }
 0x267   : > { %v5270_v8 = vpop.eup %5269  ;;  %5281 = vrcp.f32 %v2816_v6  ;;  %v2824_v56 = vadd.f32 1.0, %v5268_v3  ;;  %v2347_v22 = vmul.f32 1.442695, %v1875_v13  ;;  %v2349_v14 = vmul.f32 1.442695, %v1876_v54  ;;  %v884_v34 = vpop.f32.mrf.mxu2 }
 0x268   : > { %v5272_v4 = vpop.eup %5271  ;;  %5283 = vrcp.f32 %v2823_v33  ;;  %v2825_v58 = vadd.f32 1.0, %v5270_v8  ;;  %v1883_v7 = vsub.f32 0.0, %v7693_v32  ;;  %v7697_v59 = vadd.f32 %v771_v1, %v6844_v53  ;;  %v997_v47 = vpop.f32.mrf.mxu3 }
 0x269   : > { %v5274_v57 = vpop.eup %5273  ;;  %v3445_v39 = vmul.f32 %v5272_v4, %v7561_v36  ;;  %5285 = vrcp.f32 %v2824_v56  ;;  %v7701_v45 = vadd.f32 %v884_v34, %v7071_v15  ;;  %v7704_v6 = vadd.f32 %v997_v47, %v7074_v25  ;;  %v661_v13 = vpop.f32.mrf.mxu0 }
 0x26a   : > { %v774_v54 = vpop.f32.mrf.mxu1  ;;  %v5276_v3 = vpop.eup %5275  ;;  %v3446_v33 = vmul.f32 %v5274_v57, %v7566_v16  ;;  %5287 = vrcp.f32 %v2825_v58  ;;  %v2363_v1 = vmul.f32 1.442695, %v1883_v7  ;;  %v1884_v8 = vsub.f32 0.0, %v7697_v59  ;;  %v9784_v16 = vld [vmem:[#allocation52_spill] sm:$0xff] }
 0x26b   : > { %v5278_v29 = vpop.eup %5277  ;;  %v3730_v5 = vadd.f32 %v7657_v23, %v3445_v39  ;;  %v3453_v36 = vmul.f32 %v5276_v3, %v7597_v31  ;;  %5289 = vpow2.f32 %v2329_v46  ;;  %v1885_v56 = vsub.f32 0.0, %v7701_v45  ;;  %4660 = vmatmul.msk.f32.gmra.mxu0 %vm475_vm1, %v9784_v16  ;;  %4693 = vmatmul.msk.f32.gmra.mxu1 %vm475_vm1, %v9784_v16 }
 0x26c   : > { %v5280_v4 = vpop.eup %5279  ;;  %v3767_v34 = vadd.f32 %v7660_v21, %v3446_v33  ;;  %v3454_v47 = vmul.f32 %v5278_v29, %v7600_v48  ;;  %5291 = vpow2.f32 %v2343_v11  ;;  %v2365_v2 = vmul.f32 1.442695, %v1884_v8 }
 0x26d   : > { %v5282_v58 = vpop.eup %5281  ;;  %v3657_v23 = vadd.f32 %v7664_v51, %v3453_v36  ;;  %v3455_v31 = vmul.f32 %v5280_v4, %v7603_v62  ;;  %5293 = vpow2.f32 %v2345_v55  ;;  %v2367_v46 = vmul.f32 1.442695, %v1885_v56  ;;  %4713 = vmatmul.msk.f32.gmra.mxu2 %vm475_vm1, %v6755_v30  ;;  %4746 = vmatmul.msk.f32.gmra.mxu3 %vm475_vm1, %v6755_v30 }
 0x26e   : > { %v5284_v29 = vpop.eup %5283  ;;  %v3694_v48 = vadd.f32 %v7669_v52, %v3454_v47  ;;  %v3456_v21 = vmul.f32 %v5282_v58, %v7607_v0  ;;  %5295 = vpow2.f32 %v2347_v22  ;;  %v1886_v11 = vsub.f32 0.0, %v7704_v6 }
 0x26f   : > { %v5286_v7 = vpop.eup %5285  ;;  %v3731_v51 = vadd.f32 %v3730_v5, %v3455_v31  ;;  %v3463_v62 = vmul.f32 %v5284_v29, %v7625_v12  ;;  %5297 = vpow2.f32 %v2349_v14  ;;  %v7728_v55 = vadd.f32 %v661_v13, %v6830_v49  ;;  %v887_v33 = vpop.f32.mrf.mxu2  ;;  %v9785_v29 = vld [vmem:[#allocation56_spill] sm:$0xff] }
 0x270   : > { %v5288_v57 = vpop.eup %5287  ;;  %v7730_v39 = vadd.f32 %v3767_v34, %v3456_v21  ;;  %v3464_v3 = vmul.f32 %v5286_v7, %v7628_v40  ;;  %5299 = vpow2.f32 %v2363_v1  ;;  %v2369_v52 = vmul.f32 1.442695, %v1886_v11  ;;  %v1000_v0 = vpop.f32.mrf.mxu3 }
 0x271   : > { %v5290_v22 = vpop.eup %5289  ;;  %v7733_v8 = vadd.f32 %v3657_v23, %v3463_v62  ;;  %v3465_v5 = vmul.f32 %v5288_v57, %v7635_v24  ;;  %5301 = vpow2.f32 %v2365_v2  ;;  %v1893_v12 = vsub.f32 0.0, %v7728_v55  ;;  %v664_v14 = vpop.f32.mrf.mxu0 }
 0x272   : > { %v777_v13 = vpop.f32.mrf.mxu1  ;;  %v5292_v36 = vpop.eup %5291  ;;  %v7737_v56 = vadd.f32 %v3694_v48, %v3464_v3  ;;  %v2826_v4 = vadd.f32 1.0, %v5290_v22  ;;  %5303 = vpow2.f32 %v2367_v46  ;;  %v7740_v40 = vadd.f32 %v774_v54, %v6844_v53 }
 0x273   : > { %v5294_v1 = vpop.eup %5293  ;;  %v7742_v34 = vadd.f32 %v3731_v51, %v3465_v5  ;;  %v2833_v47 = vadd.f32 1.0, %v5292_v36  ;;  %5305 = vpow2.f32 %v2369_v52  ;;  %v2383_v58 = vmul.f32 1.442695, %v1893_v12  ;;  %4661 = vmatmul.msk.f32.gmra.mxu0 %vm475_vm1, %v9785_v29  ;;  %4694 = vmatmul.msk.f32.gmra.mxu1 %vm475_vm1, %v9785_v29 }
 0x274   : > { %v5296_v24 = vpop.eup %5295  ;;  %5307 = vrcp.f32 %v2826_v4  ;;  %v2834_v2 = vadd.f32 1.0, %v5294_v1  ;;  %v1894_v23 = vsub.f32 0.0, %v7740_v40  ;;  %v7746_v31 = vadd.f32 %v887_v33, %v7071_v15 }
 0x275   : > { %v5298_v54 = vpop.eup %5297  ;;  %5309 = vrcp.f32 %v2833_v47  ;;  %v2835_v46 = vadd.f32 1.0, %v5296_v24  ;;  %v7753_v48 = vadd.f32 %v1000_v0, %v7074_v25  ;;  %v7756_v21 = vadd.f32 %v664_v14, %v6830_v49  ;;  %4714 = vmatmul.msk.f32.gmra.mxu2 %vm475_vm1, %v9738_v37  ;;  %4747 = vmatmul.msk.f32.gmra.mxu3 %vm475_vm1, %v9738_v37 }
 0x276   : > { %v5300_v11 = vpop.eup %5299  ;;  %5311 = vrcp.f32 %v2834_v2  ;;  %v2836_v7 = vadd.f32 1.0, %v5298_v54  ;;  %v2385_v51 = vmul.f32 1.442695, %v1894_v23  ;;  %v1895_v62 = vsub.f32 0.0, %v7746_v31 }
 0x277   : > { %v5302_v57 = vpop.eup %5301  ;;  %5313 = vrcp.f32 %v2835_v46  ;;  %v2843_v3 = vadd.f32 1.0, %v5300_v11  ;;  %v1896_v52 = vsub.f32 0.0, %v7753_v48  ;;  %v1903_v49 = vsub.f32 0.0, %v7756_v21  ;;  %v890_v12 = vpop.f32.mrf.mxu2 }
 0x278   : > { %v5304_v33 = vpop.eup %5303  ;;  %5315 = vrcp.f32 %v2836_v7  ;;  %v2844_v0 = vadd.f32 1.0, %v5302_v57  ;;  %v2387_v22 = vmul.f32 1.442695, %v1895_v62  ;;  %v7766_v5 = vadd.f32 %v777_v13, %v6844_v53  ;;  %v1003_v14 = vpop.f32.mrf.mxu3  ;;  %v6233_v62 = vld [vmem:[#allocation8] sm:$0xff] }
 0x279   : > { %v5306_v36 = vpop.eup %5305  ;;  %5317 = vrcp.f32 %v2843_v3  ;;  %v2845_v4 = vadd.f32 1.0, %v5304_v33  ;;  %v2389_v1 = vmul.f32 1.442695, %v1896_v52  ;;  %v2403_v47 = vmul.f32 1.442695, %v1903_v49  ;;  %v1062_v24 = vpop.f32.mrf.mxu0 }
 0x27a   : > { %v1175_v2 = vpop.f32.mrf.mxu1  ;;  %v5308_v23 = vpop.eup %5307  ;;  %5319 = vrcp.f32 %v2844_v0  ;;  %v2846_v54 = vadd.f32 1.0, %v5306_v36  ;;  %v1904_v46 = vsub.f32 0.0, %v7766_v5  ;;  %v7770_v11 = vadd.f32 %v890_v12, %v7071_v15  ;;  %v9786_v0 = vld [vmem:[#allocation19_spill] sm:$0xff] }
 0x27b   : > { %v5310_v7 = vpop.eup %5309  ;;  %v3466_v53 = vmul.f32 %v5308_v23, %v7651_v27  ;;  %5321 = vrcp.f32 %v2845_v4  ;;  %v7774_v13 = vadd.f32 %v1003_v14, %v7074_v25  ;;  %v7776_v57 = vperm.slane %v6233_v62, 4  ;;  %4662 = vmatmul.msk.f32.gmra.mxu0 %vm475_vm1, %v9786_v0  ;;  %4695 = vmatmul.msk.f32.gmra.mxu1 %vm475_vm1, %v9786_v0 }
 0x27c   : > { %v5312_v3 = vpop.eup %5311  ;;  %v3473_v52 = vmul.f32 %v5310_v7, %v7667_v19  ;;  %5323 = vrcp.f32 %v2846_v54  ;;  %v2405_v49 = vmul.f32 1.442695, %v1904_v46  ;;  %v1905_v33 = vsub.f32 0.0, %v7770_v11 }
 0x27d   : > { %v5314_v27 = vpop.eup %5313  ;;  %v3769_v12 = vadd.f32 %v7730_v39, %v3466_v53  ;;  %v3474_v14 = vmul.f32 %v5312_v3, %v7673_v50  ;;  %5325 = vpow2.f32 %v2383_v58  ;;  %v1906_v36 = vsub.f32 0.0, %v7774_v13  ;;  %4715 = vmatmul.msk.f32.gmra.mxu2 %vm475_vm1, %v9741_v26  ;;  %4748 = vmatmul.msk.f32.gmra.mxu3 %vm475_vm1, %v9741_v26 }
 0x27e   : > { %v5316_v19 = vpop.eup %5315  ;;  %v3659_v4 = vadd.f32 %v7733_v8, %v3473_v52  ;;  %v3475_v23 = vmul.f32 %v5314_v27, %v7676_v28  ;;  %5327 = vpow2.f32 %v2385_v51  ;;  %v2407_v54 = vmul.f32 1.442695, %v1905_v33 }
 0x27f   : > { %v5318_v46 = vpop.eup %5317  ;;  %v3696_v39 = vadd.f32 %v7737_v56, %v3474_v14  ;;  %v3476_v50 = vmul.f32 %v5316_v19, %v7679_v44  ;;  %5329 = vpow2.f32 %v2387_v22  ;;  %v2409_v58 = vmul.f32 1.442695, %v1906_v36  ;;  %v893_v8 = vpop.f32.mrf.mxu2 }
 0x280   : > { %v5320_v7 = vpop.eup %5319  ;;  %v3733_v53 = vadd.f32 %v7742_v34, %v3475_v23  ;;  %v3483_v3 = vmul.f32 %v5318_v46, %v7693_v32  ;;  %5331 = vpow2.f32 %v2389_v1  ;;  %v7798_v26 = vadd.f32 %v1062_v24, %v7776_v57  ;;  %v1006_v28 = vpop.f32.mrf.mxu3 }
 0x281   : > { %v5322_v51 = vpop.eup %5321  ;;  %v3770_v52 = vadd.f32 %v3769_v12, %v3476_v50  ;;  %v3484_v33 = vmul.f32 %v5320_v7, %v7697_v59  ;;  %5333 = vpow2.f32 %v2403_v47  ;;  %v7801_v56 = vperm.slane %v6233_v62, 5  ;;  %v1065_v44 = vpop.f32.mrf.mxu0 }
 0x282   : > { %v1178_v22 = vpop.f32.mrf.mxu1  ;;  %v5324_v27 = vpop.eup %5323  ;;  %v7803_v14 = vadd.f32 %v3659_v4, %v3483_v3  ;;  %v3485_v32 = vmul.f32 %v5322_v51, %v7701_v45  ;;  %5335 = vpow2.f32 %v2405_v49  ;;  %v1727_v34 = vsub.f32 0.0, %v7798_v26  ;;  %v9787_v4 = vld [vmem:[#allocation20_spill] sm:$0xff] }
 0x283   : > { %v5326_v1 = vpop.eup %5325  ;;  %v7807_v24 = vadd.f32 %v3696_v39, %v3484_v33  ;;  %v3486_v12 = vmul.f32 %v5324_v27, %v7704_v6  ;;  %5337 = vpow2.f32 %v2407_v54  ;;  %v7811_v59 = vadd.f32 %v1175_v2, %v7801_v56  ;;  %4663 = vmatmul.msk.f32.gmra.mxu0 %vm475_vm1, %v9787_v4  ;;  %4696 = vmatmul.msk.f32.gmra.mxu1 %vm475_vm1, %v9787_v4 }
 0x284   : > { %v5328_v47 = vpop.eup %5327  ;;  %v7813_v62 = vadd.f32 %v3733_v53, %v3485_v32  ;;  %v2853_v36 = vadd.f32 1.0, %v5326_v1  ;;  %5339 = vpow2.f32 %v2409_v58  ;;  %v2051_v19 = vmul.f32 1.442695, %v1727_v34 }
 0x285   : > { %v5330_v45 = vpop.eup %5329  ;;  %v7819_v49 = vadd.f32 %v3770_v52, %v3486_v12  ;;  %v2854_v6 = vadd.f32 1.0, %v5328_v47  ;;  %v1728_v23 = vsub.f32 0.0, %v7811_v59  ;;  %v7823_v2 = vadd.f32 %v893_v8, %v7071_v15  ;;  %4716 = vmatmul.msk.f32.gmra.mxu2 %vm475_vm1, %v9748_v20  ;;  %4749 = vmatmul.msk.f32.gmra.mxu3 %vm475_vm1, %v9748_v20 }
 0x286   : > { %v5332_v54 = vpop.eup %5331  ;;  %5341 = vrcp.f32 %v2853_v36  ;;  %v2855_v46 = vadd.f32 1.0, %v5330_v45  ;;  %v7830_v39 = vadd.f32 %v1006_v28, %v7074_v25  ;;  %v7833_v50 = vadd.f32 %v1065_v44, %v7776_v57 }
 0x287   : > { %v5334_v58 = vpop.eup %5333  ;;  %5343 = vrcp.f32 %v2854_v6  ;;  %v2856_v7 = vadd.f32 1.0, %v5332_v54  ;;  %v2053_v53 = vmul.f32 1.442695, %v1728_v23  ;;  %v1915_v3 = vsub.f32 0.0, %v7823_v2  ;;  %v896_v27 = vpop.f32.mrf.mxu2 }
 0x288   : > { %v5336_v8 = vpop.eup %5335  ;;  %5345 = vrcp.f32 %v2855_v46  ;;  %v2863_v51 = vadd.f32 1.0, %v5334_v58  ;;  %v1916_v52 = vsub.f32 0.0, %v7830_v39  ;;  %v1737_v33 = vsub.f32 0.0, %v7833_v50  ;;  %v1009_v32 = vpop.f32.mrf.mxu3 }
 0x289   : > { %v5338_v28 = vpop.eup %5337  ;;  %5347 = vrcp.f32 %v2856_v7  ;;  %v2864_v34 = vadd.f32 1.0, %v5336_v8  ;;  %v2427_v44 = vmul.f32 1.442695, %v1915_v3  ;;  %v7839_v1 = vadd.f32 %v1178_v22, %v7801_v56  ;;  %v1068_v12 = vpop.f32.mrf.mxu0 }
 0x28a   : > { %v1181_v47 = vpop.f32.mrf.mxu1  ;;  %v5340_v36 = vpop.eup %5339  ;;  %5349 = vrcp.f32 %v2863_v51  ;;  %v2865_v45 = vadd.f32 1.0, %v5338_v28  ;;  %v2429_v6 = vmul.f32 1.442695, %v1916_v52  ;;  %v2071_v23 = vmul.f32 1.442695, %v1737_v33  ;;  %v9788_v51 = vld [vmem:[#allocation21_spill] sm:$0xff] }
 0x28b   : > { %5351 = vrcp.f32 %v2864_v34  ;;  %v2866_v54 = vadd.f32 1.0, %v5340_v36  ;;  %v1738_v46 = vsub.f32 0.0, %v7839_v1  ;;  %v7843_v58 = vadd.f32 %v896_v27, %v7071_v15  ;;  %4664 = vmatmul.msk.f32.gmra.mxu0 %vm475_vm1, %v9788_v51  ;;  %4697 = vmatmul.msk.f32.gmra.mxu1 %vm475_vm1, %v9788_v51 }
 0x28c   : > { %v5342_v7 = vpop.eup %5341  ;;  %5353 = vrcp.f32 %v2865_v45  ;;  %v7846_v3 = vadd.f32 %v1009_v32, %v7074_v25  ;;  %v7849_v22 = vadd.f32 %v1068_v12, %v7776_v57  ;;  %v7852_v8 = vadd.f32 %v1181_v47, %v7801_v56 }
 0x28d   : > { %v5344_v52 = vpop.eup %5343  ;;  %v3493_v33 = vmul.f32 %v5342_v7, %v7728_v55  ;;  %5355 = vrcp.f32 %v2866_v54  ;;  %v2073_v27 = vmul.f32 1.442695, %v1738_v46  ;;  %v1925_v32 = vsub.f32 0.0, %v7843_v58  ;;  %4717 = vmatmul.msk.f32.gmra.mxu2 %vm475_vm1, %v9753_v42  ;;  %4750 = vmatmul.msk.f32.gmra.mxu3 %vm475_vm1, %v9753_v42 }
 0x28e   : > { %v5346_v28 = vpop.eup %5345  ;;  %v3494_v34 = vmul.f32 %v5344_v52, %v7740_v40  ;;  %5357 = vpow2.f32 %v2051_v19  ;;  %v1926_v12 = vsub.f32 0.0, %v7846_v3  ;;  %v1747_v47 = vsub.f32 0.0, %v7849_v22 }
 0x28f   : > { %v5348_v36 = vpop.eup %5347  ;;  %v3661_v55 = vadd.f32 %v7803_v14, %v3493_v33  ;;  %v3495_v45 = vmul.f32 %v5346_v28, %v7746_v31  ;;  %5359 = vpow2.f32 %v2053_v53  ;;  %v2447_v54 = vmul.f32 1.442695, %v1925_v32  ;;  %v899_v40 = vpop.f32.mrf.mxu2 }
 0x290   : > { %v5350_v46 = vpop.eup %5349  ;;  %v3698_v7 = vadd.f32 %v7807_v24, %v3494_v34  ;;  %v3496_v42 = vmul.f32 %v5348_v36, %v7753_v48  ;;  %5361 = vpow2.f32 %v2427_v44  ;;  %v2449_v20 = vmul.f32 1.442695, %v1926_v12  ;;  %v1012_v19 = vpop.f32.mrf.mxu3 }
 0x291   : > { %v5352_v52 = vpop.eup %5351  ;;  %v3735_v37 = vadd.f32 %v7813_v62, %v3495_v45  ;;  %v3503_v30 = vmul.f32 %v5350_v46, %v7756_v21  ;;  %5363 = vpow2.f32 %v2429_v6  ;;  %v2091_v14 = vmul.f32 1.442695, %v1747_v47  ;;  %v1071_v33 = vpop.f32.mrf.mxu0 }
 0x292   : > { %v7873_v31 = vpop.f32.mrf.mxu1  ;;  %v5354_v53 = vpop.eup %5353  ;;  %v3772_v32 = vadd.f32 %v7819_v49, %v3496_v42  ;;  %v3504_v24 = vmul.f32 %v5352_v52, %v7766_v5  ;;  %5365 = vpow2.f32 %v2071_v23  ;;  %v1748_v48 = vsub.f32 0.0, %v7852_v8  ;;  %v9789_v49 = vld [vmem:[#allocation70_spill] sm:$0xff] }
 0x293   : > { %v5356_v44 = vpop.eup %5355  ;;  %v3662_v28 = vadd.f32 %v3661_v55, %v3503_v30  ;;  %v3505_v34 = vmul.f32 %v5354_v53, %v7770_v11  ;;  %5367 = vpow2.f32 %v2073_v27  ;;  %v7880_v21 = vadd.f32 %v899_v40, %v7071_v15  ;;  %4665 = vmatmul.msk.f32.gmra.mxu0 %vm475_vm1, %v6663_v10  ;;  %4698 = vmatmul.msk.f32.gmra.mxu1 %vm475_vm1, %v6663_v10 }
 0x294   : > { %v5358_v62 = vpop.eup %5357  ;;  %v3699_v6 = vadd.f32 %v3698_v7, %v3504_v24  ;;  %v3506_v12 = vmul.f32 %v5356_v44, %v7774_v13  ;;  %5369 = vpow2.f32 %v2447_v54  ;;  %v7883_v47 = vmul.f32 1.442695, %v1748_v48 }
 0x295   : > { %v5360_v30 = vpop.eup %5359  ;;  %v3663_v42 = vadd.f32 %v3662_v28, %v7145_v38  ;;  %v7890_v5 = vadd.f32 %v3735_v37, %v3505_v34  ;;  %v2687_v11 = vadd.f32 1.0, %v5358_v62  ;;  %5371 = vpow2.f32 %v2449_v20  ;;  %4718 = vmatmul.msk.f32.gmra.mxu2 %vm475_vm1, %v9755_v18  ;;  %4751 = vmatmul.msk.f32.gmra.mxu3 %vm475_vm1, %v9755_v18 }
 0x296   : > { %v5362_v13 = vpop.eup %5361  ;;  %v3700_v23 = vadd.f32 %v3699_v6, %v9789_v49  ;;  %v7897_v27 = vadd.f32 %v3772_v32, %v3506_v12  ;;  %v2688_v36 = vadd.f32 1.0, %v5360_v30  ;;  %5373 = vpow2.f32 %v2091_v14  ;;  %v9791_v49 = vld [vmem:[#allocation72_spill] sm:$0xff] }
 0x297   : > { %v5364_v55 = vpop.eup %5363  ;;  %v3664_v38 = vadd.f32 %v3663_v42, %v7153_v35  ;;  %5375 = vrcp.f32 %v2687_v11  ;;  %v2875_v37 = vadd.f32 1.0, %v5362_v13  ;;  %v1935_v20 = vsub.f32 0.0, %v7880_v21  ;;  %v9790_v13 = vld [vmem:[#allocation22_spill] sm:$0xff] }
 0x298   : > { %v5366_v45 = vpop.eup %5365  ;;  %v3701_v54 = vadd.f32 %v3700_v23, %v7167_v60  ;;  %5377 = vrcp.f32 %v2688_v36  ;;  %v2876_v46 = vadd.f32 1.0, %v5364_v55  ;;  %v7903_v7 = vadd.f32 %v1012_v19, %v7074_v25  ;;  %v902_v40 = vpop.f32.mrf.mxu2  ;;  %v9792_v36 = vld [vmem:[#allocation41_spill] sm:$0xff] }
 0x299   : > { %v7905_v52 = vpop.f32.mrf.mxu3  ;;  %v5368_v53 = vpop.eup %5367  ;;  %v3665_v14 = vadd.f32 %v3664_v38, %v7175_v9  ;;  %5379 = vrcp.f32 %v2875_v37  ;;  %v2697_v35 = vadd.f32 1.0, %v5366_v45  ;;  %v2467_v32 = vmul.f32 1.442695, %v1935_v20  ;;  %v9793_v55 = vld [vmem:[#allocation73_spill] sm:$0xff] }
 0x29a   : > { %v7908_v24 = vpop.f32.mrf.mxu0  ;;  %v7910_v48 = vpop.f32.mrf.mxu1  ;;  %v3702_v60 = vadd.f32 %v3701_v54, %v7184_v61  ;;  %5381 = vrcp.f32 %v2876_v46  ;;  %v2698_v28 = vadd.f32 1.0, %v5368_v53  ;;  %v1936_v19 = vsub.f32 0.0, %v7903_v7  ;;  %v9794_v54 = vld [vmem:[#allocation74_spill] sm:$0xff] }
 0x29b   : > { %v5370_v44 = vpop.eup %5369  ;;  %v3666_v62 = vadd.f32 %v3665_v14, %v7193_v63  ;;  %5383 = vrcp.f32 %v2697_v35  ;;  %v7916_v9 = vadd.f32 %v1071_v33, %v7776_v57  ;;  %4666 = vmatmul.msk.f32.gmra.mxu0 %vm475_vm1, %v9790_v13  ;;  %4699 = vmatmul.msk.f32.gmra.mxu1 %vm475_vm1, %v9790_v13  ;;  %v7933_v20 = vadd.f32 %v7873_v31, %v7801_v56 }
 0x29c   : > { %v5372_v34 = vpop.eup %5371  ;;  %v2885_v6 = vadd.f32 1.0, %v5370_v44  ;;  %v3703_v30 = vadd.f32 %v3702_v60, %v7197_v43  ;;  %5385 = vrcp.f32 %v2698_v28  ;;  %v2469_v11 = vmul.f32 1.442695, %v1936_v19  ;;  %v9795_v44 = vld [vmem:[#allocation75_spill] sm:$0xff] }
 0x29d   : > { %v5374_v12 = vpop.eup %5373  ;;  %v2886_v42 = vadd.f32 1.0, %v5372_v34  ;;  %v3667_v63 = vadd.f32 %v3666_v62, %v9791_v49  ;;  %v1757_v33 = vsub.f32 0.0, %v7916_v9  ;;  %4719 = vmatmul.msk.f32.gmra.mxu2 %vm475_vm1, %v9792_v36  ;;  %4752 = vmatmul.msk.f32.gmra.mxu3 %vm475_vm1, %v9792_v36  ;;  %v9796_v62 = vld [vmem:[#allocation76_spill] sm:$0xff] }
 0x29e   : > { %v5376_v61 = vpop.eup %5375  ;;  %5387 = vrcp.f32 %v2885_v6  ;;  %v2707_v23 = vadd.f32 1.0, %v5374_v12  ;;  %v3704_v38 = vadd.f32 %v3703_v30, %v9793_v55  ;;  %v7948_v12 = vadd.f32 %v902_v40, %v7071_v15  ;;  %v9799_v55 = vld [vmem:[#allocation79_spill] sm:$0xff] }
 0x29f   : > { %v5378_v43 = vpop.eup %5377  ;;  %v3327_v37 = vmul.f32 %v5376_v61, %v7798_v26  ;;  %5389 = vrcp.f32 %v2886_v42  ;;  %v3668_v46 = vadd.f32 %v3667_v63, %v9794_v54  ;;  %v2111_v14 = vmul.f32 1.442695, %v1757_v33  ;;  %v9797_v42 = vld [vmem:[#allocation77_spill] sm:$0xff]  ;;  %v9798_v33 = vld [vmem:[#allocation78_spill] sm:$0xff] }
 0x2a0   : > { %v5380_v45 = vpop.eup %5379  ;;  %v3328_v53 = vmul.f32 %v5378_v43, %v7811_v59  ;;  %5391 = vrcp.f32 %v2707_v23  ;;  %v3705_v60 = vadd.f32 %v3704_v38, %v9795_v44  ;;  %v1758_v26 = vsub.f32 0.0, %v7933_v20  ;;  %v7941_v19 = vpop.f32.mrf.mxu2 }
 0x2a1   : > { %v5382_v35 = vpop.eup %5381  ;;  %v3515_v28 = vmul.f32 %v5380_v45, %v7823_v2  ;;  %5393 = vpow2.f32 %v7883_v47  ;;  %v7943_v31 = vpop.f32.mrf.mxu3  ;;  %v3669_v6 = vadd.f32 %v3668_v46, %v9796_v62 }
 0x2a2   : > { %v5384_v34 = vpop.eup %5383  ;;  %v3516_v59 = vmul.f32 %v5382_v35, %v7830_v39  ;;  %5395 = vpow2.f32 %v2467_v32  ;;  %v7950_v30 = vpop.f32.mrf.mxu0  ;;  %v3706_v61 = vadd.f32 %v3705_v60, %v9797_v42  ;;  %v2113_v46 = vmul.f32 1.442695, %v1758_v26  ;;  %v9800_v35 = vld [vmem:[#allocation23_spill] sm:$0xff] }
 0x2a3   : > { %v7952_v2 = vpop.f32.mrf.mxu1  ;;  %v5386_v47 = vpop.eup %5385  ;;  %v3737_v49 = vadd.f32 %v7890_v5, %v3515_v28  ;;  %v3337_v63 = vmul.f32 %v5384_v34, %v7833_v50  ;;  %5397 = vpow2.f32 %v2469_v11  ;;  %v3670_v43 = vadd.f32 %v3669_v6, %v9798_v33  ;;  %4667 = vmatmul.msk.f32.gmra.mxu0 %vm475_vm1, %v9800_v35  ;;  %4700 = vmatmul.msk.f32.gmra.mxu1 %vm475_vm1, %v9800_v35  ;;  %v9801_v5 = vld [vmem:[#allocation62_spill] sm:$0xff]  ;;  %v9803_v26 = vld [vmem:[#allocation63_spill] sm:$0xff] }
 0x2a4   : > { %v5388_v23 = vpop.eup %5387  ;;  %v3774_v39 = vadd.f32 %v7897_v27, %v3516_v59  ;;  %v3338_v40 = vmul.f32 %v5386_v47, %v7839_v1  ;;  %5399 = vpow2.f32 %v2111_v14  ;;  %v3707_v38 = vadd.f32 %v3706_v61, %v9799_v55  ;;  %v9804_v47 = vld [vmem:[#allocation61_spill] sm:$0xff] }
 0x2a5   : > { %v5390_v32 = vpop.eup %5389  ;;  %v3793_v45 = vadd.f32 %v3337_v63, %v3327_v37  ;;  %v3525_v54 = vmul.f32 %v5388_v23, %v7843_v58  ;;  %v3671_v11 = vadd.f32 %v3670_v43, %v9801_v5  ;;  %v1945_v14 = vsub.f32 0.0, %v7948_v12  ;;  %4720 = vmatmul.msk.f32.gmra.mxu2 %vm475_vm1, %v9762_v17  ;;  %4753 = vmatmul.msk.f32.gmra.mxu3 %vm475_vm1, %v9762_v17  ;;  %v9802_v37 = vld [vmem:[#allocation48_spill] sm:$0xff]  ;;  %v9805_v43 = vld [vmem:[#allocation59_spill] sm:$0xff] }
 0x2a6   : > { %v5392_v50 = vpop.eup %5391  ;;  %v7967_v27 = vadd.f32 %v3338_v40, %v3328_v53  ;;  %v3526_v1 = vmul.f32 %v5390_v32, %v7846_v3  ;;  %v3708_v44 = vadd.f32 %v3707_v38, %v9802_v37  ;;  %5401 = vpow2.f32 %v2113_v46 }
 0x2a7   : > { %v5394_v58 = vpop.eup %5393  ;;  %v7976_v60 = vadd.f32 %v3737_v49, %v3525_v54  ;;  %v3347_v28 = vmul.f32 %v5392_v50, %v7849_v22  ;;  %v3672_v34 = vadd.f32 %v3671_v11, %v9803_v26  ;;  %v2487_v6 = vmul.f32 1.442695, %v1945_v14  ;;  %v9807_v50 = vld [vmem:[#allocation49_spill] sm:$0xff]  ;;  %v9808_v14 = vld [vmem:[#allocation64_spill] sm:$0xff] }
 0x2a8   : > { %v5396_v53 = vpop.eup %5395  ;;  %v7980_v3 = vadd.f32 %v3774_v39, %v3526_v1  ;;  %v2708_v62 = vadd.f32 1.0, %v5394_v58  ;;  %v3709_v42 = vadd.f32 %v3708_v44, %v9804_v47  ;;  %v7987_v49 = vadd.f32 %v7905_v52, %v7074_v25  ;;  %v7989_v23 = vpop.f32.mrf.mxu2 }
 0x2a9   : > { %v5398_v59 = vpop.eup %5397  ;;  %v7983_v61 = vadd.f32 %v3793_v45, %v3347_v28  ;;  %v2895_v63 = vadd.f32 1.0, %v5396_v53  ;;  %v7991_v22 = vpop.f32.mrf.mxu3  ;;  %v3673_v39 = vadd.f32 %v3672_v34, %v9805_v43  ;;  %v7996_v32 = vadd.f32 %v7908_v24, %v7776_v57  ;;  %v9806_v45 = vld [vmem:[#allocation60_spill] sm:$0xff]  ;;  %v9810_v34 = vld [vmem:[#allocation43_spill] sm:$0xff] }
 0x2aa   : > { %v5400_v33 = vpop.eup %5399  ;;  %5403 = vrcp.f32 %v2708_v62  ;;  %v2896_v40 = vadd.f32 1.0, %v5398_v59  ;;  %v7998_v55 = vpop.f32.mrf.mxu0  ;;  %v3710_v52 = vadd.f32 %v3709_v42, %v9806_v45  ;;  %v1946_v46 = vsub.f32 0.0, %v7987_v49  ;;  %v9809_v28 = vld [vmem:[#allocation24_spill] sm:$0xff]  ;;  %v9811_v62 = vld [vmem:[#allocation50_spill] sm:$0xff] }
 0x2ab   : > { %v8000_v38 = vpop.f32.mrf.mxu1  ;;  %5405 = vrcp.f32 %v2895_v63  ;;  %v2717_v54 = vadd.f32 1.0, %v5400_v33  ;;  %v8005_v5 = vadd.f32 %v3673_v39, %v9807_v50  ;;  %v1767_v11 = vsub.f32 0.0, %v7996_v32  ;;  %4668 = vmatmul.msk.f32.gmra.mxu0 %vm475_vm1, %v9809_v28  ;;  %4701 = vmatmul.msk.f32.gmra.mxu1 %vm475_vm1, %v9809_v28 }
 0x2ac   : > { %5407 = vrcp.f32 %v2896_v40  ;;  %v8010_v24 = vadd.f32 %v7910_v48, %v7801_v56  ;;  %v5402_v1 = vpop.eup %5401  ;;  %v3711_v58 = vadd.f32 %v3710_v52, %v9808_v14  ;;  %v2489_v37 = vmul.f32 1.442695, %v1946_v46 }
 0x2ad   : > { %5409 = vrcp.f32 %v2717_v54  ;;  %v8015_v44 = vadd.f32 %v7941_v19, %v7071_v15  ;;  %v2718_v53 = vadd.f32 1.0, %v5402_v1  ;;  %v2131_v26 = vmul.f32 1.442695, %v1767_v11  ;;  %4721 = vmatmul.msk.f32.gmra.mxu2 %vm475_vm1, %v9810_v34  ;;  %4754 = vmatmul.msk.f32.gmra.mxu3 %vm475_vm1, %v9810_v34 }
 0x2ae   : > { %5411 = vpow2.f32 %v2487_v6  ;;  %v1768_v48 = vsub.f32 0.0, %v8010_v24  ;;  %v8027_v19 = vadd.f32 %v3711_v58, %v9811_v62  ;;  %v8032_v47 = vadd.f32 %v7943_v31, %v7074_v25 }
 0x2af   : > { %5413 = vpow2.f32 %v2489_v37  ;;  %v1955_v59 = vsub.f32 0.0, %v8015_v44  ;;  %v8036_v63 = vadd.f32 %v7950_v30, %v7776_v57  ;;  %v8040_v33 = vadd.f32 %v7952_v2, %v7801_v56 }
 0x2b0   : > { %v5404_v6 = vpop.eup %5403  ;;  %5415 = vrcp.f32 %v2718_v53  ;;  %v2133_v42 = vmul.f32 1.442695, %v1768_v48  ;;  %v1956_v45 = vsub.f32 0.0, %v8032_v47  ;;  %v911_v31 = vpop.f32.mrf.mxu2 }
 0x2b1   : > { %v5406_v43 = vpop.eup %5405  ;;  %v3348_v39 = vmul.f32 %v5404_v6, %v7852_v8  ;;  %5417 = vpow2.f32 %v2131_v26  ;;  %v2507_v40 = vmul.f32 1.442695, %v1955_v59  ;;  %v1024_v52 = vpop.f32.mrf.mxu3  ;;  %v1777_v30 = vsub.f32 0.0, %v8036_v63 }
 0x2b2   : > { %v5408_v54 = vpop.eup %5407  ;;  %v3535_v46 = vmul.f32 %v5406_v43, %v7880_v21  ;;  %5419 = vpow2.f32 %v2133_v42  ;;  %v1778_v50 = vsub.f32 0.0, %v8040_v33  ;;  %v1083_v11 = vpop.f32.mrf.mxu0  ;;  %v2509_v58 = vmul.f32 1.442695, %v1956_v45  ;;  %v9813_v43 = vld [vmem:[#allocation44_spill] sm:$0xff] }
 0x2b3   : > { %v8047_v2 = vpop.f32.mrf.mxu1  ;;  %v5410_v1 = vpop.eup %5409  ;;  %v3831_v8 = vadd.f32 %v7967_v27, %v3348_v39  ;;  %v3536_v14 = vmul.f32 %v5408_v54, %v7903_v7  ;;  %5421 = vpow2.f32 %v2507_v40  ;;  %v2151_v26 = vmul.f32 1.442695, %v1777_v30  ;;  %v9812_v7 = vld [vmem:[#allocation25_spill] sm:$0xff] }
 0x2b4   : > { %v5412_v37 = vpop.eup %5411  ;;  %v8052_v53 = vadd.f32 %v7976_v60, %v3535_v46  ;;  %v3357_v21 = vmul.f32 %v5410_v1, %v7916_v9  ;;  %v2153_v48 = vmul.f32 1.442695, %v1778_v50  ;;  %5423 = vpow2.f32 %v2509_v58  ;;  %4669 = vmatmul.msk.f32.gmra.mxu0 %vm475_vm1, %v9812_v7  ;;  %4702 = vmatmul.msk.f32.gmra.mxu1 %vm475_vm1, %v9812_v7 }
 0x2b5   : > { %v5414_v62 = vpop.eup %5413  ;;  %v8056_v59 = vadd.f32 %v7980_v3, %v3536_v14  ;;  %v2905_v6 = vadd.f32 1.0, %v5412_v37  ;;  %v8060_v27 = vadd.f32 %v7989_v23, %v7071_v15  ;;  %5425 = vpow2.f32 %v2151_v26  ;;  %4722 = vmatmul.msk.f32.gmra.mxu2 %vm475_vm1, %v9813_v43  ;;  %4755 = vmatmul.msk.f32.gmra.mxu3 %vm475_vm1, %v9813_v43 }
 0x2b6   : > { %v5416_v60 = vpop.eup %5415  ;;  %v8067_v9 = vadd.f32 %v7983_v61, %v3357_v21  ;;  %v2906_v42 = vadd.f32 1.0, %v5414_v62  ;;  %v8071_v3 = vadd.f32 %v7991_v22, %v7074_v25  ;;  %v8081_v61 = vadd.f32 %v7998_v55, %v7776_v57 }
 0x2b7   : > { %v5418_v23 = vpop.eup %5417  ;;  %v3358_v39 = vmul.f32 %v5416_v60, %v7933_v20  ;;  %5427 = vrcp.f32 %v2905_v6  ;;  %v1965_v40 = vsub.f32 0.0, %v8060_v27  ;;  %v8086_v46 = vadd.f32 %v8000_v38, %v7801_v56 }
 0x2b8   : > { %v5420_v45 = vpop.eup %5419  ;;  %5429 = vrcp.f32 %v2906_v42  ;;  %v2727_v22 = vadd.f32 1.0, %v5418_v23  ;;  %v1966_v54 = vsub.f32 0.0, %v8071_v3  ;;  %v914_v14 = vpop.f32.mrf.mxu2  ;;  %v1787_v21 = vsub.f32 0.0, %v8081_v61 }
 0x2b9   : > { %v5422_v30 = vpop.eup %5421  ;;  %v8088_v50 = vadd.f32 %v3831_v8, %v3358_v39  ;;  %v2728_v20 = vadd.f32 1.0, %v5420_v45  ;;  %5431 = vpow2.f32 %v2153_v48  ;;  %v2527_v1 = vmul.f32 1.442695, %v1965_v40  ;;  %v1027_v58 = vpop.f32.mrf.mxu3 }
 0x2ba   : > { %5433 = vrcp.f32 %v2727_v22  ;;  %v2915_v55 = vadd.f32 1.0, %v5422_v30  ;;  %v2529_v37 = vmul.f32 1.442695, %v1966_v54  ;;  %v5424_v26 = vpop.eup %5423  ;;  %v1788_v62 = vsub.f32 0.0, %v8086_v46  ;;  %v8098_v6 = vpop.f32.mrf.mxu0  ;;  %v9814_v54 = vld [vmem:[#allocation26_spill] sm:$0xff] }
 0x2bb   : > { %5435 = vrcp.f32 %v2728_v20  ;;  %v8093_v38 = vadd.f32 %v911_v31, %v7071_v15  ;;  %v8096_v8 = vadd.f32 %v1024_v52, %v7074_v25  ;;  %v5426_v48 = vpop.eup %5425  ;;  %v2916_v60 = vadd.f32 1.0, %v5424_v26  ;;  %v8103_v39 = vpop.f32.mrf.mxu1 }
 0x2bc   : > { %5437 = vrcp.f32 %v2915_v55  ;;  %v2171_v42 = vmul.f32 1.442695, %v1787_v21  ;;  %v8101_v23 = vadd.f32 %v1083_v11, %v7776_v57  ;;  %v2737_v45 = vadd.f32 1.0, %v5426_v48  ;;  %4670 = vmatmul.msk.f32.gmra.mxu0 %vm475_vm1, %v9814_v54  ;;  %4703 = vmatmul.msk.f32.gmra.mxu1 %vm475_vm1, %v9814_v54  ;;  %v9815_v55 = vld [vmem:[#allocation45_spill] sm:$0xff] }
 0x2bd   : > { %v5428_v40 = vpop.eup %5427  ;;  %5439 = vpow2.f32 %v2527_v1  ;;  %v2173_v22 = vmul.f32 1.442695, %v1788_v62  ;;  %v1975_v31 = vsub.f32 0.0, %v8093_v38  ;;  %v1976_v11 = vsub.f32 0.0, %v8096_v8  ;;  %4723 = vmatmul.msk.f32.gmra.mxu2 %vm475_vm1, %v9815_v55  ;;  %4756 = vmatmul.msk.f32.gmra.mxu3 %vm475_vm1, %v9815_v55 }
 0x2be   : > { %v5430_v52 = vpop.eup %5429  ;;  %v3545_v30 = vmul.f32 %v5428_v40, %v7948_v12  ;;  %5441 = vrcp.f32 %v2916_v60  ;;  %v1797_v20 = vsub.f32 0.0, %v8101_v23  ;;  %v8120_v62 = vadd.f32 %v8047_v2, %v7801_v56 }
 0x2bf   : > { %v5432_v1 = vpop.eup %5431  ;;  %v3546_v21 = vmul.f32 %v5430_v52, %v7987_v49  ;;  %5443 = vrcp.f32 %v2737_v45  ;;  %v2547_v26 = vmul.f32 1.442695, %v1975_v31  ;;  %v2549_v40 = vmul.f32 1.442695, %v1976_v11 }
 0x2c0   : > { %v5434_v12 = vpop.eup %5433  ;;  %v3740_v48 = vadd.f32 %v8052_v53, %v3545_v30  ;;  %v2738_v60 = vadd.f32 1.0, %v5432_v1  ;;  %5445 = vpow2.f32 %v2529_v37  ;;  %v2191_v17 = vmul.f32 1.442695, %v1797_v20  ;;  %v917_v49 = vpop.f32.mrf.mxu2 }
 0x2c1   : > { %v5436_v43 = vpop.eup %5435  ;;  %v3777_v34 = vadd.f32 %v8056_v59, %v3546_v21  ;;  %v3367_v55 = vmul.f32 %v5434_v12, %v7996_v32  ;;  %5447 = vpow2.f32 %v2171_v42  ;;  %v1798_v2 = vsub.f32 0.0, %v8120_v62  ;;  %v1030_v53 = vpop.f32.mrf.mxu3 }
 0x2c2   : > { %v5438_v45 = vpop.eup %5437  ;;  %v3368_v31 = vmul.f32 %v5436_v43, %v8010_v24  ;;  %5449 = vrcp.f32 %v2738_v60  ;;  %v8128_v52 = vadd.f32 %v914_v14, %v7071_v15  ;;  %v8133_v32 = vadd.f32 %v1027_v58, %v7074_v25 }
 0x2c3   : > { %v5440_v37 = vpop.eup %5439  ;;  %v3796_v30 = vadd.f32 %v8067_v9, %v3367_v55  ;;  %v3555_v59 = vmul.f32 %v5438_v45, %v8015_v44  ;;  %5451 = vpow2.f32 %v2173_v22  ;;  %v2193_v43 = vmul.f32 1.442695, %v1798_v2  ;;  %v1089_v9 = vpop.f32.mrf.mxu0  ;;  %v9816_v55 = vld [vmem:[#allocation27_spill] sm:$0xff] }
 0x2c4   : > { %v5442_v42 = vpop.eup %5441  ;;  %v3833_v11 = vadd.f32 %v8088_v50, %v3368_v31  ;;  %v2925_v24 = vadd.f32 1.0, %v5440_v37  ;;  %5453 = vpow2.f32 %v2547_v26  ;;  %v1985_v21 = vsub.f32 0.0, %v8128_v52  ;;  %4671 = vmatmul.msk.f32.gmra.mxu0 %vm475_vm1, %v9816_v55  ;;  %4704 = vmatmul.msk.f32.gmra.mxu1 %vm475_vm1, %v9816_v55 }
 0x2c5   : > { %v5444_v20 = vpop.eup %5443  ;;  %v3741_v1 = vadd.f32 %v3740_v48, %v3555_v59  ;;  %v3556_v14 = vmul.f32 %v5442_v42, %v8032_v47  ;;  %5455 = vpow2.f32 %v2549_v40  ;;  %v1986_v58 = vsub.f32 0.0, %v8133_v32  ;;  %v1202_v47 = vpop.f32.mrf.mxu1  ;;  %4724 = vmatmul.msk.f32.gmra.mxu2 %vm475_vm1, %v9781_v41  ;;  %4757 = vmatmul.msk.f32.gmra.mxu3 %vm475_vm1, %v9781_v41 }
 0x2c6   : > { %v5446_v44 = vpop.eup %5445  ;;  %v3377_v50 = vmul.f32 %v5444_v20, %v8036_v63  ;;  %5457 = vrcp.f32 %v2925_v24  ;;  %v8146_v22 = vadd.f32 %v8098_v6, %v7776_v57  ;;  %v2567_v63 = vmul.f32 1.442695, %v1985_v21 }
 0x2c7   : > { %v5448_v26 = vpop.eup %5447  ;;  %v8152_v12 = vadd.f32 %v3777_v34, %v3556_v14  ;;  %v2926_v48 = vadd.f32 1.0, %v5446_v44  ;;  %5459 = vpow2.f32 %v2191_v17  ;;  %v2569_v6 = vmul.f32 1.442695, %v1986_v58 }
 0x2c8   : > { %v5450_v60 = vpop.eup %5449  ;;  %v8154_v40 = vadd.f32 %v3796_v30, %v3377_v50  ;;  %v2747_v45 = vadd.f32 1.0, %v5448_v26  ;;  %5461 = vpow2.f32 %v2193_v43  ;;  %v1807_v37 = vsub.f32 0.0, %v8146_v22  ;;  %v920_v34 = vpop.f32.mrf.mxu2 }
 0x2c9   : > { %v5452_v31 = vpop.eup %5451  ;;  %v3378_v2 = vmul.f32 %v5450_v60, %v8040_v33  ;;  %5463 = vrcp.f32 %v2926_v48  ;;  %v8160_v59 = vadd.f32 %v8103_v39, %v7801_v56  ;;  %v8163_v30 = vadd.f32 %v917_v49, %v7071_v15  ;;  %v1033_v58 = vpop.f32.mrf.mxu3 }
 0x2ca   : > { %v5454_v42 = vpop.eup %5453  ;;  %5465 = vrcp.f32 %v2747_v45  ;;  %v2748_v17 = vadd.f32 1.0, %v5452_v31  ;;  %v8166_v24 = vadd.f32 %v1030_v53, %v7074_v25  ;;  %v2211_v14 = vmul.f32 1.442695, %v1807_v37 }
 0x2cb   : > { %v5456_v43 = vpop.eup %5455  ;;  %v3834_v20 = vadd.f32 %v3833_v11, %v3378_v2  ;;  %v2935_v33 = vadd.f32 1.0, %v5454_v42  ;;  %5467 = vpow2.f32 %v2567_v63  ;;  %v1808_v39 = vsub.f32 0.0, %v8160_v59  ;;  %v9817_v11 = vld [vmem:[#allocation28_spill] sm:$0xff]  ;;  %v9818_v2 = vld [vmem:[#allocation47_spill] sm:$0xff] }
 0x2cc   : > { %v5458_v21 = vpop.eup %5457  ;;  %5469 = vrcp.f32 %v2748_v17  ;;  %v2936_v44 = vadd.f32 1.0, %v5456_v43  ;;  %v1995_v50 = vsub.f32 0.0, %v8163_v30  ;;  %v1996_v53 = vsub.f32 0.0, %v8166_v24  ;;  %4672 = vmatmul.msk.f32.gmra.mxu0 %vm475_vm1, %v9817_v11  ;;  %4705 = vmatmul.msk.f32.gmra.mxu1 %vm475_vm1, %v9817_v11  ;;  %v1092_v17 = vpop.f32.mrf.mxu0 }
 0x2cd   : > { %v5460_v26 = vpop.eup %5459  ;;  %v3565_v49 = vmul.f32 %v5458_v21, %v8060_v27  ;;  %5471 = vrcp.f32 %v2935_v33  ;;  %v8173_v48 = vadd.f32 %v1089_v9, %v7776_v57  ;;  %v2213_v45 = vmul.f32 1.442695, %v1808_v39  ;;  %4725 = vmatmul.msk.f32.gmra.mxu2 %vm475_vm1, %v9818_v2  ;;  %4758 = vmatmul.msk.f32.gmra.mxu3 %vm475_vm1, %v9818_v2  ;;  %v1205_v39 = vpop.f32.mrf.mxu1 }
 0x2ce   : > { %v5462_v63 = vpop.eup %5461  ;;  %5473 = vrcp.f32 %v2936_v44  ;;  %v2757_v60 = vadd.f32 1.0, %v5460_v26  ;;  %v2587_v31 = vmul.f32 1.442695, %v1995_v50  ;;  %v2589_v42 = vmul.f32 1.442695, %v1996_v53 }
 0x2cf   : > { %v5464_v27 = vpop.eup %5463  ;;  %v3742_v9 = vadd.f32 %v3741_v1, %v3565_v49  ;;  %v2758_v37 = vadd.f32 1.0, %v5462_v63  ;;  %5475 = vpow2.f32 %v2569_v6  ;;  %v1817_v21 = vsub.f32 0.0, %v8173_v48 }
 0x2d0   : > { %v5466_v43 = vpop.eup %5465  ;;  %v3566_v33 = vmul.f32 %v5464_v27, %v8071_v3  ;;  %5477 = vrcp.f32 %v2757_v60  ;;  %v8186_v44 = vadd.f32 %v1202_v47, %v7801_v56  ;;  %v8190_v1 = vadd.f32 %v920_v34, %v7071_v15 }
 0x2d1   : > { %v5468_v50 = vpop.eup %5467  ;;  %v3387_v26 = vmul.f32 %v5466_v43, %v8081_v61  ;;  %5479 = vrcp.f32 %v2758_v37  ;;  %v8193_v6 = vadd.f32 %v1033_v58, %v7074_v25  ;;  %v2231_v63 = vmul.f32 1.442695, %v1817_v21  ;;  %v923_v37 = vpop.f32.mrf.mxu2 }
 0x2d2   : > { %v5470_v49 = vpop.eup %5469  ;;  %v3779_v3 = vadd.f32 %v8152_v12, %v3566_v33  ;;  %v2945_v53 = vadd.f32 1.0, %v5468_v50  ;;  %5481 = vpow2.f32 %v2211_v14  ;;  %v1818_v61 = vsub.f32 0.0, %v8186_v44  ;;  %v9819_v50 = vld [vmem:[#allocation29_spill] sm:$0xff] }
 0x2d3   : > { %v5472_v60 = vpop.eup %5471  ;;  %v3798_v47 = vadd.f32 %v8154_v40, %v3387_v26  ;;  %v3388_v27 = vmul.f32 %v5470_v49, %v8086_v46  ;;  %5483 = vpow2.f32 %v2213_v45  ;;  %v2005_v58 = vsub.f32 0.0, %v8190_v1  ;;  %v1036_v49 = vpop.f32.mrf.mxu3 }
 0x2d4   : > { %v5474_v34 = vpop.eup %5473  ;;  %v3575_v43 = vmul.f32 %v5472_v60, %v8093_v38  ;;  %5485 = vrcp.f32 %v2945_v53  ;;  %v2006_v12 = vsub.f32 0.0, %v8193_v6  ;;  %v2233_v40 = vmul.f32 1.442695, %v1818_v61  ;;  %4673 = vmatmul.msk.f32.gmra.mxu0 %vm475_vm1, %v9819_v50  ;;  %4706 = vmatmul.msk.f32.gmra.mxu1 %vm475_vm1, %v9819_v50 }
 0x2d5   : > { %v5476_v33 = vpop.eup %5475  ;;  %v3835_v14 = vadd.f32 %v3834_v20, %v3388_v27  ;;  %v3576_v21 = vmul.f32 %v5474_v34, %v8096_v8  ;;  %5487 = vpow2.f32 %v2587_v31  ;;  %v2607_v26 = vmul.f32 1.442695, %v2005_v58  ;;  %4726 = vmatmul.msk.f32.gmra.mxu2 %vm475_vm1, %v9784_v16  ;;  %4759 = vmatmul.msk.f32.gmra.mxu3 %vm475_vm1, %v9784_v16 }
 0x2d6   : > { %v5478_v46 = vpop.eup %5477  ;;  %v3743_v45 = vadd.f32 %v3742_v9, %v3575_v43  ;;  %v2946_v38 = vadd.f32 1.0, %v5476_v33  ;;  %5489 = vpow2.f32 %v2589_v42  ;;  %v2609_v53 = vmul.f32 1.442695, %v2006_v12  ;;  %v1208_v12 = vpop.f32.mrf.mxu1 }
 0x2d7   : > { %v5480_v8 = vpop.eup %5479  ;;  %v3780_v20 = vadd.f32 %v3779_v3, %v3576_v21  ;;  %v3397_v31 = vmul.f32 %v5478_v46, %v8101_v23  ;;  %5491 = vpow2.f32 %v2231_v63  ;;  %v8214_v9 = vadd.f32 %v1092_v17, %v7776_v57  ;;  %v1095_v23 = vpop.f32.mrf.mxu0 }
 0x2d8   : > { %v5482_v60 = vpop.eup %5481  ;;  %v3398_v27 = vmul.f32 %v5480_v8, %v8120_v62  ;;  %5493 = vrcp.f32 %v2946_v38  ;;  %v8217_v42 = vadd.f32 %v1205_v39, %v7801_v56  ;;  %v8222_v3 = vadd.f32 %v923_v37, %v7071_v15 }
 0x2d9   : > { %v5484_v61 = vpop.eup %5483  ;;  %v8219_v34 = vadd.f32 %v3798_v47, %v3397_v31  ;;  %v2767_v43 = vadd.f32 1.0, %v5482_v60  ;;  %5495 = vpow2.f32 %v2233_v40  ;;  %v1827_v17 = vsub.f32 0.0, %v8214_v9  ;;  %v926_v60 = vpop.f32.mrf.mxu2 }
 0x2da   : > { %v5486_v63 = vpop.eup %5485  ;;  %v8224_v58 = vadd.f32 %v3835_v14, %v3398_v27  ;;  %v2768_v62 = vadd.f32 1.0, %v5484_v61  ;;  %5497 = vpow2.f32 %v2607_v26  ;;  %v1828_v47 = vsub.f32 0.0, %v8217_v42  ;;  %v9820_v27 = vld [vmem:[#allocation30_spill] sm:$0xff] }
 0x2db   : > { %v5488_v33 = vpop.eup %5487  ;;  %v3585_v39 = vmul.f32 %v5486_v63, %v8128_v52  ;;  %5499 = vrcp.f32 %v2767_v43  ;;  %v2015_v21 = vsub.f32 0.0, %v8222_v3  ;;  %v2251_v46 = vmul.f32 1.442695, %v1827_v17 }
 0x2dc   : > { %v5490_v40 = vpop.eup %5489  ;;  %5501 = vrcp.f32 %v2768_v62  ;;  %v2955_v37 = vadd.f32 1.0, %v5488_v33  ;;  %v8231_v14 = vadd.f32 %v1036_v49, %v7074_v25  ;;  %v2253_v31 = vmul.f32 1.442695, %v1828_v47  ;;  %4674 = vmatmul.msk.f32.gmra.mxu0 %vm475_vm1, %v9820_v27  ;;  %4707 = vmatmul.msk.f32.gmra.mxu1 %vm475_vm1, %v9820_v27 }
 0x2dd   : > { %v5492_v38 = vpop.eup %5491  ;;  %v3744_v26 = vadd.f32 %v3743_v45, %v3585_v39  ;;  %v2956_v8 = vadd.f32 1.0, %v5490_v40  ;;  %5503 = vpow2.f32 %v2609_v53  ;;  %v2627_v43 = vmul.f32 1.442695, %v2015_v21  ;;  %4727 = vmatmul.msk.f32.gmra.mxu2 %vm475_vm1, %v9785_v29  ;;  %4760 = vmatmul.msk.f32.gmra.mxu3 %vm475_vm1, %v9785_v29  ;;  %v1039_v21 = vpop.f32.mrf.mxu3 }
 0x2de   : > { %v5494_v52 = vpop.eup %5493  ;;  %5505 = vrcp.f32 %v2955_v37  ;;  %v2777_v61 = vadd.f32 1.0, %v5492_v38  ;;  %v2016_v63 = vsub.f32 0.0, %v8231_v14  ;;  %v8244_v53 = vadd.f32 %v1095_v23, %v7776_v57 }
 0x2df   : > { %v5496_v45 = vpop.eup %5495  ;;  %v3586_v49 = vmul.f32 %v5494_v52, %v8133_v32  ;;  %5507 = vrcp.f32 %v2956_v8  ;;  %v8247_v62 = vadd.f32 %v1208_v12, %v7801_v56  ;;  %v8250_v47 = vadd.f32 %v926_v60, %v7071_v15 }
 0x2e0   : > { %v5498_v17 = vpop.eup %5497  ;;  %5509 = vrcp.f32 %v2777_v61  ;;  %v2778_v33 = vadd.f32 1.0, %v5496_v45  ;;  %v2629_v39 = vmul.f32 1.442695, %v2016_v63  ;;  %v1837_v32 = vsub.f32 0.0, %v8244_v53 }
 0x2e1   : > { %v5500_v40 = vpop.eup %5499  ;;  %v3781_v37 = vadd.f32 %v3780_v20, %v3586_v49  ;;  %v2965_v38 = vadd.f32 1.0, %v5498_v17  ;;  %5511 = vpow2.f32 %v2251_v46  ;;  %v1838_v12 = vsub.f32 0.0, %v8247_v62  ;;  %v1098_v20 = vpop.f32.mrf.mxu0 }
 0x2e2   : > { %v5502_v8 = vpop.eup %5501  ;;  %v3407_v23 = vmul.f32 %v5500_v40, %v8146_v22  ;;  %5513 = vrcp.f32 %v2778_v33  ;;  %v2025_v52 = vsub.f32 0.0, %v8250_v47  ;;  %v2271_v60 = vmul.f32 1.442695, %v1837_v32  ;;  %v1211_v33 = vpop.f32.mrf.mxu1 }
 0x2e3   : > { %v5504_v61 = vpop.eup %5503  ;;  %v3408_v63 = vmul.f32 %v5502_v8, %v8160_v59  ;;  %5515 = vrcp.f32 %v2965_v38  ;;  %v8258_v45 = vadd.f32 %v1039_v21, %v7074_v25  ;;  %v2273_v22 = vmul.f32 1.442695, %v1838_v12  ;;  %v9821_v38 = vld [vmem:[#allocation31_spill] sm:$0xff] }
 0x2e4   : > { %v5506_v46 = vpop.eup %5505  ;;  %v3800_v49 = vadd.f32 %v8219_v34, %v3407_v23  ;;  %v2966_v17 = vadd.f32 1.0, %v5504_v61  ;;  %5517 = vpow2.f32 %v2253_v31  ;;  %v2647_v59 = vmul.f32 1.442695, %v2025_v52  ;;  %4675 = vmatmul.msk.f32.gmra.mxu0 %vm475_vm1, %v9821_v38  ;;  %4708 = vmatmul.msk.f32.gmra.mxu1 %vm475_vm1, %v9821_v38 }
 0x2e5   : > { %v5508_v40 = vpop.eup %5507  ;;  %v3837_v29 = vadd.f32 %v8224_v58, %v3408_v63  ;;  %v3595_v16 = vmul.f32 %v5506_v46, %v8163_v30  ;;  %5519 = vpow2.f32 %v2627_v43  ;;  %v2026_v31 = vsub.f32 0.0, %v8258_v45  ;;  %4728 = vmatmul.msk.f32.gmra.mxu2 %vm475_vm1, %v9786_v0  ;;  %4761 = vmatmul.msk.f32.gmra.mxu3 %vm475_vm1, %v9786_v0 }
 0x2e6   : > { %v5510_v21 = vpop.eup %5509  ;;  %v3596_v34 = vmul.f32 %v5508_v40, %v8166_v24  ;;  %5521 = vrcp.f32 %v2966_v17  ;;  %v8270_v32 = vadd.f32 %v1098_v20, %v7776_v57  ;;  %v8278_v8 = vadd.f32 %v1211_v33, %v7801_v56  ;;  %v929_v24 = vpop.f32.mrf.mxu2 }
 0x2e7   : > { %v5512_v30 = vpop.eup %5511  ;;  %v3745_v58 = vadd.f32 %v3744_v26, %v3595_v16  ;;  %v3417_v43 = vmul.f32 %v5510_v21, %v8173_v48  ;;  %5523 = vpow2.f32 %v2629_v39  ;;  %v2649_v61 = vmul.f32 1.442695, %v2026_v31 }
 0x2e8   : > { %v5514_v23 = vpop.eup %5513  ;;  %v3782_v12 = vadd.f32 %v3781_v37, %v3596_v34  ;;  %v2787_v52 = vadd.f32 1.0, %v5512_v30  ;;  %5525 = vpow2.f32 %v2271_v60  ;;  %v1847_v17 = vsub.f32 0.0, %v8270_v32  ;;  %v1042_v37 = vpop.f32.mrf.mxu3 }
 0x2e9   : > { %v5516_v63 = vpop.eup %5515  ;;  %v3801_v20 = vadd.f32 %v3800_v49, %v3417_v43  ;;  %v3418_v46 = vmul.f32 %v5514_v23, %v8186_v44  ;;  %5527 = vpow2.f32 %v2273_v22  ;;  %v1848_v26 = vsub.f32 0.0, %v8278_v8  ;;  %v9822_v44 = vld [vmem:[#allocation57_spill] sm:$0xff]  ;;  %v9823_v22 = vld [vmem:[#allocation71_spill] sm:$0xff] }
 0x2ea   : > { %v5518_v16 = vpop.eup %5517  ;;  %v3605_v48 = vmul.f32 %v5516_v63, %v8190_v1  ;;  %5529 = vrcp.f32 %v2787_v52  ;;  %v8285_v39 = vadd.f32 %v929_v24, %v7071_v15  ;;  %v2291_v49 = vmul.f32 1.442695, %v1847_v17 }
 0x2eb   : > { %v5520_v33 = vpop.eup %5519  ;;  %v3838_v60 = vadd.f32 %v3837_v29, %v3418_v46  ;;  %v2788_v40 = vadd.f32 1.0, %v5518_v16  ;;  %5531 = vpow2.f32 %v2647_v59  ;;  %v3633_v34 = vmul.f32 %v9823_v22, %v9822_v44  ;;  %v9824_v29 = vld [vmem:[#allocation32_spill] sm:$0xff] }
 0x2ec   : > { %v5522_v21 = vpop.eup %5521  ;;  %v3746_v31 = vadd.f32 %v3745_v58, %v3605_v48  ;;  %v2975_v30 = vadd.f32 1.0, %v5520_v33  ;;  %5533 = vpow2.f32 %v2649_v61  ;;  %v2035_v15 = vsub.f32 0.0, %v8285_v39  ;;  %4676 = vmatmul.msk.f32.gmra.mxu0 %vm475_vm1, %v9824_v29  ;;  %4709 = vmatmul.msk.f32.gmra.mxu1 %vm475_vm1, %v9824_v29 }
 0x2ed   : > { %v5524_v1 = vpop.eup %5523  ;;  %v3606_v43 = vmul.f32 %v5522_v21, %v8193_v6  ;;  %5535 = vrcp.f32 %v2788_v40  ;;  %v8292_v24 = vadd.f32 %v1042_v37, %v7074_v25  ;;  %v3675_v23 = vadd.f32 %v8005_v5, %v3633_v34  ;;  %4729 = vmatmul.msk.f32.gmra.mxu2 %vm475_vm1, %v9787_v4  ;;  %4762 = vmatmul.msk.f32.gmra.mxu3 %vm475_vm1, %v9787_v4 }
 0x2ee   : > { %v5526_v59 = vpop.eup %5525  ;;  %5537 = vrcp.f32 %v2975_v30  ;;  %v2976_v58 = vadd.f32 1.0, %v5524_v1  ;;  %v3713_v52 = vrot.slane %v8027_v19, 4  ;;  %v2293_v63 = vmul.f32 1.442695, %v1848_v26 }
 0x2ef   : > { %v5528_v25 = vpop.eup %5527  ;;  %v3783_v6 = vadd.f32 %v3782_v12, %v3606_v43  ;;  %v2797_v61 = vadd.f32 1.0, %v5526_v59  ;;  %5539 = vpow2.f32 %v2291_v49  ;;  %v2036_v16 = vsub.f32 0.0, %v8292_v24 }
 0x2f0   : > { %v5530_v46 = vpop.eup %5529  ;;  %5541 = vrcp.f32 %v2976_v58  ;;  %v2798_v17 = vadd.f32 1.0, %v5528_v25  ;;  %v3676_v48 = vrot.slane %v3675_v23, 4  ;;  %v2667_v33 = vmul.f32 1.442695, %v2035_v15  ;;  %v9825_v58 = vld [vmem:[#allocation33_spill] sm:$0xff] }
 0x2f1   : > { %v5532_v5 = vpop.eup %5531  ;;  %v3427_v37 = vmul.f32 %v5530_v46, %v8214_v9  ;;  %5543 = vrcp.f32 %v2797_v61  ;;  %v3714_v40 = vadd.f32 %v3713_v52, %v8027_v19  ;;  %v2669_v12 = vmul.f32 1.442695, %v2036_v16 }
 0x2f2   : > { %v5534_v21 = vpop.eup %5533  ;;  %5545 = vrcp.f32 %v2798_v17  ;;  %v2985_v44 = vadd.f32 1.0, %v5532_v5  ;;  %v3677_v22 = vadd.f32 %v3676_v48, %v3675_v23 }
 0x2f3   : > { %v5536_v49 = vpop.eup %5535  ;;  %v3802_v26 = vadd.f32 %v3801_v20, %v3427_v37  ;;  %v2986_v34 = vadd.f32 1.0, %v5534_v21  ;;  %5547 = vpow2.f32 %v2293_v63  ;;  %v3715_v30 = vrot.slane %v3714_v40, 2 }
 0x2f4   : > { %v5538_v1 = vpop.eup %5537  ;;  %v3428_v43 = vmul.f32 %v5536_v49, %v8217_v42  ;;  %5549 = vrcp.f32 %v2985_v44  ;;  %v3678_v59 = vrot.slane %v3677_v22, 2  ;;  %4677 = vmatmul.msk.f32.gmra.mxu0 %vm475_vm1, %v9825_v58  ;;  %4710 = vmatmul.msk.f32.gmra.mxu1 %vm475_vm1, %v9825_v58 }
 0x2f5   : > { %v5540_v9 = vpop.eup %5539  ;;  %v3615_v15 = vmul.f32 %v5538_v1, %v8222_v3  ;;  %5551 = vrcp.f32 %v2986_v34  ;;  %v3716_v19 = vadd.f32 %v3715_v30, %v3714_v40  ;;  %4730 = vmatmul.msk.f32.gmra.mxu2 %vm475_vm1, %v9788_v51  ;;  %4763 = vmatmul.msk.f32.gmra.mxu3 %vm475_vm1, %v9788_v51  ;;  %v1401_v1 = vpop.f32.mrf.mxu3 }
 0x2f6   : > { %v5542_v20 = vpop.eup %5541  ;;  %v3839_v23 = vadd.f32 %v3838_v60, %v3428_v43  ;;  %v2807_v52 = vadd.f32 1.0, %v5540_v9  ;;  %5553 = vpow2.f32 %v2667_v33  ;;  %v3679_v25 = vadd.f32 %v3678_v59, %v3677_v22  ;;  %v1214_v22 = vpop.f32.mrf.mxu1 }
 0x2f7   : > { %v5544_v42 = vpop.eup %5543  ;;  %v3747_v3 = vadd.f32 %v3746_v31, %v3615_v15  ;;  %v3616_v61 = vmul.f32 %v5542_v20, %v8231_v14  ;;  %5555 = vpow2.f32 %v2669_v12  ;;  %v3717_v63 = vrot.slane %v3716_v19, 1  ;;  %v1101_v31 = vpop.f32.mrf.mxu0  ;;  %v6234_v14 = vld [vmem:[#allocation8] sm:$0xff] }
 0x2f8   : > { %v5546_v46 = vpop.eup %5545  ;;  %v3437_v17 = vmul.f32 %v5544_v42, %v8244_v53  ;;  %5557 = vrcp.f32 %v2807_v52  ;;  %v3680_v60 = vrot.slane %v3679_v25, 1  ;;  %v8320_v12 = vperm.slane %v6234_v14, 6  ;;  %v9826_v52 = vld [vmem:[#allocation34_spill] sm:$0xff] }
 0x2f9   : > { %v5548_v16 = vpop.eup %5547  ;;  %v3784_v48 = vadd.f32 %v3783_v6, %v3616_v61  ;;  %v3438_v5 = vmul.f32 %v5546_v46, %v8247_v62  ;;  %v3718_v37 = vadd.f32 %v3717_v63, %v3716_v19  ;;  %v8324_v6 = vadd.f32 %v1101_v31, %v7776_v57  ;;  %v1288_v62 = vpop.f32.mrf.mxu2 }
 0x2fa   : > { %v5550_v33 = vpop.eup %5549  ;;  %v3803_v40 = vadd.f32 %v3802_v26, %v3437_v17  ;;  %v2808_v21 = vadd.f32 1.0, %v5548_v16  ;;  %v3681_v44 = vadd.f32 %v3680_v60, %v3679_v25  ;;  %v8328_v59 = vadd.f32 %v1214_v22, %v7801_v56 }
 0x2fb   : > { %v5552_v49 = vpop.eup %5551  ;;  %v3840_v34 = vadd.f32 %v3839_v23, %v3438_v5  ;;  %v3625_v53 = vmul.f32 %v5550_v33, %v8250_v47  ;;  %v4025_v30 = vrot.slane %v3718_v37, 7  ;;  %v8331_v9 = vadd.f32 %v1288_v62, %v8320_v12 }
 0x2fc   : > { %v5554_v43 = vpop.eup %5553  ;;  %v3626_v26 = vmul.f32 %v5552_v49, %v8258_v45  ;;  %5559 = vrcp.f32 %v2808_v21  ;;  %v1857_v23 = vsub.f32 0.0, %v8324_v6  ;;  %4778 = vmatmul.msk.f32.vlgmr.msra.gmra.mxu0 %vm475_vm1, %v9826_v52  ;;  %4811 = vmatmul.msk.f32.vlgmr.msra.gmra.mxu1 %vm475_vm1, %v9826_v52  ;;  %v1858_v61 = vsub.f32 0.0, %v8328_v59 }
 0x2fd   : > { %v5556_v15 = vpop.eup %5555  ;;  %v3748_v19 = vadd.f32 %v3747_v3, %v3625_v53  ;;  %v2995_v20 = vadd.f32 1.0, %v5554_v43  ;;  %v8334_v47 = vsel %vm4033_vm2, %v3681_v44, %v4025_v30  ;;  %v1729_v63 = vsub.f32 0.0, %v8331_v9  ;;  %4731 = vmatmul.msk.f32.gmra.mxu2 %vm475_vm1, %v6663_v10  ;;  %4764 = vmatmul.msk.f32.gmra.mxu3 %vm475_vm1, %v6663_v10  ;;  %v9827_v43 = vld [vmem:[#allocation35_spill] sm:$0xff] }
 0x2fe   : > { %v5558_v45 = vpop.eup %5557  ;;  %v3785_v25 = vadd.f32 %v3784_v48, %v3626_v26  ;;  %v2996_v42 = vadd.f32 1.0, %v5556_v15  ;;  %v2311_v46 = vmul.f32 1.442695, %v1857_v23  ;;  %v8348_v17 = vperm.slane %v6234_v14, 7  ;;  %v1217_v21 = vpop.f32.mrf.mxu1 }
 0x2ff   : > { %v3447_v3 = vmul.f32 %v5558_v45, %v8270_v32  ;;  %5561 = vrcp.f32 %v2995_v20  ;;  %v2313_v60 = vmul.f32 1.442695, %v1858_v61  ;;  %v2055_v16 = vmul.f32 1.442695, %v1729_v63  ;;  %v1104_v33 = vpop.f32.mrf.mxu0  ;;  %v1404_v14 = vpop.f32.mrf.mxu3 }
 0x300   : > { %5563 = vrcp.f32 %v2996_v42  ;;  %v8353_v5 = vadd.f32 %v1401_v1, %v8348_v17  ;;  %v8358_v31 = vadd.f32 %v1104_v33, %v7776_v57  ;;  %v8367_v53 = vadd.f32 %v1404_v14, %v8348_v17 }
 0x301   : > { %v8350_v48 = vadd.f32 %v3803_v40, %v3447_v3  ;;  %5565 = vpow2.f32 %v2311_v46  ;;  %v1291_v22 = vpop.f32.mrf.mxu2  ;;  %v8361_v40 = vadd.f32 %v1217_v21, %v7801_v56 }
 0x302   : > { %v5560_v37 = vpop.eup %5559  ;;  %5567 = vpow2.f32 %v2313_v60  ;;  %v1730_v32 = vsub.f32 0.0, %v8353_v5  ;;  %v8364_v49 = vadd.f32 %v1291_v22, %v8320_v12  ;;  %v1867_v1 = vsub.f32 0.0, %v8358_v31 }
 0x303   : > { %v3448_v44 = vmul.f32 %v5560_v37, %v8278_v8  ;;  %5569 = vpow2.f32 %v2055_v16  ;;  %v1868_v20 = vsub.f32 0.0, %v8361_v40  ;;  %v1740_v52 = vsub.f32 0.0, %v8367_v53 }
 0x304   : > { %v2057_v8 = vmul.f32 1.442695, %v1730_v32  ;;  %4779 = vmatmul.msk.f32.gmra.mxu0 %vm475_vm1, %v9827_v43  ;;  %4812 = vmatmul.msk.f32.gmra.mxu1 %vm475_vm1, %v9827_v43  ;;  %v1739_v23 = vsub.f32 0.0, %v8364_v49  ;;  %v2331_v42 = vmul.f32 1.442695, %v1867_v1 }
 0x305   : > { %v5562_v30 = vpop.eup %5561  ;;  %v8369_v62 = vadd.f32 %v3840_v34, %v3448_v44  ;;  %4732 = vmatmul.msk.f32.gmra.mxu2 %vm475_vm1, %v9790_v13  ;;  %4765 = vmatmul.msk.f32.gmra.mxu3 %vm475_vm1, %v9790_v13  ;;  %v2333_v3 = vmul.f32 1.442695, %v1868_v20  ;;  %v2077_v44 = vmul.f32 1.442695, %v1740_v52  ;;  %v9828_v52 = vld [vmem:[#allocation36_spill] sm:$0xff] }
 0x306   : > { %v5564_v26 = vpop.eup %5563  ;;  %v3635_v15 = vmul.f32 %v5562_v30, %v8285_v39  ;;  %5571 = vpow2.f32 %v2057_v8  ;;  %v2075_v37 = vmul.f32 1.442695, %v1739_v23  ;;  %v1220_v22 = vpop.f32.mrf.mxu1 }
 0x307   : > { %v5566_v34 = vpop.eup %5565  ;;  %v3636_v45 = vmul.f32 %v5564_v26, %v8292_v24  ;;  %5573 = vpow2.f32 %v2331_v42  ;;  %v1107_v32 = vpop.f32.mrf.mxu0 }
 0x308   : > { %v5568_v61 = vpop.eup %5567  ;;  %v3749_v63 = vadd.f32 %v3748_v19, %v3635_v15  ;;  %v2817_v39 = vadd.f32 1.0, %v5566_v34  ;;  %v8386_v24 = vadd.f32 %v1107_v32, %v7776_v57  ;;  %v8389_v19 = vadd.f32 %v1220_v22, %v7801_v56  ;;  %v1407_v8 = vpop.f32.mrf.mxu3 }
 0x309   : > { %v5570_v46 = vpop.eup %5569  ;;  %v3786_v60 = vadd.f32 %v3785_v25, %v3636_v45  ;;  %v2818_v16 = vadd.f32 1.0, %v5568_v61  ;;  %v1294_v30 = vpop.f32.mrf.mxu2  ;;  %v8395_v43 = vadd.f32 %v1407_v8, %v8348_v17 }
 0x30a   : > { %v3750_v33 = vrot.slane %v3749_v63, 4  ;;  %5575 = vrcp.f32 %v2817_v39  ;;  %v2689_v21 = vadd.f32 1.0, %v5570_v46  ;;  %v8392_v1 = vadd.f32 %v1294_v30, %v8320_v12 }
 0x30b   : > { %v3787_v14 = vrot.slane %v3786_v60, 4  ;;  %5577 = vrcp.f32 %v2818_v16  ;;  %v1877_v20 = vsub.f32 0.0, %v8386_v24  ;;  %v1878_v23 = vsub.f32 0.0, %v8389_v19 }
 0x30c   : > { %v3751_v25 = vadd.f32 %v3750_v33, %v3749_v63  ;;  %5579 = vrcp.f32 %v2689_v21  ;;  %v5572_v26 = vpop.eup %5571  ;;  %4780 = vmatmul.msk.f32.gmra.mxu0 %vm475_vm1, %v9828_v52  ;;  %4813 = vmatmul.msk.f32.gmra.mxu1 %vm475_vm1, %v9828_v52  ;;  %v1749_v42 = vsub.f32 0.0, %v8392_v1  ;;  %v1750_v22 = vsub.f32 0.0, %v8395_v43 }
 0x30d   : > { %v3788_v15 = vadd.f32 %v3787_v14, %v3786_v60  ;;  %5581 = vpow2.f32 %v2333_v3  ;;  %v2690_v45 = vadd.f32 1.0, %v5572_v26  ;;  %4733 = vmatmul.msk.f32.gmra.mxu2 %vm475_vm1, %v9800_v35  ;;  %4766 = vmatmul.msk.f32.gmra.mxu3 %vm475_vm1, %v9800_v35  ;;  %v5574_v61 = vpop.eup %5573  ;;  %v2351_v39 = vmul.f32 1.442695, %v1877_v20 }
 0x30e   : > { %v3752_v34 = vrot.slane %v3751_v25, 2  ;;  %5583 = vpow2.f32 %v2075_v37  ;;  %v2353_v3 = vmul.f32 1.442695, %v1878_v23  ;;  %v2827_v16 = vadd.f32 1.0, %v5574_v61  ;;  %v1223_v26 = vpop.f32.mrf.mxu1 }
 0x30f   : > { %v3789_v63 = vrot.slane %v3788_v15, 2  ;;  %5585 = vpow2.f32 %v2077_v44  ;;  %v2095_v33 = vmul.f32 1.442695, %v1749_v42  ;;  %v1110_v44 = vpop.f32.mrf.mxu0 }
 0x310   : > { %v5576_v46 = vpop.eup %5575  ;;  %v3753_v60 = vadd.f32 %v3752_v34, %v3751_v25  ;;  %5587 = vrcp.f32 %v2690_v45 }
 0x311   : > { %v5578_v21 = vpop.eup %5577  ;;  %v3790_v37 = vadd.f32 %v3789_v63, %v3788_v15  ;;  %v3457_v32 = vmul.f32 %v5576_v46, %v8324_v6  ;;  %5589 = vpow2.f32 %v2351_v39  ;;  %v1297_v6 = vpop.f32.mrf.mxu2  ;;  %v2097_v46 = vmul.f32 1.442695, %v1750_v22 }
 0x312   : > { %v5580_v14 = vpop.eup %5579  ;;  %v3754_v30 = vrot.slane %v3753_v60, 1  ;;  %v3458_v8 = vmul.f32 %v5578_v21, %v8328_v59  ;;  %5591 = vrcp.f32 %v2827_v16  ;;  %v1410_v15 = vpop.f32.mrf.mxu3  ;;  %v8419_v16 = vadd.f32 %v1110_v44, %v7776_v57 }
 0x313   : > { %v5582_v20 = vpop.eup %5581  ;;  %v3791_v25 = vrot.slane %v3790_v37, 1  ;;  %v3805_v23 = vadd.f32 %v8350_v48, %v3457_v32  ;;  %v8413_v52 = vmul.f32 %v5580_v14, %v8331_v9  ;;  %5593 = vpow2.f32 %v2353_v3  ;;  %v9829_v48 = vld [vmem:[#allocation37_spill] sm:$0xff] }
 0x314   : > { %v5584_v34 = vpop.eup %5583  ;;  %v3755_v45 = vadd.f32 %v3754_v30, %v3753_v60  ;;  %v8416_v42 = vadd.f32 %v8369_v62, %v3458_v8  ;;  %v2828_v61 = vadd.f32 1.0, %v5582_v20  ;;  %5595 = vpow2.f32 %v2095_v33  ;;  %4781 = vmatmul.msk.f32.gmra.mxu0 %vm475_vm1, %v9829_v48  ;;  %4814 = vmatmul.msk.f32.gmra.mxu1 %vm475_vm1, %v9829_v48 }
 0x315   : > { %v5586_v59 = vpop.eup %5585  ;;  %v3792_v63 = vadd.f32 %v3791_v25, %v3790_v37  ;;  %v2699_v39 = vadd.f32 1.0, %v5584_v34  ;;  %v8426_v60 = vadd.f32 %v1223_v26, %v7801_v56  ;;  %4734 = vmatmul.msk.f32.gmra.mxu2 %vm475_vm1, %v9809_v28  ;;  %4767 = vmatmul.msk.f32.gmra.mxu3 %vm475_vm1, %v9809_v28  ;;  %v1887_v32 = vsub.f32 0.0, %v8419_v16 }
 0x316   : > { %v5588_v9 = vpop.eup %5587  ;;  %v4026_v3 = vrot.slane %v3755_v45, 6  ;;  %5597 = vrcp.f32 %v2828_v61  ;;  %v2700_v62 = vadd.f32 1.0, %v5586_v59  ;;  %v8436_v8 = vadd.f32 %v1297_v6, %v8320_v12 }
 0x317   : > { %v5590_v33 = vpop.eup %5589  ;;  %v4027_v21 = vrot.slane %v3792_v63, 5  ;;  %v3330_v37 = vmul.f32 %v5588_v9, %v8353_v5  ;;  %5599 = vrcp.f32 %v2699_v39  ;;  %v1888_v30 = vsub.f32 0.0, %v8426_v60  ;;  %v1113_v59 = vpop.f32.mrf.mxu0 }
 0x318   : > { %v5592_v22 = vpop.eup %5591  ;;  %5601 = vrcp.f32 %v2700_v62  ;;  %v2837_v14 = vadd.f32 1.0, %v5590_v33  ;;  %v2371_v25 = vmul.f32 1.442695, %v1887_v32  ;;  %v1226_v63 = vpop.f32.mrf.mxu1  ;;  %v1759_v48 = vsub.f32 0.0, %v8436_v8 }
 0x319   : > { %v5594_v44 = vpop.eup %5593  ;;  %v4036_v26 = vsel %vm4035_vm3, %v4026_v3, %v4027_v21  ;;  %v3467_v20 = vmul.f32 %v5592_v22, %v8358_v31  ;;  %5603 = vpow2.f32 %v2097_v46  ;;  %v2373_v61 = vmul.f32 1.442695, %v1888_v30  ;;  %v1300_v9 = vpop.f32.mrf.mxu2  ;;  %v9830_v22 = vld [vmem:[#allocation38_spill] sm:$0xff] }
 0x31a   : > { %v5596_v34 = vpop.eup %5595  ;;  %v8442_v5 = vsel %vm4037_vm4, %v8334_v47, %v4036_v26  ;;  %5605 = vrcp.f32 %v2837_v14  ;;  %v2838_v45 = vadd.f32 1.0, %v5594_v44  ;;  %v1413_v3 = vpop.f32.mrf.mxu3  ;;  %v8446_v46 = vadd.f32 %v1410_v15, %v8348_v17 }
 0x31b   : > { %v3806_v39 = vadd.f32 %v3805_v23, %v3467_v20  ;;  %v2709_v6 = vadd.f32 1.0, %v5596_v34  ;;  %5607 = vpow2.f32 %v2371_v25  ;;  %v8449_v47 = vadd.f32 %v1113_v59, %v7776_v57 }
 0x31c   : > { %v5598_v31 = vpop.eup %5597  ;;  %5609 = vrcp.f32 %v2838_v45  ;;  %v8452_v62 = vadd.f32 %v1226_v63, %v7801_v56  ;;  %v2115_v21 = vmul.f32 1.442695, %v1759_v48  ;;  %v8456_v32 = vadd.f32 %v1300_v9, %v8320_v12  ;;  %4782 = vmatmul.msk.f32.gmra.mxu0 %vm475_vm1, %v9830_v22  ;;  %4815 = vmatmul.msk.f32.gmra.mxu1 %vm475_vm1, %v9830_v22 }
 0x31d   : > { %v5600_v33 = vpop.eup %5599  ;;  %v3468_v23 = vmul.f32 %v5598_v31, %v8361_v40  ;;  %5611 = vrcp.f32 %v2709_v6  ;;  %v1760_v30 = vsub.f32 0.0, %v8446_v46  ;;  %v1897_v44 = vsub.f32 0.0, %v8449_v47  ;;  %4735 = vmatmul.msk.f32.gmra.mxu2 %vm475_vm1, %v9812_v7  ;;  %4768 = vmatmul.msk.f32.gmra.mxu3 %vm475_vm1, %v9812_v7 }
 0x31e   : > { %v5602_v15 = vpop.eup %5601  ;;  %v3339_v14 = vmul.f32 %v5600_v33, %v8364_v49  ;;  %5613 = vpow2.f32 %v2373_v61  ;;  %v1898_v25 = vsub.f32 0.0, %v8452_v62  ;;  %v1769_v9 = vsub.f32 0.0, %v8456_v32 }
 0x31f   : > { %v5604_v40 = vpop.eup %5603  ;;  %v3843_v26 = vadd.f32 %v8416_v42, %v3468_v23  ;;  %v3340_v20 = vmul.f32 %v5602_v15, %v8367_v53  ;;  %5615 = vpow2.f32 %v2115_v21  ;;  %v2117_v61 = vmul.f32 1.442695, %v1760_v30  ;;  %v1116_v23 = vpop.f32.mrf.mxu0 }
 0x320   : > { %v5606_v49 = vpop.eup %5605  ;;  %v3867_v34 = vadd.f32 %v3339_v14, %v8413_v52  ;;  %v2710_v45 = vadd.f32 1.0, %v5604_v40  ;;  %v2391_v48 = vmul.f32 1.442695, %v1897_v44  ;;  %v2393_v33 = vmul.f32 1.442695, %v1898_v25  ;;  %v1229_v21 = vpop.f32.mrf.mxu1 }
 0x321   : > { %v5608_v59 = vpop.eup %5607  ;;  %v3904_v63 = vadd.f32 %v3340_v20, %v3330_v37  ;;  %v3477_v6 = vmul.f32 %v5606_v49, %v8386_v24  ;;  %v8476_v53 = vadd.f32 %v1413_v3, %v8348_v17  ;;  %v2135_v37 = vmul.f32 1.442695, %v1769_v9  ;;  %v1303_v14 = vpop.f32.mrf.mxu2 }
 0x322   : > { %v5610_v31 = vpop.eup %5609  ;;  %5617 = vrcp.f32 %v2710_v45  ;;  %v2847_v42 = vadd.f32 1.0, %v5608_v59  ;;  %v1416_v24 = vpop.f32.mrf.mxu3  ;;  %v8482_v20 = vadd.f32 %v1116_v23, %v7776_v57 }
 0x323   : > { %v5612_v22 = vpop.eup %5611  ;;  %v3807_v52 = vadd.f32 %v3806_v39, %v3477_v6  ;;  %v3478_v15 = vmul.f32 %v5610_v31, %v8389_v19  ;;  %5619 = vpow2.f32 %v2117_v61  ;;  %v1770_v40 = vsub.f32 0.0, %v8476_v53  ;;  %v9831_v39 = vld [vmem:[#allocation39_spill] sm:$0xff] }
 0x324   : > { %v5614_v30 = vpop.eup %5613  ;;  %v3349_v44 = vmul.f32 %v5612_v22, %v8392_v1  ;;  %5621 = vrcp.f32 %v2847_v42  ;;  %v8487_v19 = vadd.f32 %v1229_v21, %v7801_v56  ;;  %4783 = vmatmul.msk.f32.gmra.mxu0 %vm475_vm1, %v9831_v39  ;;  %4816 = vmatmul.msk.f32.gmra.mxu1 %vm475_vm1, %v9831_v39  ;;  %v8500_v6 = vadd.f32 %v1303_v14, %v8320_v12 }
 0x325   : > { %v5616_v3 = vpop.eup %5615  ;;  %v8484_v25 = vadd.f32 %v3843_v26, %v3478_v15  ;;  %v2848_v49 = vadd.f32 1.0, %v5614_v30  ;;  %5623 = vpow2.f32 %v2391_v48  ;;  %v2137_v61 = vmul.f32 1.442695, %v1770_v40  ;;  %4736 = vmatmul.msk.f32.gmra.mxu2 %vm475_vm1, %v9814_v54  ;;  %4769 = vmatmul.msk.f32.gmra.mxu3 %vm475_vm1, %v9814_v54 }
 0x326   : > { %v3868_v1 = vadd.f32 %v3867_v34, %v3349_v44  ;;  %v2719_v45 = vadd.f32 1.0, %v5616_v3  ;;  %5625 = vpow2.f32 %v2393_v33  ;;  %v1907_v26 = vsub.f32 0.0, %v8482_v20 }
 0x327   : > { %5627 = vrcp.f32 %v2848_v49  ;;  %v1908_v59 = vsub.f32 0.0, %v8487_v19  ;;  %v8503_v34 = vadd.f32 %v1416_v24, %v8348_v17  ;;  %v1779_v22 = vsub.f32 0.0, %v8500_v6  ;;  %v1119_v14 = vpop.f32.mrf.mxu0 }
 0x328   : > { %v5618_v48 = vpop.eup %5617  ;;  %5629 = vrcp.f32 %v2719_v45  ;;  %v2411_v42 = vmul.f32 1.442695, %v1907_v26  ;;  %v1232_v30 = vpop.f32.mrf.mxu1  ;;  %v8510_v3 = vadd.f32 %v1119_v14, %v7776_v57 }
 0x329   : > { %v5620_v9 = vpop.eup %5619  ;;  %v3350_v31 = vmul.f32 %v5618_v48, %v8395_v43  ;;  %5631 = vpow2.f32 %v2135_v37  ;;  %v2413_v33 = vmul.f32 1.442695, %v1908_v59  ;;  %v1780_v15 = vsub.f32 0.0, %v8503_v34  ;;  %v1306_v43 = vpop.f32.mrf.mxu2 }
 0x32a   : > { %v5622_v23 = vpop.eup %5621  ;;  %v2720_v21 = vadd.f32 1.0, %v5620_v9  ;;  %5633 = vpow2.f32 %v2137_v61  ;;  %v1419_v37 = vpop.f32.mrf.mxu3  ;;  %v2155_v45 = vmul.f32 1.442695, %v1779_v22  ;;  %v1917_v9 = vsub.f32 0.0, %v8510_v3 }
 0x32b   : > { %v5624_v44 = vpop.eup %5623  ;;  %v3905_v40 = vadd.f32 %v3904_v63, %v3350_v31  ;;  %v3487_v24 = vmul.f32 %v5622_v23, %v8419_v16  ;;  %5635 = vpow2.f32 %v2411_v42  ;;  %v2157_v61 = vmul.f32 1.442695, %v1780_v15 }
 0x32c   : > { %v5626_v49 = vpop.eup %5625  ;;  %5637 = vrcp.f32 %v2720_v21  ;;  %v2857_v39 = vadd.f32 1.0, %v5624_v44  ;;  %4784 = vmatmul.msk.f32.gmra.mxu0 %vm475_vm1, %v9755_v18  ;;  %4817 = vmatmul.msk.f32.gmra.mxu1 %vm475_vm1, %v9755_v18  ;;  %v8519_v31 = vadd.f32 %v1232_v30, %v7801_v56  ;;  %v8522_v42 = vadd.f32 %v1306_v43, %v8320_v12 }
 0x32d   : > { %v5628_v26 = vpop.eup %5627  ;;  %v3808_v59 = vadd.f32 %v3807_v52, %v3487_v24  ;;  %v2858_v48 = vadd.f32 1.0, %v5626_v49  ;;  %5639 = vpow2.f32 %v2413_v33  ;;  %4737 = vmatmul.msk.f32.gmra.mxu2 %vm475_vm1, %v9816_v55  ;;  %4770 = vmatmul.msk.f32.gmra.mxu3 %vm475_vm1, %v9816_v55  ;;  %v2431_v18 = vmul.f32 1.442695, %v1917_v9 }
 0x32e   : > { %v5630_v16 = vpop.eup %5629  ;;  %v3488_v63 = vmul.f32 %v5628_v26, %v8426_v60  ;;  %5641 = vrcp.f32 %v2857_v39  ;;  %v8530_v60 = vadd.f32 %v1419_v37, %v8348_v17  ;;  %v1918_v15 = vsub.f32 0.0, %v8519_v31 }
 0x32f   : > { %v5632_v52 = vpop.eup %5631  ;;  %v3359_v33 = vmul.f32 %v5630_v16, %v8436_v8  ;;  %5643 = vrcp.f32 %v2858_v48  ;;  %v1789_v24 = vsub.f32 0.0, %v8522_v42  ;;  %v1122_v39 = vpop.f32.mrf.mxu0 }
 0x330   : > { %v5634_v23 = vpop.eup %5633  ;;  %v3845_v21 = vadd.f32 %v8484_v25, %v3488_v63  ;;  %v2729_v22 = vadd.f32 1.0, %v5632_v52  ;;  %5645 = vpow2.f32 %v2155_v45  ;;  %v2433_v49 = vmul.f32 1.442695, %v1918_v15  ;;  %v1235_v26 = vpop.f32.mrf.mxu1 }
 0x331   : > { %v5636_v14 = vpop.eup %5635  ;;  %v3869_v30 = vadd.f32 %v3868_v1, %v3359_v33  ;;  %v2730_v44 = vadd.f32 1.0, %v5634_v23  ;;  %5647 = vpow2.f32 %v2157_v61  ;;  %v1790_v37 = vsub.f32 0.0, %v8530_v60  ;;  %v1309_v1 = vpop.f32.mrf.mxu2 }
 0x332   : > { %v5638_v43 = vpop.eup %5637  ;;  %5649 = vrcp.f32 %v2729_v22  ;;  %v2867_v8 = vadd.f32 1.0, %v5636_v14  ;;  %v2175_v45 = vmul.f32 1.442695, %v1789_v24  ;;  %v8538_v9 = vadd.f32 %v1122_v39, %v7776_v57  ;;  %v1422_v61 = vpop.f32.mrf.mxu3 }
 0x333   : > { %v5640_v48 = vpop.eup %5639  ;;  %v3360_v25 = vmul.f32 %v5638_v43, %v8446_v46  ;;  %5651 = vrcp.f32 %v2730_v44  ;;  %v2177_v52 = vmul.f32 1.442695, %v1790_v37  ;;  %v8541_v33 = vadd.f32 %v1235_v26, %v7801_v56 }
 0x334   : > { %v5642_v16 = vpop.eup %5641  ;;  %5653 = vrcp.f32 %v2867_v8  ;;  %v2868_v63 = vadd.f32 1.0, %v5640_v48  ;;  %v1927_v46 = vsub.f32 0.0, %v8538_v9  ;;  %4785 = vmatmul.msk.f32.gmra.mxu0 %vm475_vm1, %v9792_v36  ;;  %4818 = vmatmul.msk.f32.gmra.mxu1 %vm475_vm1, %v9792_v36  ;;  %v8552_v43 = vadd.f32 %v1309_v1, %v8320_v12 }
 0x335   : > { %v5644_v23 = vpop.eup %5643  ;;  %v3906_v22 = vadd.f32 %v3905_v40, %v3360_v25  ;;  %v3497_v15 = vmul.f32 %v5642_v16, %v8449_v47  ;;  %5655 = vpow2.f32 %v2431_v18  ;;  %v1928_v24 = vsub.f32 0.0, %v8541_v33  ;;  %4738 = vmatmul.msk.f32.gmra.mxu2 %vm475_vm1, %v9817_v11  ;;  %4771 = vmatmul.msk.f32.gmra.mxu3 %vm475_vm1, %v9817_v11 }
 0x336   : > { %v5646_v14 = vpop.eup %5645  ;;  %v3498_v44 = vmul.f32 %v5644_v23, %v8452_v62  ;;  %5657 = vrcp.f32 %v2868_v63  ;;  %v2451_v36 = vmul.f32 1.442695, %v1927_v46  ;;  %v1799_v25 = vsub.f32 0.0, %v8552_v43 }
 0x337   : > { %v5648_v47 = vpop.eup %5647  ;;  %v3809_v40 = vadd.f32 %v3808_v59, %v3497_v15  ;;  %v2739_v18 = vadd.f32 1.0, %v5646_v14  ;;  %5659 = vpow2.f32 %v2433_v49  ;;  %v2453_v39 = vmul.f32 1.442695, %v1928_v24  ;;  %v1125_v49 = vpop.f32.mrf.mxu0 }
 0x338   : > { %v5650_v8 = vpop.eup %5649  ;;  %v3846_v37 = vadd.f32 %v3845_v21, %v3498_v44  ;;  %v2740_v62 = vadd.f32 1.0, %v5648_v47  ;;  %5661 = vpow2.f32 %v2175_v45  ;;  %v8561_v1 = vadd.f32 %v1422_v61, %v8348_v17  ;;  %v1238_v63 = vpop.f32.mrf.mxu1 }
 0x339   : > { %v5652_v26 = vpop.eup %5651  ;;  %v3369_v48 = vmul.f32 %v5650_v8, %v8456_v32  ;;  %5663 = vrcp.f32 %v2739_v18  ;;  %v2195_v15 = vmul.f32 1.442695, %v1799_v25  ;;  %v1312_v46 = vpop.f32.mrf.mxu2  ;;  %v8568_v8 = vadd.f32 %v1125_v49, %v7776_v57 }
 0x33a   : > { %v5654_v16 = vpop.eup %5653  ;;  %v3370_v59 = vmul.f32 %v5652_v26, %v8476_v53  ;;  %5665 = vrcp.f32 %v2740_v62  ;;  %v1425_v32 = vpop.f32.mrf.mxu3  ;;  %v1800_v61 = vsub.f32 0.0, %v8561_v1 }
 0x33b   : > { %v5656_v23 = vpop.eup %5655  ;;  %v3870_v21 = vadd.f32 %v3869_v30, %v3369_v48  ;;  %v3507_v45 = vmul.f32 %v5654_v16, %v8482_v20  ;;  %5667 = vpow2.f32 %v2177_v52  ;;  %v9832_v30 = vld [vmem:[#allocation42_spill] sm:$0xff]  ;;  %v8585_v16 = vadd.f32 %v1312_v46, %v8320_v12 }
 0x33c   : > { %v5658_v14 = vpop.eup %5657  ;;  %v3907_v44 = vadd.f32 %v3906_v22, %v3370_v59  ;;  %v2877_v24 = vadd.f32 1.0, %v5656_v23  ;;  %5669 = vpow2.f32 %v2451_v36  ;;  %4786 = vmatmul.msk.f32.gmra.mxu0 %vm475_vm1, %v9832_v30  ;;  %4819 = vmatmul.msk.f32.gmra.mxu1 %vm475_vm1, %v9832_v30  ;;  %v2197_v22 = vmul.f32 1.442695, %v1800_v61 }
 0x33d   : > { %v5660_v47 = vpop.eup %5659  ;;  %v3810_v18 = vadd.f32 %v3809_v40, %v3507_v45  ;;  %v3508_v53 = vmul.f32 %v5658_v14, %v8487_v19  ;;  %5671 = vpow2.f32 %v2453_v39  ;;  %v8575_v36 = vadd.f32 %v1238_v63, %v7801_v56  ;;  %4739 = vmatmul.msk.f32.gmra.mxu2 %vm475_vm1, %v9819_v50  ;;  %4772 = vmatmul.msk.f32.gmra.mxu3 %vm475_vm1, %v9819_v50 }
 0x33e   : > { %v5662_v20 = vpop.eup %5661  ;;  %5673 = vrcp.f32 %v2877_v24  ;;  %v2878_v52 = vadd.f32 1.0, %v5660_v47  ;;  %v1937_v39 = vsub.f32 0.0, %v8568_v8  ;;  %v1809_v46 = vsub.f32 0.0, %v8585_v16 }
 0x33f   : > { %v5664_v19 = vpop.eup %5663  ;;  %v3847_v40 = vadd.f32 %v3846_v37, %v3508_v53  ;;  %v2749_v62 = vadd.f32 1.0, %v5662_v20  ;;  %5675 = vpow2.f32 %v2195_v15  ;;  %v1938_v25 = vsub.f32 0.0, %v8575_v36 }
 0x340   : > { %v5666_v26 = vpop.eup %5665  ;;  %v3379_v48 = vmul.f32 %v5664_v19, %v8500_v6  ;;  %5677 = vrcp.f32 %v2878_v52  ;;  %v2471_v63 = vmul.f32 1.442695, %v1937_v39  ;;  %v8589_v37 = vadd.f32 %v1425_v32, %v8348_v17  ;;  %v1128_v6 = vpop.f32.mrf.mxu0  ;;  %v9833_v39 = vld [vmem:[#allocation43_spill] sm:$0xff] }
 0x341   : > { %v5668_v59 = vpop.eup %5667  ;;  %v3380_v49 = vmul.f32 %v5666_v26, %v8503_v34  ;;  %5679 = vrcp.f32 %v2749_v62  ;;  %v2473_v14 = vmul.f32 1.442695, %v1938_v25  ;;  %v1241_v24 = vpop.f32.mrf.mxu1  ;;  %v2215_v62 = vmul.f32 1.442695, %v1809_v46 }
 0x342   : > { %v5670_v23 = vpop.eup %5669  ;;  %v3871_v45 = vadd.f32 %v3870_v21, %v3379_v48  ;;  %v2750_v15 = vadd.f32 1.0, %v5668_v59  ;;  %5681 = vpow2.f32 %v2197_v22  ;;  %v1315_v30 = vpop.f32.mrf.mxu2  ;;  %v1810_v32 = vsub.f32 0.0, %v8589_v37 }
 0x343   : > { %v5672_v61 = vpop.eup %5671  ;;  %v3908_v47 = vadd.f32 %v3907_v44, %v3380_v49  ;;  %v2887_v53 = vadd.f32 1.0, %v5670_v23  ;;  %5683 = vpow2.f32 %v2471_v63  ;;  %v1428_v34 = vpop.f32.mrf.mxu3  ;;  %v8594_v21 = vadd.f32 %v1128_v6, %v7776_v57 }
 0x344   : > { %v5674_v20 = vpop.eup %5673  ;;  %5685 = vrcp.f32 %v2750_v15  ;;  %v2888_v52 = vadd.f32 1.0, %v5672_v61  ;;  %v8598_v44 = vadd.f32 %v1241_v24, %v7801_v56  ;;  %4787 = vmatmul.msk.f32.gmra.mxu0 %vm475_vm1, %v9833_v39  ;;  %4820 = vmatmul.msk.f32.gmra.mxu1 %vm475_vm1, %v9833_v39  ;;  %v2217_v25 = vmul.f32 1.442695, %v1810_v32 }
 0x345   : > { %v5676_v22 = vpop.eup %5675  ;;  %v3517_v19 = vmul.f32 %v5674_v20, %v8510_v3  ;;  %5687 = vrcp.f32 %v2887_v53  ;;  %v1947_v59 = vsub.f32 0.0, %v8594_v21  ;;  %4740 = vmatmul.msk.f32.gmra.mxu2 %vm475_vm1, %v9820_v27  ;;  %4773 = vmatmul.msk.f32.gmra.mxu3 %vm475_vm1, %v9820_v27  ;;  %v8613_v61 = vadd.f32 %v1315_v30, %v8320_v12 }
 0x346   : > { %v5678_v26 = vpop.eup %5677  ;;  %5689 = vrcp.f32 %v2888_v52  ;;  %v2759_v48 = vadd.f32 1.0, %v5676_v22  ;;  %v1948_v23 = vsub.f32 0.0, %v8598_v44  ;;  %v8618_v30 = vadd.f32 %v1428_v34, %v8348_v17 }
 0x347   : > { %v5680_v3 = vpop.eup %5679  ;;  %v3811_v49 = vadd.f32 %v3810_v18, %v3517_v19  ;;  %v3518_v63 = vmul.f32 %v5678_v26, %v8519_v31  ;;  %5691 = vpow2.f32 %v2473_v14  ;;  %v2491_v24 = vmul.f32 1.442695, %v1947_v59 }
 0x348   : > { %v5682_v15 = vpop.eup %5681  ;;  %v3389_v6 = vmul.f32 %v5680_v3, %v8522_v42  ;;  %5693 = vrcp.f32 %v2759_v48  ;;  %v2493_v52 = vmul.f32 1.442695, %v1948_v23  ;;  %v1819_v31 = vsub.f32 0.0, %v8613_v61  ;;  %v1131_v14 = vpop.f32.mrf.mxu0  ;;  %v9834_v23 = vld [vmem:[#allocation44_spill] sm:$0xff] }
 0x349   : > { %v5684_v53 = vpop.eup %5683  ;;  %v3848_v46 = vadd.f32 %v3847_v40, %v3518_v63  ;;  %v2760_v20 = vadd.f32 1.0, %v5682_v15  ;;  %5695 = vpow2.f32 %v2215_v62  ;;  %v1244_v19 = vpop.f32.mrf.mxu1  ;;  %v8621_v40 = vadd.f32 %v1131_v14, %v7776_v57 }
 0x34a   : > { %v5686_v32 = vpop.eup %5685  ;;  %v3872_v18 = vadd.f32 %v3871_v45, %v3389_v6  ;;  %v2897_v22 = vadd.f32 1.0, %v5684_v53  ;;  %5697 = vpow2.f32 %v2217_v25  ;;  %v1318_v62 = vpop.f32.mrf.mxu2  ;;  %v2235_v25 = vmul.f32 1.442695, %v1819_v31 }
 0x34b   : > { %v5688_v39 = vpop.eup %5687  ;;  %v3390_v42 = vmul.f32 %v5686_v32, %v8530_v60  ;;  %5699 = vrcp.f32 %v2760_v20  ;;  %v1431_v26 = vpop.f32.mrf.mxu3  ;;  %v8625_v59 = vadd.f32 %v1244_v19, %v7801_v56  ;;  %v1820_v34 = vsub.f32 0.0, %v8618_v30 }
 0x34c   : > { %v5690_v48 = vpop.eup %5689  ;;  %v3527_v45 = vmul.f32 %v5688_v39, %v8538_v9  ;;  %5701 = vrcp.f32 %v2897_v22  ;;  %4788 = vmatmul.msk.f32.gmra.mxu0 %vm475_vm1, %v9834_v23  ;;  %4821 = vmatmul.msk.f32.gmra.mxu1 %vm475_vm1, %v9834_v23  ;;  %v1957_v53 = vsub.f32 0.0, %v8621_v40  ;;  %v8643_v39 = vadd.f32 %v1318_v62, %v8320_v12 }
 0x34d   : > { %v5692_v3 = vpop.eup %5691  ;;  %v3909_v63 = vadd.f32 %v3908_v47, %v3390_v42  ;;  %v3528_v60 = vmul.f32 %v5690_v48, %v8541_v33  ;;  %5703 = vpow2.f32 %v2491_v24  ;;  %4741 = vmatmul.msk.f32.gmra.mxu2 %vm475_vm1, %v9821_v38  ;;  %4774 = vmatmul.msk.f32.gmra.mxu3 %vm475_vm1, %v9821_v38  ;;  %v2237_v20 = vmul.f32 1.442695, %v1820_v34 }
 0x34e   : > { %v5694_v15 = vpop.eup %5693  ;;  %v3812_v9 = vadd.f32 %v3811_v49, %v3527_v45  ;;  %v2898_v6 = vadd.f32 1.0, %v5692_v3  ;;  %5705 = vpow2.f32 %v2493_v52  ;;  %v2511_v49 = vmul.f32 1.442695, %v1957_v53 }
 0x34f   : > { %v5696_v33 = vpop.eup %5695  ;;  %v3849_v47 = vadd.f32 %v3848_v46, %v3528_v60  ;;  %v3399_v24 = vmul.f32 %v5694_v15, %v8552_v43  ;;  %5707 = vpow2.f32 %v2235_v25  ;;  %v1958_v52 = vsub.f32 0.0, %v8625_v59 }
 0x350   : > { %v5698_v32 = vpop.eup %5697  ;;  %5709 = vrcp.f32 %v2898_v6  ;;  %v2769_v22 = vadd.f32 1.0, %v5696_v33  ;;  %v8647_v48 = vadd.f32 %v1431_v26, %v8348_v17  ;;  %v1134_v45 = vpop.f32.mrf.mxu0 }
 0x351   : > { %v5700_v31 = vpop.eup %5699  ;;  %v8640_v14 = vadd.f32 %v3872_v18, %v3399_v24  ;;  %v2770_v19 = vadd.f32 1.0, %v5698_v32  ;;  %5711 = vpow2.f32 %v2237_v20  ;;  %v2513_v43 = vmul.f32 1.442695, %v1958_v52  ;;  %v1247_v25 = vpop.f32.mrf.mxu1  ;;  %v9835_v20 = vld [vmem:[#allocation45_spill] sm:$0xff] }
 0x352   : > { %v5702_v42 = vpop.eup %5701  ;;  %v3400_v46 = vmul.f32 %v5700_v31, %v8561_v1  ;;  %5713 = vrcp.f32 %v2769_v22  ;;  %v1829_v18 = vsub.f32 0.0, %v8643_v39  ;;  %v8652_v34 = vadd.f32 %v1134_v45, %v7776_v57  ;;  %v1321_v62 = vpop.f32.mrf.mxu2 }
 0x353   : > { %v5704_v3 = vpop.eup %5703  ;;  %v3537_v60 = vmul.f32 %v5702_v42, %v8568_v8  ;;  %5715 = vrcp.f32 %v2770_v19  ;;  %v1434_v23 = vpop.f32.mrf.mxu3  ;;  %v1830_v26 = vsub.f32 0.0, %v8647_v48  ;;  %v8668_v31 = vadd.f32 %v1247_v25, %v7801_v56 }
 0x354   : > { %v5706_v15 = vpop.eup %5705  ;;  %v8654_v1 = vadd.f32 %v3909_v63, %v3400_v46  ;;  %v2907_v6 = vadd.f32 1.0, %v5704_v3  ;;  %5717 = vpow2.f32 %v2511_v49  ;;  %v2255_v8 = vmul.f32 1.442695, %v1829_v18  ;;  %4789 = vmatmul.msk.f32.gmra.mxu0 %vm475_vm1, %v9835_v20  ;;  %4822 = vmatmul.msk.f32.gmra.mxu1 %vm475_vm1, %v9835_v20 }
 0x355   : > { %v5708_v53 = vpop.eup %5707  ;;  %v3813_v33 = vadd.f32 %v3812_v9, %v3537_v60  ;;  %v2908_v24 = vadd.f32 1.0, %v5706_v15  ;;  %5719 = vpow2.f32 %v2513_v43  ;;  %v2257_v63 = vmul.f32 1.442695, %v1830_v26  ;;  %4742 = vmatmul.msk.f32.gmra.mxu2 %vm475_vm1, %v9824_v29  ;;  %4775 = vmatmul.msk.f32.gmra.mxu3 %vm475_vm1, %v9824_v29 }
 0x356   : > { %v5710_v32 = vpop.eup %5709  ;;  %5721 = vrcp.f32 %v2907_v6  ;;  %v2779_v22 = vadd.f32 1.0, %v5708_v53  ;;  %v1967_v52 = vsub.f32 0.0, %v8652_v34  ;;  %v8671_v19 = vadd.f32 %v1321_v62, %v8320_v12 }
 0x357   : > { %v5712_v9 = vpop.eup %5711  ;;  %v3538_v49 = vmul.f32 %v5710_v32, %v8575_v36  ;;  %5723 = vrcp.f32 %v2908_v24  ;;  %v8674_v45 = vadd.f32 %v1434_v23, %v8348_v17  ;;  %v1968_v36 = vsub.f32 0.0, %v8668_v31 }
 0x358   : > { %v5714_v42 = vpop.eup %5713  ;;  %5725 = vrcp.f32 %v2779_v22  ;;  %v2780_v46 = vadd.f32 1.0, %v5712_v9  ;;  %v2531_v43 = vmul.f32 1.442695, %v1967_v52  ;;  %v1839_v25 = vsub.f32 0.0, %v8671_v19  ;;  %v1137_v6 = vpop.f32.mrf.mxu0 }
 0x359   : > { %v5716_v3 = vpop.eup %5715  ;;  %v3850_v60 = vadd.f32 %v3849_v47, %v3538_v49  ;;  %v3409_v18 = vmul.f32 %v5714_v42, %v8585_v16  ;;  %5727 = vpow2.f32 %v2255_v8  ;;  %v1840_v62 = vsub.f32 0.0, %v8674_v45  ;;  %v1250_v26 = vpop.f32.mrf.mxu1 }
 0x35a   : > { %v5718_v15 = vpop.eup %5717  ;;  %5729 = vrcp.f32 %v2780_v46  ;;  %v3410_v24 = vmul.f32 %v5716_v3, %v8589_v37  ;;  %v2533_v20 = vmul.f32 1.442695, %v1968_v36  ;;  %v1324_v47 = vpop.f32.mrf.mxu2  ;;  %v2275_v52 = vmul.f32 1.442695, %v1839_v25 }
 0x35b   : > { %v5720_v53 = vpop.eup %5719  ;;  %v2917_v23 = vadd.f32 1.0, %v5718_v15  ;;  %5731 = vpow2.f32 %v2257_v63  ;;  %v1437_v32 = vpop.f32.mrf.mxu3  ;;  %v3874_v8 = vadd.f32 %v8640_v14, %v3409_v18  ;;  %v2277_v42 = vmul.f32 1.442695, %v1840_v62 }
 0x35c   : > { %v5722_v16 = vpop.eup %5721  ;;  %v2918_v22 = vadd.f32 1.0, %v5720_v53  ;;  %5733 = vpow2.f32 %v2531_v43  ;;  %v8684_v46 = vadd.f32 %v1137_v6, %v7776_v57  ;;  %4790 = vmatmul.msk.f32.gmra.mxu0 %vm475_vm1, %v9781_v41  ;;  %4823 = vmatmul.msk.f32.gmra.mxu1 %vm475_vm1, %v9781_v41  ;;  %v8692_v63 = vadd.f32 %v1250_v26, %v7801_v56 }
 0x35d   : > { %v5724_v9 = vpop.eup %5723  ;;  %v3547_v49 = vmul.f32 %v5722_v16, %v8594_v21  ;;  %5735 = vrcp.f32 %v2917_v23  ;;  %v8695_v21 = vadd.f32 %v1324_v47, %v8320_v12  ;;  %4743 = vmatmul.msk.f32.gmra.mxu2 %vm475_vm1, %v9825_v58  ;;  %4776 = vmatmul.msk.f32.gmra.mxu3 %vm475_vm1, %v9825_v58  ;;  %v3911_v6 = vadd.f32 %v8654_v1, %v3410_v24 }
 0x35e   : > { %v5726_v37 = vpop.eup %5725  ;;  %v3548_v14 = vmul.f32 %v5724_v9, %v8598_v44  ;;  %5737 = vrcp.f32 %v2918_v22  ;;  %v1977_v44 = vsub.f32 0.0, %v8684_v46  ;;  %v1978_v25 = vsub.f32 0.0, %v8692_v63 }
 0x35f   : > { %v5728_v43 = vpop.eup %5727  ;;  %v3814_v3 = vadd.f32 %v3813_v33, %v3547_v49  ;;  %v3419_v41 = vmul.f32 %v5726_v37, %v8613_v61  ;;  %5739 = vpow2.f32 %v2533_v20  ;;  %v1849_v61 = vsub.f32 0.0, %v8695_v21 }
 0x360   : > { %v5730_v18 = vpop.eup %5729  ;;  %v3851_v36 = vadd.f32 %v3850_v60, %v3548_v14  ;;  %v2789_v15 = vadd.f32 1.0, %v5728_v43  ;;  %5741 = vpow2.f32 %v2275_v52  ;;  %v2551_v53 = vmul.f32 1.442695, %v1977_v44  ;;  %v1140_v20 = vpop.f32.mrf.mxu0 }
 0x361   : > { %v5732_v62 = vpop.eup %5731  ;;  %v3875_v26 = vadd.f32 %v3874_v8, %v3419_v41  ;;  %5743 = vpow2.f32 %v2277_v42  ;;  %v2553_v47 = vmul.f32 1.442695, %v1978_v25  ;;  %v1253_v16 = vpop.f32.mrf.mxu1  ;;  %v3420_v60 = vmul.f32 %v5730_v18, %v8618_v30 }
 0x362   : > { %v5734_v23 = vpop.eup %5733  ;;  %5745 = vrcp.f32 %v2789_v15  ;;  %v2790_v33 = vadd.f32 1.0, %v5732_v62  ;;  %v8708_v9 = vadd.f32 %v1437_v32, %v8348_v17  ;;  %v1327_v1 = vpop.f32.mrf.mxu2  ;;  %v2295_v42 = vmul.f32 1.442695, %v1849_v61 }
 0x363   : > { %v5736_v22 = vpop.eup %5735  ;;  %v2927_v52 = vadd.f32 1.0, %v5734_v23  ;;  %5747 = vpow2.f32 %v2551_v53  ;;  %v1440_v24 = vpop.f32.mrf.mxu3  ;;  %v8712_v37 = vadd.f32 %v1140_v20, %v7776_v57  ;;  %v8717_v41 = vadd.f32 %v1253_v16, %v7801_v56 }
 0x364   : > { %v5738_v8 = vpop.eup %5737  ;;  %v3557_v49 = vmul.f32 %v5736_v22, %v8621_v40  ;;  %5749 = vrcp.f32 %v2790_v33  ;;  %v1850_v30 = vsub.f32 0.0, %v8708_v9  ;;  %4791 = vmatmul.msk.f32.gmra.mxu0 %vm475_vm1, %v9818_v2  ;;  %4824 = vmatmul.msk.f32.gmra.mxu1 %vm475_vm1, %v9818_v2 }
 0x365   : > { %v5740_v14 = vpop.eup %5739  ;;  %v3558_v43 = vmul.f32 %v5738_v8, %v8625_v59  ;;  %5751 = vrcp.f32 %v2927_v52  ;;  %v1987_v18 = vsub.f32 0.0, %v8712_v37  ;;  %v1988_v61 = vsub.f32 0.0, %v8717_v41 }
 0x366   : > { %v5742_v40 = vpop.eup %5741  ;;  %v3815_v32 = vadd.f32 %v3814_v3, %v3557_v49  ;;  %v2928_v44 = vadd.f32 1.0, %v5740_v14  ;;  %5753 = vpow2.f32 %v2553_v47  ;;  %v2297_v62 = vmul.f32 1.442695, %v1850_v30 }
 0x367   : > { %v5744_v15 = vpop.eup %5743  ;;  %v3852_v59 = vadd.f32 %v3851_v36, %v3558_v43  ;;  %v2799_v25 = vadd.f32 1.0, %v5742_v40  ;;  %5755 = vpow2.f32 %v2295_v42  ;;  %v2571_v33 = vmul.f32 1.442695, %v1987_v18 }
 0x368   : > { %v5746_v53 = vpop.eup %5745  ;;  %5757 = vrcp.f32 %v2928_v44  ;;  %v2800_v23 = vadd.f32 1.0, %v5744_v15  ;;  %v8727_v3 = vadd.f32 %v1327_v1, %v8320_v12  ;;  %v8730_v47 = vadd.f32 %v1440_v24, %v8348_v17  ;;  %v1143_v52 = vpop.f32.mrf.mxu0 }
 0x369   : > { %v5748_v20 = vpop.eup %5747  ;;  %v3429_v2 = vmul.f32 %v5746_v53, %v8643_v39  ;;  %5759 = vrcp.f32 %v2799_v25  ;;  %v2573_v22 = vmul.f32 1.442695, %v1988_v61  ;;  %v1256_v8 = vpop.f32.mrf.mxu1  ;;  %v3912_v42 = vadd.f32 %v3911_v6, %v3420_v60 }
 0x36a   : > { %v5750_v36 = vpop.eup %5749  ;;  %5761 = vrcp.f32 %v2800_v23  ;;  %v2937_v16 = vadd.f32 1.0, %v5748_v20  ;;  %v1859_v43 = vsub.f32 0.0, %v8727_v3  ;;  %v1330_v39 = vpop.f32.mrf.mxu2  ;;  %v1860_v24 = vsub.f32 0.0, %v8730_v47 }
 0x36b   : > { %v5752_v49 = vpop.eup %5751  ;;  %v3876_v14 = vadd.f32 %v3875_v26, %v3429_v2  ;;  %5763 = vpow2.f32 %v2297_v62  ;;  %v1443_v30 = vpop.f32.mrf.mxu3  ;;  %v8736_v44 = vadd.f32 %v1143_v52, %v7776_v57  ;;  %v3430_v15 = vmul.f32 %v5750_v36, %v8647_v48  ;;  %v9836_v26 = vld [vmem:[#allocation52_spill] sm:$0xff] }
 0x36c   : > { %v5754_v40 = vpop.eup %5753  ;;  %v3567_v1 = vmul.f32 %v5752_v49, %v8652_v34  ;;  %5765 = vrcp.f32 %v2937_v16  ;;  %v2315_v6 = vmul.f32 1.442695, %v1859_v43  ;;  %4792 = vmatmul.msk.f32.gmra.mxu0 %vm475_vm1, %v9836_v26  ;;  %4825 = vmatmul.msk.f32.gmra.mxu1 %vm475_vm1, %v9836_v26  ;;  %v2317_v53 = vmul.f32 1.442695, %v1860_v24 }
 0x36d   : > { %v5756_v18 = vpop.eup %5755  ;;  %v2938_v25 = vadd.f32 1.0, %v5754_v40  ;;  %5767 = vpow2.f32 %v2571_v33  ;;  %v1997_v48 = vsub.f32 0.0, %v8736_v44  ;;  %v8746_v33 = vadd.f32 %v1256_v8, %v7801_v56 }
 0x36e   : > { %v5758_v60 = vpop.eup %5757  ;;  %v3816_v34 = vadd.f32 %v3815_v32, %v3567_v1  ;;  %v2809_v62 = vadd.f32 1.0, %v5756_v18  ;;  %5769 = vpow2.f32 %v2573_v22  ;;  %v8750_v36 = vadd.f32 %v1330_v39, %v8320_v12 }
 0x36f   : > { %v5760_v23 = vpop.eup %5759  ;;  %v3568_v61 = vmul.f32 %v5758_v60, %v8668_v31  ;;  %5771 = vrcp.f32 %v2938_v25  ;;  %v8753_v32 = vadd.f32 %v1443_v30, %v8348_v17  ;;  %v3913_v22 = vadd.f32 %v3912_v42, %v3430_v15 }
 0x370   : > { %v5762_v20 = vpop.eup %5761  ;;  %v3439_v2 = vmul.f32 %v5760_v23, %v8671_v19  ;;  %5773 = vrcp.f32 %v2809_v62  ;;  %v2591_v31 = vmul.f32 1.442695, %v1997_v48  ;;  %v1998_v40 = vsub.f32 0.0, %v8746_v33  ;;  %v1146_v19 = vpop.f32.mrf.mxu0 }
 0x371   : > { %v5764_v16 = vpop.eup %5763  ;;  %v3853_v52 = vadd.f32 %v3852_v59, %v3568_v61  ;;  %5775 = vpow2.f32 %v2315_v6  ;;  %v3440_v43 = vmul.f32 %v5762_v20, %v8674_v45  ;;  %v1259_v1 = vpop.f32.mrf.mxu1  ;;  %v1869_v30 = vsub.f32 0.0, %v8750_v36 }
 0x372   : > { %v5766_v49 = vpop.eup %5765  ;;  %v2810_v8 = vadd.f32 1.0, %v5764_v16  ;;  %5777 = vpow2.f32 %v2317_v53  ;;  %v3877_v39 = vadd.f32 %v3876_v14, %v3439_v2  ;;  %v1333_v42 = vpop.f32.mrf.mxu2  ;;  %v2593_v6 = vmul.f32 1.442695, %v1998_v40  ;;  %v9837_v14 = vld [vmem:[#allocation56_spill] sm:$0xff] }
 0x373   : > { %v5768_v24 = vpop.eup %5767  ;;  %v3577_v18 = vmul.f32 %v5766_v49, %v8684_v46  ;;  %5779 = vpow2.f32 %v2591_v31  ;;  %v1446_v59 = vpop.f32.mrf.mxu3  ;;  %v1870_v45 = vsub.f32 0.0, %v8753_v32  ;;  %v2335_v53 = vmul.f32 1.442695, %v1869_v30 }
 0x374   : > { %v5770_v15 = vpop.eup %5769  ;;  %5781 = vrcp.f32 %v2810_v8  ;;  %v2947_v25 = vadd.f32 1.0, %v5768_v24  ;;  %v8761_v23 = vadd.f32 %v1146_v19, %v7776_v57  ;;  %4793 = vmatmul.msk.f32.gmra.mxu0 %vm475_vm1, %v9837_v14  ;;  %4826 = vmatmul.msk.f32.gmra.mxu1 %vm475_vm1, %v9837_v14  ;;  %v8767_v61 = vadd.f32 %v3913_v22, %v3440_v43 }
 0x375   : > { %v5772_v26 = vpop.eup %5771  ;;  %v3817_v60 = vadd.f32 %v3816_v34, %v3577_v18  ;;  %v2948_v62 = vadd.f32 1.0, %v5770_v15  ;;  %v8771_v20 = vadd.f32 %v1259_v1, %v7801_v56  ;;  %v8776_v31 = vadd.f32 %v1333_v42, %v8320_v12 }
 0x376   : > { %v5774_v46 = vpop.eup %5773  ;;  %v3578_v48 = vmul.f32 %v5772_v26, %v8692_v63  ;;  %5783 = vrcp.f32 %v2947_v25  ;;  %v2007_v16 = vsub.f32 0.0, %v8761_v23  ;;  %v2337_v1 = vmul.f32 1.442695, %v1870_v45 }
 0x377   : > { %v5776_v34 = vpop.eup %5775  ;;  %v3449_v2 = vmul.f32 %v5774_v46, %v8695_v21  ;;  %5785 = vrcp.f32 %v2948_v62  ;;  %v2008_v22 = vsub.f32 0.0, %v8771_v20  ;;  %v1879_v30 = vsub.f32 0.0, %v8776_v31 }
 0x378   : > { %v5778_v49 = vpop.eup %5777  ;;  %v3854_v8 = vadd.f32 %v3853_v52, %v3578_v48  ;;  %v2819_v40 = vadd.f32 1.0, %v5776_v34  ;;  %5787 = vpow2.f32 %v2593_v6  ;;  %v2611_v18 = vmul.f32 1.442695, %v2007_v16  ;;  %v1149_v15 = vpop.f32.mrf.mxu0 }
 0x379   : > { %v5780_v63 = vpop.eup %5779  ;;  %v3878_v43 = vadd.f32 %v3877_v39, %v3449_v2  ;;  %v2820_v19 = vadd.f32 1.0, %v5778_v49  ;;  %5789 = vpow2.f32 %v2335_v53  ;;  %v1262_v42 = vpop.f32.mrf.mxu1  ;;  %v2613_v25 = vmul.f32 1.442695, %v2008_v22 }
 0x37a   : > { %v5782_v24 = vpop.eup %5781  ;;  %5791 = vrcp.f32 %v2819_v40  ;;  %v2957_v21 = vadd.f32 1.0, %v5780_v63  ;;  %v8781_v52 = vadd.f32 %v1446_v59, %v8348_v17  ;;  %v8784_v6 = vadd.f32 %v1149_v15, %v7776_v57  ;;  %v1336_v39 = vpop.f32.mrf.mxu2 }
 0x37b   : > { %5793 = vrcp.f32 %v2820_v19  ;;  %v3450_v45 = vmul.f32 %v5782_v24, %v8708_v9  ;;  %v2355_v62 = vmul.f32 1.442695, %v1879_v30  ;;  %v8788_v53 = vadd.f32 %v1262_v42, %v7801_v56  ;;  %v1449_v14 = vpop.f32.mrf.mxu3 }
 0x37c   : > { %v5784_v26 = vpop.eup %5783  ;;  %5795 = vrcp.f32 %v2957_v21  ;;  %v1880_v59 = vsub.f32 0.0, %v8781_v52  ;;  %v8793_v34 = vadd.f32 %v1336_v39, %v8320_v12  ;;  %4794 = vmatmul.msk.f32.gmra.mxu0 %vm475_vm1, %v9786_v0  ;;  %4827 = vmatmul.msk.f32.gmra.mxu1 %vm475_vm1, %v9786_v0  ;;  %v2017_v16 = vsub.f32 0.0, %v8784_v6 }
 0x37d   : > { %v5786_v46 = vpop.eup %5785  ;;  %v3587_v48 = vmul.f32 %v5784_v26, %v8712_v37  ;;  %5797 = vpow2.f32 %v2337_v1  ;;  %v2018_v37 = vsub.f32 0.0, %v8788_v53  ;;  %v3915_v42 = vadd.f32 %v8767_v61, %v3450_v45 }
 0x37e   : > { %v5788_v9 = vpop.eup %5787  ;;  %v3588_v2 = vmul.f32 %v5786_v46, %v8717_v41  ;;  %5799 = vpow2.f32 %v2611_v18  ;;  %v2357_v63 = vmul.f32 1.442695, %v1880_v59  ;;  %v2631_v21 = vmul.f32 1.442695, %v2017_v16 }
 0x37f   : > { %v5790_v49 = vpop.eup %5789  ;;  %v3818_v40 = vadd.f32 %v3817_v60, %v3587_v48  ;;  %v2958_v22 = vadd.f32 1.0, %v5788_v9  ;;  %5801 = vpow2.f32 %v2613_v25  ;;  %v2633_v41 = vmul.f32 1.442695, %v2018_v37 }
 0x380   : > { %v5792_v19 = vpop.eup %5791  ;;  %v3855_v1 = vadd.f32 %v3854_v8, %v3588_v2  ;;  %v2829_v24 = vadd.f32 1.0, %v5790_v49  ;;  %5803 = vpow2.f32 %v2355_v62  ;;  %v1889_v18 = vsub.f32 0.0, %v8793_v34  ;;  %v1152_v8 = vpop.f32.mrf.mxu0 }
 0x381   : > { %v5794_v30 = vpop.eup %5793  ;;  %v3459_v0 = vmul.f32 %v5792_v19, %v8727_v3  ;;  %5805 = vrcp.f32 %v2958_v22  ;;  %v8807_v25 = vadd.f32 %v1449_v14, %v8348_v17  ;;  %v1265_v46 = vpop.f32.mrf.mxu1  ;;  %v8812_v14 = vadd.f32 %v1152_v8, %v7776_v57 }
 0x382   : > { %v5796_v15 = vpop.eup %5795  ;;  %v3460_v60 = vmul.f32 %v5794_v30, %v8730_v47  ;;  %5807 = vrcp.f32 %v2829_v24  ;;  %v2375_v3 = vmul.f32 1.442695, %v1889_v18  ;;  %v1339_v45 = vpop.f32.mrf.mxu2  ;;  %v8819_v22 = vadd.f32 %v1265_v46, %v7801_v56 }
 0x383   : > { %v5798_v39 = vpop.eup %5797  ;;  %v3879_v26 = vadd.f32 %v3878_v43, %v3459_v0  ;;  %v3597_v62 = vmul.f32 %v5796_v15, %v8736_v44  ;;  %5809 = vpow2.f32 %v2357_v63  ;;  %v1890_v61 = vsub.f32 0.0, %v8807_v25  ;;  %v1452_v43 = vpop.f32.mrf.mxu3 }
 0x384   : > { %v5800_v48 = vpop.eup %5799  ;;  %v3916_v59 = vadd.f32 %v3915_v42, %v3460_v60  ;;  %v2830_v9 = vadd.f32 1.0, %v5798_v39  ;;  %5811 = vpow2.f32 %v2631_v21  ;;  %4795 = vmatmul.msk.f32.gmra.mxu0 %vm475_vm1, %v9787_v4  ;;  %4828 = vmatmul.msk.f32.gmra.mxu1 %vm475_vm1, %v9787_v4  ;;  %v2027_v19 = vsub.f32 0.0, %v8812_v14 }
 0x385   : > { %v5802_v47 = vpop.eup %5801  ;;  %v3819_v2 = vadd.f32 %v3818_v40, %v3597_v62  ;;  %v2967_v16 = vadd.f32 1.0, %v5800_v48  ;;  %5813 = vpow2.f32 %v2633_v41  ;;  %v2377_v49 = vmul.f32 1.442695, %v1890_v61 }
 0x386   : > { %v5804_v44 = vpop.eup %5803  ;;  %5815 = vrcp.f32 %v2830_v9  ;;  %v2968_v37 = vadd.f32 1.0, %v5802_v47  ;;  %v8823_v24 = vadd.f32 %v1339_v45, %v8320_v12  ;;  %v2028_v4 = vsub.f32 0.0, %v8819_v22 }
 0x387   : > { %v5806_v40 = vpop.eup %5805  ;;  %5817 = vrcp.f32 %v2967_v16  ;;  %v2839_v63 = vadd.f32 1.0, %v5804_v44  ;;  %v8828_v0 = vadd.f32 %v1452_v43, %v8348_v17  ;;  %v2651_v39 = vmul.f32 1.442695, %v2027_v19 }
 0x388   : > { %v5808_v21 = vpop.eup %5807  ;;  %v3598_v30 = vmul.f32 %v5806_v40, %v8746_v33  ;;  %5819 = vrcp.f32 %v2968_v37  ;;  %v1899_v15 = vsub.f32 0.0, %v8823_v24  ;;  %v1155_v62 = vpop.f32.mrf.mxu0  ;;  %v2653_v9 = vmul.f32 1.442695, %v2028_v4 }
 0x389   : > { %v5810_v41 = vpop.eup %5809  ;;  %v3469_v18 = vmul.f32 %v5808_v21, %v8750_v36  ;;  %5821 = vrcp.f32 %v2839_v63  ;;  %v1900_v47 = vsub.f32 0.0, %v8828_v0  ;;  %v8834_v36 = vadd.f32 %v1155_v62, %v7776_v57 }
 0x38a   : > { %v5812_v42 = vpop.eup %5811  ;;  %v3856_v60 = vadd.f32 %v3855_v1, %v3598_v30  ;;  %v2840_v8 = vadd.f32 1.0, %v5810_v41  ;;  %5823 = vpow2.f32 %v2375_v3  ;;  %v2395_v3 = vmul.f32 1.442695, %v1899_v15 }
 0x38b   : > { %v5814_v46 = vpop.eup %5813  ;;  %v3880_v33 = vadd.f32 %v3879_v26, %v3469_v18  ;;  %v2977_v48 = vadd.f32 1.0, %v5812_v42  ;;  %5825 = vpow2.f32 %v2377_v49  ;;  %v2397_v44 = vmul.f32 1.442695, %v1900_v47 }
 0x38c   : > { %v5816_v61 = vpop.eup %5815  ;;  %5827 = vrcp.f32 %v2840_v8  ;;  %v2978_v45 = vadd.f32 1.0, %v5814_v46  ;;  %4796 = vmatmul.msk.f32.gmra.mxu0 %vm475_vm1, %v9788_v51  ;;  %4829 = vmatmul.msk.f32.gmra.mxu1 %vm475_vm1, %v9788_v51  ;;  %v2037_v37 = vsub.f32 0.0, %v8834_v36 }
 0x38d   : > { %v5818_v16 = vpop.eup %5817  ;;  %v3470_v1 = vmul.f32 %v5816_v61, %v8753_v32  ;;  %5829 = vrcp.f32 %v2977_v48 }
 0x38e   : > { %v5820_v26 = vpop.eup %5819  ;;  %v3607_v43 = vmul.f32 %v5818_v16, %v8761_v23  ;;  %5831 = vrcp.f32 %v2978_v45  ;;  %v2671_v4 = vmul.f32 1.442695, %v2037_v37 }
 0x38f   : > { %v5822_v57 = vpop.eup %5821  ;;  %v3917_v49 = vadd.f32 %v3916_v59, %v3470_v1  ;;  %v3608_v40 = vmul.f32 %v5820_v26, %v8771_v20  ;;  %5833 = vpow2.f32 %v2651_v39 }
 0x390   : > { %v5824_v32 = vpop.eup %5823  ;;  %v3820_v63 = vadd.f32 %v3819_v2, %v3607_v43  ;;  %v3479_v19 = vmul.f32 %v5822_v57, %v8776_v31  ;;  %5835 = vpow2.f32 %v2653_v9  ;;  %v1342_v57 = vpop.f32.mrf.mxu2 }
 0x391   : > { %v5826_v21 = vpop.eup %5825  ;;  %v3857_v30 = vadd.f32 %v3856_v60, %v3608_v40  ;;  %v2849_v51 = vadd.f32 1.0, %v5824_v32  ;;  %5837 = vpow2.f32 %v2395_v3  ;;  %v1268_v60 = vpop.f32.mrf.mxu1 }
 0x392   : > { %v5828_v23 = vpop.eup %5827  ;;  %v3881_v41 = vadd.f32 %v3880_v33, %v3479_v19  ;;  %v2850_v18 = vadd.f32 1.0, %v5826_v21  ;;  %5839 = vpow2.f32 %v2397_v44  ;;  %v8853_v46 = vadd.f32 %v1268_v60, %v7801_v56  ;;  %v1514_v21 = vpop.f32.mrf.mxu0 }
 0x393   : > { %v5830_v15 = vpop.eup %5829  ;;  %v3480_v59 = vmul.f32 %v5828_v23, %v8781_v52  ;;  %5841 = vrcp.f32 %v2849_v51 }
 0x394   : > { %v5832_v20 = vpop.eup %5831  ;;  %v3617_v42 = vmul.f32 %v5830_v15, %v8784_v6  ;;  %5843 = vrcp.f32 %v2850_v18  ;;  %4797 = vmatmul.msk.f32.gmra.mxu0 %vm475_vm1, %v6663_v10  ;;  %4830 = vmatmul.msk.f32.gmra.mxu1 %vm475_vm1, %v6663_v10  ;;  %v2038_v61 = vsub.f32 0.0, %v8853_v46 }
 0x395   : > { %v5834_v2 = vpop.eup %5833  ;;  %v3918_v31 = vadd.f32 %v3917_v49, %v3480_v59  ;;  %v3618_v8 = vmul.f32 %v5832_v20, %v8788_v53  ;;  %5845 = vpow2.f32 %v2671_v4  ;;  %v359_v49 = vld [vmem:[#allocation8 + $0x8] sm:$0x3] }
 0x396   : > { %v5836_v39 = vpop.eup %5835  ;;  %v3821_v62 = vadd.f32 %v3820_v63, %v3617_v42  ;;  %v2987_v52 = vadd.f32 1.0, %v5834_v2  ;;  %v2673_v1 = vmul.f32 1.442695, %v2038_v61  ;;  %v8869_v19 = vperm.slane %v359_v49, 0 }
 0x397   : > { %v5838_v6 = vpop.eup %5837  ;;  %v3858_v33 = vadd.f32 %v3857_v30, %v3618_v8  ;;  %v2988_v48 = vadd.f32 1.0, %v5836_v39  ;;  %v8872_v4 = vperm.slane %v359_v49, 1 }
 0x398   : > { %v5840_v9 = vpop.eup %5839  ;;  %5847 = vrcp.f32 %v2987_v52  ;;  %v2859_v53 = vadd.f32 1.0, %v5838_v6  ;;  %v8879_v2 = vadd.f32 %v1514_v21, %v8869_v19 }
 0x399   : > { %v5842_v45 = vpop.eup %5841  ;;  %5849 = vrcp.f32 %v2988_v48  ;;  %v2860_v47 = vadd.f32 1.0, %v5840_v9  ;;  %v1627_v30 = vpop.f32.mrf.mxu1 }
 0x39a   : > { %v5844_v16 = vpop.eup %5843  ;;  %v3489_v10 = vmul.f32 %v5842_v45, %v8793_v34  ;;  %5851 = vrcp.f32 %v2859_v53  ;;  %v1455_v34 = vpop.f32.mrf.mxu3  ;;  %v1731_v52 = vsub.f32 0.0, %v8879_v2 }
 0x39b   : > { %v5846_v3 = vpop.eup %5845  ;;  %v3490_v56 = vmul.f32 %v5844_v16, %v8807_v25  ;;  %5853 = vrcp.f32 %v2860_v47  ;;  %v8864_v25 = vadd.f32 %v1342_v57, %v8320_v12  ;;  %v8867_v63 = vadd.f32 %v1455_v34, %v8348_v17  ;;  %v1345_v9 = vpop.f32.mrf.mxu2 }
 0x39c   : > { %v3882_v26 = vadd.f32 %v3881_v41, %v3489_v10  ;;  %v2997_v43 = vadd.f32 1.0, %v5846_v3  ;;  %5855 = vpow2.f32 %v2673_v1  ;;  %4798 = vmatmul.msk.f32.gmra.mxu0 %vm475_vm1, %v9790_v13  ;;  %4831 = vmatmul.msk.f32.gmra.mxu1 %vm475_vm1, %v9790_v13  ;;  %v8896_v45 = vadd.f32 %v1345_v9, %v8320_v12 }
 0x39d   : > { %v3919_v44 = vadd.f32 %v3918_v31, %v3490_v56  ;;  %v1910_v15 = vsub.f32 0.0, %v8867_v63  ;;  %v8882_v31 = vadd.f32 %v1627_v30, %v8872_v4 }
 0x39e   : > { %v5848_v37 = vpop.eup %5847  ;;  %5857 = vrcp.f32 %v2997_v43  ;;  %v1919_v3 = vsub.f32 0.0, %v8896_v45 }
 0x39f   : > { %v5850_v40 = vpop.eup %5849  ;;  %v3627_v32 = vmul.f32 %v5848_v37, %v8812_v14  ;;  %v1909_v14 = vsub.f32 0.0, %v8864_v25  ;;  %v2417_v39 = vmul.f32 1.442695, %v1910_v15  ;;  %v1732_v6 = vsub.f32 0.0, %v8882_v31 }
 0x3a0   : > { %v5852_v51 = vpop.eup %5851  ;;  %v3628_v13 = vmul.f32 %v5850_v40, %v8819_v22  ;;  %v2435_v57 = vmul.f32 1.442695, %v1919_v3 }
 0x3a1   : > { %v5854_v23 = vpop.eup %5853  ;;  %v3822_v41 = vadd.f32 %v3821_v62, %v3627_v32  ;;  %v3499_v18 = vmul.f32 %v5852_v51, %v8823_v24  ;;  %v2415_v60 = vmul.f32 1.442695, %v1909_v14  ;;  %v2061_v48 = vmul.f32 1.442695, %v1732_v6  ;;  %v1630_v16 = vpop.f32.mrf.mxu1 }
 0x3a2   : > { %v5856_v59 = vpop.eup %5855  ;;  %v3859_v20 = vadd.f32 %v3858_v33, %v3628_v13  ;;  %v3500_v42 = vmul.f32 %v5854_v23, %v8828_v0  ;;  %v2059_v33 = vmul.f32 1.442695, %v1731_v52  ;;  %v1458_v53 = vpop.f32.mrf.mxu3  ;;  %v4074_v13 = vld [vmem:[#allocation9 + $0x50] sm:$0x3]  ;;  %v4075_v23 = vld [vmem:[#allocation9 + $0x58] sm:$0x3] }
 0x3a3   : > { %v8884_v22 = vadd.f32 %v3882_v26, %v3499_v18  ;;  %v2998_v8 = vadd.f32 1.0, %v5856_v59  ;;  %v8899_v47 = vadd.f32 %v1458_v53, %v8348_v17  ;;  %v1348_v59 = vpop.f32.mrf.mxu2  ;;  %4121 = vmatpush.xpose.msrb.mxu2 %v4074_v13  ;;  %4141 = vmatpush.xpose.msrb.mxu3 %v4075_v23 }
 0x3a4   : > { %v5858_v24 = vpop.eup %5857  ;;  %v8886_v62 = vadd.f32 %v3919_v44, %v3500_v42  ;;  %4799 = vmatmul.msk.f32.gmra.mxu0 %vm475_vm1, %v9800_v35  ;;  %4832 = vmatmul.msk.f32.gmra.mxu1 %vm475_vm1, %v9800_v35  ;;  %v8905_v35 = vadd.f32 %v1630_v16, %v8872_v4 }
 0x3a5   : > { %v3637_v0 = vmul.f32 %v5858_v24, %v8834_v36  ;;  %5859 = vrcp.f32 %v2998_v8  ;;  %v1517_v36 = vpop.f32.mrf.mxu0  ;;  %v1920_v56 = vsub.f32 0.0, %v8899_v47 }
 0x3a6   : > { %5861 = vpow2.f32 %v2415_v60  ;;  %v8902_v10 = vadd.f32 %v1517_v36, %v8869_v19  ;;  %v1742_v43 = vsub.f32 0.0, %v8905_v35 }
 0x3a7   : > { %v3823_v61 = vadd.f32 %v3822_v41, %v3637_v0  ;;  %5863 = vpow2.f32 %v2417_v39  ;;  %v2437_v34 = vmul.f32 1.442695, %v1920_v56  ;;  %v8917_v39 = vadd.f32 %v1348_v59, %v8320_v12 }
 0x3a8   : > { %5865 = vpow2.f32 %v2059_v33  ;;  %v1741_v26 = vsub.f32 0.0, %v8902_v10  ;;  %v2081_v15 = vmul.f32 1.442695, %v1742_v43 }
 0x3a9   : > { %v3824_v1 = vrot.slane %v3823_v61, 4  ;;  %5867 = vpow2.f32 %v2061_v48  ;;  %v1633_v52 = vpop.f32.mrf.mxu1  ;;  %v1929_v33 = vsub.f32 0.0, %v8917_v39 }
 0x3aa   : > { %v2079_v32 = vmul.f32 1.442695, %v1741_v26  ;;  %5869 = vpow2.f32 %v2435_v57 }
 0x3ab   : > { %v5860_v44 = vpop.eup %5859  ;;  %v3825_v37 = vadd.f32 %v3824_v1, %v3823_v61  ;;  %5871 = vpow2.f32 %v2437_v34  ;;  %v8928_v61 = vadd.f32 %v1633_v52, %v8872_v4  ;;  %v2455_v1 = vmul.f32 1.442695, %v1929_v33 }
 0x3ac   : > { %v5862_v49 = vpop.eup %5861  ;;  %v3638_v40 = vmul.f32 %v5860_v44, %v8853_v46  ;;  %4800 = vmatmul.msk.f32.gmra.mxu0 %vm475_vm1, %v9809_v28  ;;  %4833 = vmatmul.msk.f32.gmra.mxu1 %vm475_vm1, %v9809_v28  ;;  %v1461_v46 = vpop.f32.mrf.mxu3 }
 0x3ad   : > { %v5864_v21 = vpop.eup %5863  ;;  %v3826_v30 = vrot.slane %v3825_v37, 2  ;;  %v2869_v51 = vadd.f32 1.0, %v5862_v49  ;;  %v1520_v24 = vpop.f32.mrf.mxu0 }
 0x3ae   : > { %v5866_v41 = vpop.eup %5865  ;;  %v3860_v18 = vadd.f32 %v3859_v20, %v3638_v40  ;;  %v2870_v14 = vadd.f32 1.0, %v5864_v21  ;;  %v8920_v20 = vadd.f32 %v1461_v46, %v8348_v17  ;;  %v8924_v48 = vadd.f32 %v1520_v24, %v8869_v19 }
 0x3af   : > { %v5868_v42 = vpop.eup %5867  ;;  %v3827_v8 = vadd.f32 %v3826_v30, %v3825_v37  ;;  %5873 = vrcp.f32 %v2869_v51  ;;  %v2691_v60 = vadd.f32 1.0, %v5866_v41  ;;  %v1752_v21 = vsub.f32 0.0, %v8928_v61  ;;  %v1351_v30 = vpop.f32.mrf.mxu2 }
 0x3b0   : > { %v3861_v6 = vrot.slane %v3860_v18, 4  ;;  %5875 = vrcp.f32 %v2870_v14  ;;  %v2692_v28 = vadd.f32 1.0, %v5868_v42  ;;  %v1930_v53 = vsub.f32 0.0, %v8920_v20  ;;  %v5870_v36 = vpop.eup %5869 }
 0x3b1   : > { %v3828_v0 = vrot.slane %v3827_v8, 1  ;;  %5877 = vrcp.f32 %v2691_v60  ;;  %v1751_v3 = vsub.f32 0.0, %v8924_v48  ;;  %v5872_v56 = vpop.eup %5871  ;;  %v2879_v43 = vadd.f32 1.0, %v5870_v36  ;;  %v1636_v14 = vpop.f32.mrf.mxu1 }
 0x3b2   : > { %v3862_v9 = vadd.f32 %v3861_v6, %v3860_v18  ;;  %5879 = vrcp.f32 %v2692_v28  ;;  %v2457_v44 = vmul.f32 1.442695, %v1930_v53  ;;  %v2880_v57 = vadd.f32 1.0, %v5872_v56 }
 0x3b3   : > { %v8930_v16 = vadd.f32 %v3828_v0, %v3827_v8  ;;  %5881 = vpow2.f32 %v2079_v32  ;;  %v2099_v34 = vmul.f32 1.442695, %v1751_v3  ;;  %v8941_v41 = vadd.f32 %v1351_v30, %v8320_v12 }
 0x3b4   : > { %v3863_v26 = vrot.slane %v3862_v9, 2  ;;  %5883 = vpow2.f32 %v2081_v15  ;;  %4801 = vmatmul.msk.f32.gmra.mxu0 %vm475_vm1, %v9812_v7  ;;  %4834 = vmatmul.msk.f32.gmra.mxu1 %vm475_vm1, %v9812_v7  ;;  %v1464_v51 = vpop.f32.mrf.mxu3  ;;  %v2101_v60 = vmul.f32 1.442695, %v1752_v21 }
 0x3b5   : > { %v5874_v37 = vpop.eup %5873  ;;  %5885 = vpow2.f32 %v2455_v1  ;;  %v8944_v18 = vadd.f32 %v1464_v51, %v8348_v17  ;;  %v1523_v7 = vpop.f32.mrf.mxu0  ;;  %v1939_v28 = vsub.f32 0.0, %v8941_v41 }
 0x3b6   : > { %v5876_v49 = vpop.eup %5875  ;;  %v3864_v40 = vadd.f32 %v3863_v26, %v3862_v9  ;;  %v3509_v32 = vmul.f32 %v5874_v37, %v8864_v25  ;;  %5887 = vrcp.f32 %v2879_v43  ;;  %v4028_v25 = vrot.slane %v8930_v16, 4 }
 0x3b7   : > { %v5878_v13 = vpop.eup %5877  ;;  %v3510_v23 = vmul.f32 %v5876_v49, %v8867_v63  ;;  %5889 = vrcp.f32 %v2880_v57  ;;  %v1940_v0 = vsub.f32 0.0, %v8944_v18  ;;  %v2475_v16 = vmul.f32 1.442695, %v1939_v28 }
 0x3b8   : > { %v5880_v15 = vpop.eup %5879  ;;  %v3865_v59 = vrot.slane %v3864_v40, 1  ;;  %v3884_v46 = vadd.f32 %v8884_v22, %v3509_v32  ;;  %5891 = vpow2.f32 %v2457_v44  ;;  %v8950_v63 = vmul.f32 %v5878_v13, %v8879_v2 }
 0x3b9   : > { %v5882_v42 = vpop.eup %5881  ;;  %v3921_v8 = vadd.f32 %v8886_v62, %v3510_v23  ;;  %5893 = vpow2.f32 %v2099_v34  ;;  %v8955_v22 = vadd.f32 %v1523_v7, %v8869_v19  ;;  %v8958_v62 = vadd.f32 %v1636_v14, %v8872_v4  ;;  %v1639_v51 = vpop.f32.mrf.mxu1 }
 0x3ba   : > { %v5884_v24 = vpop.eup %5883  ;;  %v3866_v52 = vadd.f32 %v3865_v59, %v3864_v40  ;;  %v2701_v6 = vadd.f32 1.0, %v5882_v42  ;;  %5895 = vpow2.f32 %v2101_v60  ;;  %v2477_v56 = vmul.f32 1.442695, %v1940_v0 }
 0x3bb   : > { %v5886_v33 = vpop.eup %5885  ;;  %v2702_v9 = vadd.f32 1.0, %v5884_v24  ;;  %v1761_v26 = vsub.f32 0.0, %v8955_v22  ;;  %v1762_v57 = vsub.f32 0.0, %v8958_v62 }
 0x3bc   : > { %v5888_v2 = vpop.eup %5887  ;;  %v4029_v53 = vrot.slane %v3866_v52, 3  ;;  %5897 = vrcp.f32 %v2701_v6  ;;  %v2889_v36 = vadd.f32 1.0, %v5886_v33  ;;  %4802 = vmatmul.msk.f32.gmra.mxu0 %vm475_vm1, %v9814_v54  ;;  %4835 = vmatmul.msk.f32.gmra.mxu1 %vm475_vm1, %v9814_v54  ;;  %v1467_v34 = vpop.f32.mrf.mxu3 }
 0x3bd   : > { %v5890_v1 = vpop.eup %5889  ;;  %v3519_v3 = vmul.f32 %v5888_v2, %v8896_v45  ;;  %5899 = vrcp.f32 %v2702_v9  ;;  %v1354_v45 = vpop.f32.mrf.mxu2  ;;  %v2119_v21 = vmul.f32 1.442695, %v1761_v26  ;;  %v2121_v23 = vmul.f32 1.442695, %v1762_v57 }
 0x3be   : > { %v5892_v43 = vpop.eup %5891  ;;  %v8967_v44 = vsel %vm4039_vm5, %v4028_v25, %v4029_v53  ;;  %v3520_v37 = vmul.f32 %v5890_v1, %v8899_v47  ;;  %5901 = vrcp.f32 %v2889_v36  ;;  %v1526_v30 = vpop.f32.mrf.mxu0  ;;  %v8972_v47 = vadd.f32 %v1354_v45, %v8320_v12 }
 0x3bf   : > { %v5894_v49 = vpop.eup %5893  ;;  %v3885_v40 = vadd.f32 %v3884_v46, %v3519_v3  ;;  %v2890_v32 = vadd.f32 1.0, %v5892_v43  ;;  %5903 = vpow2.f32 %v2475_v16  ;;  %v8975_v14 = vadd.f32 %v1467_v34, %v8348_v17 }
 0x3c0   : > { %v3922_v13 = vadd.f32 %v3921_v8, %v3520_v37  ;;  %v2711_v54 = vadd.f32 1.0, %v5894_v49  ;;  %5905 = vpow2.f32 %v2477_v56  ;;  %v5896_v7 = vpop.eup %5895  ;;  %v8978_v25 = vadd.f32 %v1526_v30, %v8869_v19 }
 0x3c1   : > { %5907 = vrcp.f32 %v2890_v32  ;;  %v3332_v46 = vmul.f32 %v5880_v15, %v8882_v31  ;;  %v2712_v42 = vadd.f32 1.0, %v5896_v7  ;;  %v8982_v8 = vadd.f32 %v1639_v51, %v8872_v4  ;;  %v1642_v37 = vpop.f32.mrf.mxu1 }
 0x3c2   : > { %v5898_v59 = vpop.eup %5897  ;;  %5909 = vrcp.f32 %v2711_v54  ;;  %v1949_v52 = vsub.f32 0.0, %v8972_v47  ;;  %v1950_v6 = vsub.f32 0.0, %v8975_v14  ;;  %v1771_v33 = vsub.f32 0.0, %v8978_v25 }
 0x3c3   : > { %v5900_v60 = vpop.eup %5899  ;;  %v3341_v24 = vmul.f32 %v5898_v59, %v8902_v10  ;;  %5911 = vpow2.f32 %v2119_v21  ;;  %v1772_v31 = vsub.f32 0.0, %v8982_v8  ;;  %v9010_v30 = vadd.f32 %v1642_v37, %v8872_v4 }
 0x3c4   : > { %v5902_v28 = vpop.eup %5901  ;;  %v3342_v0 = vmul.f32 %v5900_v60, %v8905_v35  ;;  %5913 = vrcp.f32 %v2712_v42  ;;  %v2495_v10 = vmul.f32 1.442695, %v1949_v52  ;;  %4803 = vmatmul.msk.f32.gmra.mxu0 %vm475_vm1, %v9816_v55  ;;  %4836 = vmatmul.msk.f32.gmra.mxu1 %vm475_vm1, %v9816_v55  ;;  %v2497_v16 = vmul.f32 1.442695, %v1950_v6  ;;  %v1470_v3 = vpop.f32.mrf.mxu3 }
 0x3c5   : > { %v5904_v15 = vpop.eup %5903  ;;  %v3941_v9 = vadd.f32 %v3341_v24, %v8950_v63  ;;  %v3529_v2 = vmul.f32 %v5902_v28, %v8917_v39  ;;  %5915 = vpow2.f32 %v2121_v23  ;;  %v1357_v1 = vpop.f32.mrf.mxu2  ;;  %v2139_v39 = vmul.f32 1.442695, %v1771_v33 }
 0x3c6   : > { %v5906_v53 = vpop.eup %5905  ;;  %v3978_v35 = vadd.f32 %v3342_v0, %v3332_v46  ;;  %v2899_v36 = vadd.f32 1.0, %v5904_v15  ;;  %5917 = vpow2.f32 %v2495_v10  ;;  %v1529_v43 = vpop.f32.mrf.mxu0  ;;  %v2141_v34 = vmul.f32 1.442695, %v1772_v31 }
 0x3c7   : > { %v5908_v56 = vpop.eup %5907  ;;  %v8996_v26 = vadd.f32 %v3885_v40, %v3529_v2  ;;  %v2900_v63 = vadd.f32 1.0, %v5906_v53  ;;  %v9000_v55 = vadd.f32 %v1357_v1, %v8320_v12  ;;  %v9003_v49 = vadd.f32 %v1470_v3, %v8348_v17 }
 0x3c8   : > { %v5910_v57 = vpop.eup %5909  ;;  %v3530_v45 = vmul.f32 %v5908_v56, %v8920_v20  ;;  %5919 = vrcp.f32 %v2899_v36  ;;  %v9007_v40 = vadd.f32 %v1529_v43, %v8869_v19 }
 0x3c9   : > { %v5912_v32 = vpop.eup %5911  ;;  %v3351_v21 = vmul.f32 %v5910_v57, %v8924_v48  ;;  %5921 = vpow2.f32 %v2497_v16  ;;  %v1959_v23 = vsub.f32 0.0, %v9000_v55  ;;  %v1960_v48 = vsub.f32 0.0, %v9003_v49  ;;  %v1645_v10 = vpop.f32.mrf.mxu1 }
 0x3ca   : > { %v5914_v51 = vpop.eup %5913  ;;  %v9012_v54 = vadd.f32 %v3922_v13, %v3530_v45  ;;  %v2721_v20 = vadd.f32 1.0, %v5912_v32  ;;  %5923 = vpow2.f32 %v2139_v39  ;;  %v1781_v24 = vsub.f32 0.0, %v9007_v40 }
 0x3cb   : > { %v5916_v7 = vpop.eup %5915  ;;  %v3942_v59 = vadd.f32 %v3941_v9, %v3351_v21  ;;  %v3352_v46 = vmul.f32 %v5914_v51, %v8928_v61  ;;  %v2515_v60 = vmul.f32 1.442695, %v1959_v23  ;;  %v1782_v13 = vsub.f32 0.0, %v9010_v30 }
 0x3cc   : > { %5925 = vrcp.f32 %v2721_v20  ;;  %v2722_v42 = vadd.f32 1.0, %v5916_v7  ;;  %v5918_v52 = vpop.eup %5917  ;;  %4804 = vmatmul.msk.f32.gmra.mxu0 %vm475_vm1, %v9817_v11  ;;  %4837 = vmatmul.msk.f32.gmra.mxu1 %vm475_vm1, %v9817_v11  ;;  %v2159_v28 = vmul.f32 1.442695, %v1781_v24  ;;  %v1473_v33 = vpop.f32.mrf.mxu3  ;;  %v2517_v15 = vmul.f32 1.442695, %v1960_v48 }
 0x3cd   : > { %v3979_v6 = vadd.f32 %v3978_v35, %v3352_v46  ;;  %5927 = vpow2.f32 %v2141_v34  ;;  %v2909_v61 = vadd.f32 1.0, %v5918_v52  ;;  %v1360_v0 = vpop.f32.mrf.mxu2  ;;  %v9029_v35 = vadd.f32 %v1473_v33, %v8348_v17 }
 0x3ce   : > { %5929 = vrcp.f32 %v2722_v42  ;;  %v9023_v31 = vpop.eup %5919  ;;  %v9026_v9 = vadd.f32 %v1360_v0, %v8320_v12  ;;  %v1532_v2 = vpop.f32.mrf.mxu0  ;;  %v2161_v16 = vmul.f32 1.442695, %v1782_v13  ;;  %v9039_v21 = vadd.f32 %v1645_v10, %v8872_v4 }
 0x3cf   : > { %5931 = vpow2.f32 %v2515_v60  ;;  %v5922_v53 = vpop.eup %5921  ;;  %v9032_v11 = vadd.f32 %v1532_v2, %v8869_v19  ;;  %v1970_v39 = vsub.f32 0.0, %v9029_v35 }
 0x3d0   : > { %5933 = vrcp.f32 %v2900_v63  ;;  %v5924_v36 = vpop.eup %5923  ;;  %v1969_v1 = vsub.f32 0.0, %v9026_v9  ;;  %v2910_v63 = vadd.f32 1.0, %v5922_v53  ;;  %v1792_v48 = vsub.f32 0.0, %v9039_v21 }
 0x3d1   : > { %5935 = vrcp.f32 %v2909_v61  ;;  %v2731_v56 = vadd.f32 1.0, %v5924_v36  ;;  %v1791_v32 = vsub.f32 0.0, %v9032_v11  ;;  %v2537_v46 = vmul.f32 1.442695, %v1970_v39  ;;  %v1648_v13 = vpop.f32.mrf.mxu1 }
 0x3d2   : > { %v5926_v3 = vpop.eup %5925  ;;  %5937 = vpow2.f32 %v2159_v28  ;;  %v2535_v57 = vmul.f32 1.442695, %v1969_v1 }
 0x3d3   : > { %v5928_v43 = vpop.eup %5927  ;;  %v3361_v37 = vmul.f32 %v5926_v3, %v8955_v22  ;;  %5939 = vpow2.f32 %v2517_v15  ;;  %v2181_v15 = vmul.f32 1.442695, %v1792_v48  ;;  %v9064_v3 = vadd.f32 %v1648_v13, %v8872_v4 }
 0x3d4   : > { %v5930_v45 = vpop.eup %5929  ;;  %5941 = vrcp.f32 %v2731_v56  ;;  %v2732_v34 = vadd.f32 1.0, %v5928_v43  ;;  %4805 = vmatmul.msk.f32.gmra.mxu0 %vm475_vm1, %v9819_v50  ;;  %4838 = vmatmul.msk.f32.gmra.mxu1 %vm475_vm1, %v9819_v50  ;;  %v1476_v60 = vpop.f32.mrf.mxu3  ;;  %v2179_v50 = vmul.f32 1.442695, %v1791_v32 }
 0x3d5   : > { %v5932_v51 = vpop.eup %5931  ;;  %v3943_v20 = vadd.f32 %v3942_v59, %v3361_v37  ;;  %v3362_v23 = vmul.f32 %v5930_v45, %v8958_v62  ;;  %5943 = vpow2.f32 %v2161_v16  ;;  %v1363_v42 = vpop.f32.mrf.mxu2  ;;  %v9055_v28 = vadd.f32 %v1476_v60, %v8348_v17 }
 0x3d6   : > { %v9046_v22 = vpop.eup %5933  ;;  %5945 = vrcp.f32 %v2732_v34  ;;  %v2919_v7 = vadd.f32 1.0, %v5932_v51  ;;  %v9052_v62 = vadd.f32 %v1363_v42, %v8320_v12  ;;  %v1535_v52 = vpop.f32.mrf.mxu0  ;;  %v1802_v51 = vsub.f32 0.0, %v9064_v3 }
 0x3d7   : > { %v9049_v24 = vpop.eup %5935  ;;  %v3980_v59 = vadd.f32 %v3979_v6, %v3362_v23  ;;  %5947 = vpow2.f32 %v2535_v57  ;;  %v1980_v6 = vsub.f32 0.0, %v9055_v28  ;;  %v9060_v53 = vadd.f32 %v1535_v52, %v8869_v19 }
 0x3d8   : > { %v5938_v61 = vpop.eup %5937  ;;  %5949 = vrcp.f32 %v2910_v63  ;;  %v1979_v2 = vsub.f32 0.0, %v9052_v62  ;;  %v2201_v52 = vmul.f32 1.442695, %v1802_v51 }
 0x3d9   : > { %v5940_v0 = vpop.eup %5939  ;;  %5951 = vrcp.f32 %v2919_v7  ;;  %v2741_v33 = vadd.f32 1.0, %v5938_v61  ;;  %v1801_v45 = vsub.f32 0.0, %v9060_v53  ;;  %v2557_v32 = vmul.f32 1.442695, %v1980_v6  ;;  %v1651_v42 = vpop.f32.mrf.mxu1 }
 0x3da   : > { %v5942_v10 = vpop.eup %5941  ;;  %5953 = vpow2.f32 %v2537_v46  ;;  %v2555_v1 = vmul.f32 1.442695, %v1979_v2  ;;  %v2920_v39 = vadd.f32 1.0, %v5940_v0 }
 0x3db   : > { %v5944_v36 = vpop.eup %5943  ;;  %v3371_v16 = vmul.f32 %v5942_v10, %v8978_v25  ;;  %5955 = vrcp.f32 %v2741_v33  ;;  %v2199_v46 = vmul.f32 1.442695, %v1801_v45  ;;  %v9098_v45 = vadd.f32 %v1651_v42, %v8872_v4 }
 0x3dc   : > { %v5946_v56 = vpop.eup %5945  ;;  %v2742_v43 = vadd.f32 1.0, %v5944_v36  ;;  %5957 = vpow2.f32 %v2179_v50  ;;  %4806 = vmatmul.msk.f32.gmra.mxu0 %vm475_vm1, %v9820_v27  ;;  %4839 = vmatmul.msk.f32.gmra.mxu1 %vm475_vm1, %v9820_v27  ;;  %v3539_v42 = vmul.f32 %v9023_v31, %v8941_v41 }
 0x3dd   : > { %v5948_v37 = vpop.eup %5947  ;;  %v3944_v63 = vadd.f32 %v3943_v20, %v3371_v16  ;;  %v3372_v57 = vmul.f32 %v5946_v56, %v8982_v8  ;;  %5959 = vpow2.f32 %v2181_v15  ;;  %v1366_v23 = vpop.f32.mrf.mxu2 }
 0x3de   : > { %v9072_v25 = vpop.eup %5949  ;;  %5961 = vrcp.f32 %v2742_v43  ;;  %v2929_v34 = vadd.f32 1.0, %v5948_v37  ;;  %v1479_v20 = vpop.f32.mrf.mxu3  ;;  %v9078_v27 = vadd.f32 %v1366_v23, %v8320_v12 }
 0x3df   : > { %v9075_v7 = vpop.eup %5951  ;;  %v3981_v8 = vadd.f32 %v3980_v59, %v3372_v57  ;;  %5963 = vpow2.f32 %v2555_v1  ;;  %v1538_v48 = vpop.f32.mrf.mxu0  ;;  %v9081_v61 = vadd.f32 %v1479_v20, %v8348_v17 }
 0x3e0   : > { %v5954_v60 = vpop.eup %5953  ;;  %5965 = vrcp.f32 %v2920_v39  ;;  %v1989_v59 = vsub.f32 0.0, %v9078_v27  ;;  %v9086_v33 = vadd.f32 %v1538_v48, %v8869_v19 }
 0x3e1   : > { %v5956_v13 = vpop.eup %5955  ;;  %5967 = vrcp.f32 %v2929_v34  ;;  %v2930_v2 = vadd.f32 1.0, %v5954_v60  ;;  %v1990_v6 = vsub.f32 0.0, %v9081_v61 }
 0x3e2   : > { %v5958_v50 = vpop.eup %5957  ;;  %v3381_v0 = vmul.f32 %v5956_v13, %v9007_v40  ;;  %5969 = vpow2.f32 %v2557_v32  ;;  %v2575_v56 = vmul.f32 1.442695, %v1989_v59  ;;  %v1811_v43 = vsub.f32 0.0, %v9086_v33 }
 0x3e3   : > { %v5960_v15 = vpop.eup %5959  ;;  %v2751_v10 = vadd.f32 1.0, %v5958_v50  ;;  %5971 = vpow2.f32 %v2199_v46  ;;  %v1654_v46 = vpop.f32.mrf.mxu1  ;;  %v3540_v13 = vmul.f32 %v9046_v22, %v8944_v18 }
 0x3e4   : > { %v5962_v36 = vpop.eup %5961  ;;  %v3945_v16 = vadd.f32 %v3944_v63, %v3381_v0  ;;  %v2752_v1 = vadd.f32 1.0, %v5960_v15  ;;  %5973 = vpow2.f32 %v2201_v52  ;;  %4807 = vmatmul.msk.f32.gmra.mxu0 %vm475_vm1, %v9821_v38  ;;  %4840 = vmatmul.msk.f32.gmra.mxu1 %vm475_vm1, %v9821_v38  ;;  %v2577_v63 = vmul.f32 1.442695, %v1990_v6 }
 0x3e5   : > { %v5964_v39 = vpop.eup %5963  ;;  %v3382_v40 = vmul.f32 %v5962_v36, %v9010_v30  ;;  %5975 = vrcp.f32 %v2751_v10  ;;  %v1369_v34 = vpop.f32.mrf.mxu2  ;;  %v2219_v23 = vmul.f32 1.442695, %v1811_v43  ;;  %v1812_v38 = vsub.f32 0.0, %v9098_v45 }
 0x3e6   : > { %v9095_v37 = vpop.eup %5965  ;;  %5977 = vrcp.f32 %v2752_v1  ;;  %v2939_v57 = vadd.f32 1.0, %v5964_v39  ;;  %v1482_v32 = vpop.f32.mrf.mxu3  ;;  %v9104_v60 = vadd.f32 %v1369_v34, %v8320_v12 }
 0x3e7   : > { %v9100_v30 = vpop.eup %5967  ;;  %v3982_v51 = vadd.f32 %v3981_v8, %v3382_v40  ;;  %5979 = vpow2.f32 %v2575_v56  ;;  %v1541_v20 = vpop.f32.mrf.mxu0  ;;  %v9111_v8 = vadd.f32 %v1482_v32, %v8348_v17  ;;  %v2221_v59 = vmul.f32 1.442695, %v1812_v38 }
 0x3e8   : > { %v5970_v48 = vpop.eup %5969  ;;  %5981 = vrcp.f32 %v2930_v2  ;;  %v1999_v15 = vsub.f32 0.0, %v9104_v60  ;;  %v9117_v22 = vadd.f32 %v1541_v20, %v8869_v19  ;;  %v9121_v40 = vadd.f32 %v1654_v46, %v8872_v4 }
 0x3e9   : > { %v5972_v52 = vpop.eup %5971  ;;  %5983 = vrcp.f32 %v2939_v57  ;;  %v2940_v10 = vadd.f32 1.0, %v5970_v48  ;;  %v2000_v36 = vsub.f32 0.0, %v9111_v8 }
 0x3ea   : > { %v5974_v50 = vpop.eup %5973  ;;  %v2761_v0 = vadd.f32 1.0, %v5972_v52  ;;  %5985 = vpow2.f32 %v2577_v63  ;;  %v2595_v18 = vmul.f32 1.442695, %v1999_v15  ;;  %v1821_v63 = vsub.f32 0.0, %v9117_v22 }
 0x3eb   : > { %v5976_v2 = vpop.eup %5975  ;;  %v2762_v6 = vadd.f32 1.0, %v5974_v50  ;;  %5987 = vpow2.f32 %v2219_v23  ;;  %v2597_v39 = vmul.f32 1.442695, %v2000_v36  ;;  %v3887_v23 = vadd.f32 %v8996_v26, %v3539_v42  ;;  %v1657_v38 = vpop.f32.mrf.mxu1 }
 0x3ec   : > { %v5978_v41 = vpop.eup %5977  ;;  %v3391_v31 = vmul.f32 %v5976_v2, %v9032_v11  ;;  %5989 = vrcp.f32 %v2761_v0  ;;  %4808 = vmatmul.msk.f32.gmra.mxu0 %vm475_vm1, %v9824_v29  ;;  %4841 = vmatmul.msk.f32.gmra.mxu1 %vm475_vm1, %v9824_v29  ;;  %v1822_v46 = vsub.f32 0.0, %v9121_v40  ;;  %v3924_v52 = vadd.f32 %v9012_v54, %v3540_v13 }
 0x3ed   : > { %v5980_v1 = vpop.eup %5979  ;;  %v3392_v56 = vmul.f32 %v5978_v41, %v9039_v21  ;;  %5991 = vrcp.f32 %v2762_v6  ;;  %v1372_v34 = vpop.f32.mrf.mxu2  ;;  %v3550_v26 = vmul.f32 %v9072_v25, %v8975_v14 }
 0x3ee   : > { %v9127_v11 = vpop.eup %5981  ;;  %v3946_v43 = vadd.f32 %v3945_v16, %v3391_v31  ;;  %v2949_v57 = vadd.f32 1.0, %v5980_v1  ;;  %5993 = vpow2.f32 %v2221_v59  ;;  %v1485_v21 = vpop.f32.mrf.mxu3  ;;  %v2239_v16 = vmul.f32 1.442695, %v1821_v63 }
 0x3ef   : > { %v9130_v32 = vpop.eup %5983  ;;  %v3983_v20 = vadd.f32 %v3982_v51, %v3392_v56  ;;  %5995 = vpow2.f32 %v2595_v18  ;;  %v1544_v48 = vpop.f32.mrf.mxu0  ;;  %v9136_v50 = vadd.f32 %v1372_v34, %v8320_v12  ;;  %v3549_v59 = vmul.f32 %v9049_v24, %v8972_v47 }
 0x3f0   : > { %v5986_v29 = vpop.eup %5985  ;;  %5997 = vrcp.f32 %v2940_v10  ;;  %v2241_v51 = vmul.f32 1.442695, %v1822_v46  ;;  %v9144_v54 = vadd.f32 %v1485_v21, %v8348_v17  ;;  %v9148_v47 = vadd.f32 %v1544_v48, %v8869_v19 }
 0x3f1   : > { %v5988_v0 = vpop.eup %5987  ;;  %5999 = vrcp.f32 %v2949_v57  ;;  %v2009_v2 = vsub.f32 0.0, %v9136_v50  ;;  %v2950_v6 = vadd.f32 1.0, %v5986_v29  ;;  %v9162_v46 = vadd.f32 %v1657_v38, %v8872_v4 }
 0x3f2   : > { %v5990_v42 = vpop.eup %5989  ;;  %v2771_v15 = vadd.f32 1.0, %v5988_v0  ;;  %6001 = vpow2.f32 %v2597_v39  ;;  %v2010_v36 = vsub.f32 0.0, %v9144_v54  ;;  %v1831_v1 = vsub.f32 0.0, %v9148_v47 }
 0x3f3   : > { %v5992_v13 = vpop.eup %5991  ;;  %v3401_v10 = vmul.f32 %v5990_v42, %v9060_v53  ;;  %6003 = vpow2.f32 %v2239_v16  ;;  %v2615_v25 = vmul.f32 1.442695, %v2009_v2  ;;  %v1660_v29 = vpop.f32.mrf.mxu1  ;;  %v1832_v38 = vsub.f32 0.0, %v9162_v46 }
 0x3f4   : > { %v5994_v24 = vpop.eup %5993  ;;  %v3402_v14 = vmul.f32 %v5992_v13, %v9064_v3  ;;  %6005 = vrcp.f32 %v2771_v15  ;;  %4809 = vmatmul.msk.f32.gmra.mxu0 %vm475_vm1, %v9825_v58  ;;  %4842 = vmatmul.msk.f32.gmra.mxu1 %vm475_vm1, %v9825_v58  ;;  %v2617_v39 = vmul.f32 1.442695, %v2010_v36  ;;  %v2259_v21 = vmul.f32 1.442695, %v1831_v1 }
 0x3f5   : > { %v5996_v41 = vpop.eup %5995  ;;  %v3947_v31 = vadd.f32 %v3946_v43, %v3401_v10  ;;  %v2772_v18 = vadd.f32 1.0, %v5994_v24  ;;  %6007 = vpow2.f32 %v2241_v51  ;;  %v1375_v57 = vpop.f32.mrf.mxu2  ;;  %v3888_v43 = vadd.f32 %v3887_v23, %v3549_v59 }
 0x3f6   : > { %v9157_v53 = vpop.eup %5997  ;;  %v3984_v56 = vadd.f32 %v3983_v20, %v3402_v14  ;;  %v2959_v3 = vadd.f32 1.0, %v5996_v41  ;;  %6009 = vpow2.f32 %v2615_v25  ;;  %v1488_v63 = vpop.f32.mrf.mxu3  ;;  %v3925_v58 = vadd.f32 %v3924_v52, %v3550_v26 }
 0x3f7   : > { %v9159_v34 = vpop.eup %5999  ;;  %6011 = vrcp.f32 %v2772_v18  ;;  %v1547_v48 = vpop.f32.mrf.mxu0  ;;  %v9165_v20 = vadd.f32 %v1375_v57, %v8320_v12  ;;  %v9168_v0 = vadd.f32 %v1488_v63, %v8348_v17  ;;  %v3559_v23 = vmul.f32 %v9075_v7, %v9000_v55 }
 0x3f8   : > { %v6002_v16 = vpop.eup %6001  ;;  %6013 = vrcp.f32 %v2950_v6  ;;  %v3560_v59 = vmul.f32 %v9095_v37, %v9003_v49  ;;  %v2261_v6 = vmul.f32 1.442695, %v1832_v38  ;;  %v3569_v49 = vmul.f32 %v9100_v30, %v9026_v9 }
 0x3f9   : > { %v6004_v51 = vpop.eup %6003  ;;  %6015 = vrcp.f32 %v2959_v3  ;;  %v2019_v52 = vsub.f32 0.0, %v9165_v20  ;;  %v2020_v26 = vsub.f32 0.0, %v9168_v0  ;;  %v2960_v10 = vadd.f32 1.0, %v6002_v16 }
 0x3fa   : > { %v6006_v42 = vpop.eup %6005  ;;  %v2781_v15 = vadd.f32 1.0, %v6004_v51  ;;  %6017 = vpow2.f32 %v2617_v39  ;;  %v9181_v36 = vadd.f32 %v1547_v48, %v8869_v19  ;;  %v9187_v1 = vadd.f32 %v1660_v29, %v8872_v4 }
 0x3fb   : > { %v6008_v2 = vpop.eup %6007  ;;  %v3411_v13 = vmul.f32 %v6006_v42, %v9086_v33  ;;  %6019 = vpow2.f32 %v2259_v21  ;;  %v2635_v37 = vmul.f32 1.442695, %v2019_v52  ;;  %v2637_v25 = vmul.f32 1.442695, %v2020_v26 }
 0x3fc   : > { %v6010_v55 = vpop.eup %6009  ;;  %6021 = vrcp.f32 %v2781_v15  ;;  %v2782_v7 = vadd.f32 1.0, %v6008_v2  ;;  %v3889_v3 = vadd.f32 %v3888_v43, %v3559_v23  ;;  %v9196_v16 = vadd.f32 %v3925_v58, %v3560_v59  ;;  %v1663_v23 = vpop.f32.mrf.mxu1 }
 0x3fd   : > { %v6012_v24 = vpop.eup %6011  ;;  %v3948_v14 = vadd.f32 %v3947_v31, %v3411_v13  ;;  %6023 = vpow2.f32 %v2261_v6  ;;  %v2969_v18 = vadd.f32 1.0, %v6010_v55  ;;  %v1378_v9 = vpop.f32.mrf.mxu2  ;;  %v1841_v31 = vsub.f32 0.0, %v9181_v36 }
 0x3fe   : > { %v9183_v41 = vpop.eup %6013  ;;  %v3412_v33 = vmul.f32 %v6012_v24, %v9098_v45  ;;  %6025 = vrcp.f32 %v2782_v7  ;;  %v9193_v39 = vadd.f32 %v1378_v9, %v8320_v12  ;;  %v1491_v57 = vpop.f32.mrf.mxu3  ;;  %v1842_v45 = vsub.f32 0.0, %v9187_v1 }
 0x3ff   : > { %v9189_v30 = vpop.eup %6015  ;;  %6027 = vrcp.f32 %v2960_v10  ;;  %v9198_v29 = vadd.f32 %v3889_v3, %v3569_v49  ;;  %v2279_v51 = vmul.f32 1.442695, %v1841_v31  ;;  %v1550_v43 = vpop.f32.mrf.mxu0  ;;  %v9203_v58 = vadd.f32 %v1491_v57, %v8348_v17 }
 0x400   : > { %v6018_v63 = vpop.eup %6017  ;;  %v3985_v21 = vadd.f32 %v3984_v56, %v3412_v33  ;;  %6029 = vpow2.f32 %v2635_v37  ;;  %v2281_v15 = vmul.f32 1.442695, %v1842_v45  ;;  %v2029_v52 = vsub.f32 0.0, %v9193_v39 }
 0x401   : > { %v6020_v48 = vpop.eup %6019  ;;  %6031 = vpow2.f32 %v2637_v25  ;;  %v2970_v2 = vadd.f32 1.0, %v6018_v63  ;;  %v9206_v6 = vadd.f32 %v1550_v43, %v8869_v19  ;;  %v3570_v24 = vmul.f32 %v9127_v11, %v9029_v35 }
 0x402   : > { %v6022_v38 = vpop.eup %6021  ;;  %6033 = vrcp.f32 %v2969_v18  ;;  %v2791_v42 = vadd.f32 1.0, %v6020_v48  ;;  %v2655_v10 = vmul.f32 1.442695, %v2029_v52  ;;  %v9216_v33 = vadd.f32 %v1663_v23, %v8872_v4 }
 0x403   : > { %v6024_v26 = vpop.eup %6023  ;;  %v3421_v56 = vmul.f32 %v6022_v38, %v9117_v22  ;;  %6035 = vpow2.f32 %v2279_v51  ;;  %v2030_v22 = vsub.f32 0.0, %v9203_v58  ;;  %v1851_v25 = vsub.f32 0.0, %v9206_v6 }
 0x404   : > { %v6026_v59 = vpop.eup %6025  ;;  %6037 = vrcp.f32 %v2791_v42  ;;  %v2792_v13 = vadd.f32 1.0, %v6024_v26  ;;  %v3579_v57 = vmul.f32 %v9130_v32, %v9052_v62  ;;  %v1852_v35 = vsub.f32 0.0, %v9216_v33 }
 0x405   : > { %v9208_v55 = vpop.eup %6027  ;;  %v3949_v49 = vadd.f32 %v3948_v14, %v3421_v56  ;;  %v3422_v7 = vmul.f32 %v6026_v59, %v9121_v40  ;;  %6039 = vpow2.f32 %v2281_v15  ;;  %v1381_v18 = vpop.f32.mrf.mxu2  ;;  %v2657_v14 = vmul.f32 1.442695, %v2030_v22 }
 0x406   : > { %v6030_v37 = vpop.eup %6029  ;;  %6041 = vrcp.f32 %v2792_v13  ;;  %v3580_v45 = vmul.f32 %v9157_v53, %v9055_v28  ;;  %v2299_v48 = vmul.f32 1.442695, %v1851_v25  ;;  %v1494_v51 = vpop.f32.mrf.mxu3  ;;  %v3589_v23 = vmul.f32 %v9159_v34, %v9078_v27 }
 0x407   : > { %v6032_v9 = vpop.eup %6031  ;;  %v3986_v3 = vadd.f32 %v3985_v21, %v3422_v7  ;;  %v2979_v31 = vadd.f32 1.0, %v6030_v37  ;;  %6043 = vpow2.f32 %v2655_v10  ;;  %v9226_v21 = vadd.f32 %v1381_v18, %v8320_v12  ;;  %v1553_v15 = vpop.f32.mrf.mxu0 }
 0x408   : > { %v9218_v40 = vpop.eup %6033  ;;  %6045 = vrcp.f32 %v2970_v2  ;;  %v2980_v63 = vadd.f32 1.0, %v6032_v9  ;;  %v9231_v32 = vadd.f32 %v1494_v51, %v8348_v17  ;;  %v2301_v28 = vmul.f32 1.442695, %v1852_v35  ;;  %v1666_v12 = vpop.f32.mrf.mxu1 }
 0x409   : > { %v6036_v11 = vpop.eup %6035  ;;  %6047 = vrcp.f32 %v2979_v31  ;;  %v2039_v53 = vsub.f32 0.0, %v9226_v21  ;;  %v9237_v27 = vadd.f32 %v1553_v15, %v8869_v19  ;;  %v3927_v37 = vadd.f32 %v9196_v16, %v3570_v24 }
 0x40a   : > { %v6038_v43 = vpop.eup %6037  ;;  %6049 = vrcp.f32 %v2980_v63  ;;  %v2801_v62 = vadd.f32 1.0, %v6036_v11  ;;  %v2040_v56 = vsub.f32 0.0, %v9231_v32  ;;  %v9243_v18 = vadd.f32 %v1666_v12, %v8872_v4 }
 0x40b   : > { %v6040_v38 = vpop.eup %6039  ;;  %v3431_v42 = vmul.f32 %v6038_v43, %v9148_v47  ;;  %6051 = vpow2.f32 %v2657_v14  ;;  %v2675_v47 = vmul.f32 1.442695, %v2039_v53  ;;  %v1861_v7 = vsub.f32 0.0, %v9237_v27 }
 0x40c   : > { %v6042_v52 = vpop.eup %6041  ;;  %6053 = vrcp.f32 %v2801_v62  ;;  %v2802_v26 = vadd.f32 1.0, %v6040_v38  ;;  %v2677_v10 = vmul.f32 1.442695, %v2040_v56  ;;  %v3928_v14 = vadd.f32 %v3927_v37, %v3580_v45 }
 0x40d   : > { %v6044_v34 = vpop.eup %6043  ;;  %v3950_v17 = vadd.f32 %v3949_v49, %v3431_v42  ;;  %v3432_v2 = vmul.f32 %v6042_v52, %v9162_v46  ;;  %6055 = vpow2.f32 %v2299_v48  ;;  %v3891_v49 = vadd.f32 %v9198_v29, %v3579_v57 }
 0x40e   : > { %v6046_v59 = vpop.eup %6045  ;;  %6057 = vrcp.f32 %v2802_v26  ;;  %v2989_v13 = vadd.f32 1.0, %v6044_v34  ;;  %v2319_v46 = vmul.f32 1.442695, %v1861_v7  ;;  %v1862_v63 = vsub.f32 0.0, %v9243_v18 }
 0x40f   : > { %v6048_v22 = vpop.eup %6047  ;;  %v3987_v25 = vadd.f32 %v3986_v3, %v3432_v2  ;;  %6059 = vpow2.f32 %v2301_v28  ;;  %v3892_v11 = vadd.f32 %v3891_v49, %v3589_v23  ;;  %v3590_v16 = vmul.f32 %v9183_v41, %v9081_v61  ;;  %v1556_v51 = vpop.f32.mrf.mxu0 }
 0x410   : > { %v6050_v9 = vpop.eup %6049  ;;  %6061 = vrcp.f32 %v2989_v13  ;;  %v3599_v48 = vmul.f32 %v9189_v30, %v9104_v60  ;;  %v2321_v57 = vmul.f32 1.442695, %v1862_v63  ;;  %v1669_v45 = vpop.f32.mrf.mxu1  ;;  %v3600_v62 = vmul.f32 %v9208_v55, %v9111_v8 }
 0x411   : > { %v6052_v31 = vpop.eup %6051  ;;  %6063 = vpow2.f32 %v2675_v47  ;;  %v9255_v61 = vadd.f32 %v1556_v51, %v8869_v19  ;;  %v9259_v60 = vadd.f32 %v1669_v45, %v8872_v4  ;;  %v3609_v30 = vmul.f32 %v9218_v40, %v9136_v50 }
 0x412   : > { %v6054_v35 = vpop.eup %6053  ;;  %v2990_v24 = vadd.f32 1.0, %v6052_v31  ;;  %6065 = vpow2.f32 %v2677_v10  ;;  %v3929_v52 = vadd.f32 %v3928_v14, %v3590_v16  ;;  %v3893_v26 = vadd.f32 %v3892_v11, %v3599_v48 }
 0x413   : > { %v6056_v3 = vpop.eup %6055  ;;  %v3441_v29 = vmul.f32 %v6054_v35, %v9181_v36  ;;  %6067 = vpow2.f32 %v2319_v46  ;;  %v1871_v8 = vsub.f32 0.0, %v9255_v61  ;;  %v1872_v15 = vsub.f32 0.0, %v9259_v60 }
 0x414   : > { %v6058_v43 = vpop.eup %6057  ;;  %6069 = vrcp.f32 %v2990_v24  ;;  %v2811_v23 = vadd.f32 1.0, %v6056_v3  ;;  %v3610_v34 = vmul.f32 %v6046_v59, %v9144_v54  ;;  %v3930_v50 = vadd.f32 %v3929_v52, %v3600_v62 }
 0x415   : > { %v6060_v41 = vpop.eup %6059  ;;  %v3951_v38 = vadd.f32 %v3950_v17, %v3441_v29  ;;  %v3442_v42 = vmul.f32 %v6058_v43, %v9187_v1  ;;  %6071 = vpow2.f32 %v2321_v57  ;;  %v2339_v2 = vmul.f32 1.442695, %v1871_v8 }
 0x416   : > { %v6062_v36 = vpop.eup %6061  ;;  %6073 = vrcp.f32 %v2811_v23  ;;  %v2812_v28 = vadd.f32 1.0, %v6060_v41  ;;  %v3894_v40 = vadd.f32 %v3893_v26, %v3609_v30  ;;  %v3619_v7 = vmul.f32 %v6048_v22, %v9165_v20 }
 0x417   : > { %v6064_v55 = vpop.eup %6063  ;;  %v3988_v53 = vadd.f32 %v3987_v25, %v3442_v42  ;;  %v3620_v37 = vmul.f32 %v6050_v9, %v9168_v0  ;;  %v2341_v25 = vmul.f32 1.442695, %v1872_v15  ;;  %v1559_v49 = vpop.f32.mrf.mxu0  ;;  %v3931_v63 = vadd.f32 %v3930_v50, %v3610_v34 }
 0x418   : > { %v6066_v12 = vpop.eup %6065  ;;  %6075 = vrcp.f32 %v2812_v28  ;;  %v2999_v1 = vadd.f32 1.0, %v6064_v55  ;;  %v1672_v46 = vpop.f32.mrf.mxu1  ;;  %v9269_v54 = vadd.f32 %v1559_v49, %v8869_v19  ;;  %v3629_v35 = vmul.f32 %v6062_v36, %v9193_v39 }
 0x419   : > { %v6068_v56 = vpop.eup %6067  ;;  %v3000_v17 = vadd.f32 1.0, %v6066_v12  ;;  %v9272_v59 = vadd.f32 %v1672_v46, %v8872_v4  ;;  %v3895_v16 = vadd.f32 %v3894_v40, %v3619_v7  ;;  %v3932_v29 = vadd.f32 %v3931_v63, %v3620_v37 }
 0x41a   : > { %v6070_v47 = vpop.eup %6069  ;;  %6077 = vrcp.f32 %v2999_v1  ;;  %v2821_v13 = vadd.f32 1.0, %v6068_v56  ;;  %v1881_v9 = vsub.f32 0.0, %v9269_v54 }
 0x41b   : > { %v6072_v10 = vpop.eup %6071  ;;  %6079 = vrcp.f32 %v3000_v17  ;;  %v3630_v22 = vmul.f32 %v6070_v47, %v9203_v58  ;;  %v1882_v11 = vsub.f32 0.0, %v9272_v59 }
 0x41c   : > { %v6074_v31 = vpop.eup %6073  ;;  %6081 = vrcp.f32 %v2821_v13  ;;  %v2822_v14 = vadd.f32 1.0, %v6072_v10  ;;  %v2359_v57 = vmul.f32 1.442695, %v1881_v9 }
 0x41d   : > { %v3451_v20 = vmul.f32 %v6074_v31, %v9206_v6  ;;  %6083 = vpow2.f32 %v2339_v2  ;;  %v2361_v39 = vmul.f32 1.442695, %v1882_v11  ;;  %v3896_v6 = vadd.f32 %v3895_v16, %v3629_v35 }
 0x41e   : > { %v6076_v0 = vpop.eup %6075  ;;  %6085 = vrcp.f32 %v2822_v14  ;;  %v3933_v62 = vadd.f32 %v3932_v29, %v3630_v22 }
 0x41f   : > { %v3952_v24 = vadd.f32 %v3951_v38, %v3451_v20  ;;  %v3452_v3 = vmul.f32 %v6076_v0, %v9216_v33  ;;  %6087 = vpow2.f32 %v2341_v25  ;;  %v1562_v33 = vpop.f32.mrf.mxu0 }
 0x420   : > { %v6078_v48 = vpop.eup %6077  ;;  %6089 = vpow2.f32 %v2359_v57  ;;  %v1675_v36 = vpop.f32.mrf.mxu1  ;;  %v9284_v55 = vadd.f32 %v1562_v33, %v8869_v19 }
 0x421   : > { %v6080_v51 = vpop.eup %6079  ;;  %v3989_v45 = vadd.f32 %v3988_v53, %v3452_v3  ;;  %v3639_v43 = vmul.f32 %v6078_v48, %v9226_v21  ;;  %6091 = vpow2.f32 %v2361_v39  ;;  %v9287_v21 = vadd.f32 %v1675_v36, %v8872_v4 }
 0x422   : > { %v6082_v58 = vpop.eup %6081  ;;  %v3640_v23 = vmul.f32 %v6080_v51, %v9231_v32  ;;  %v1891_v26 = vsub.f32 0.0, %v9284_v55  ;;  %v4064_v51 = vld [vmem:[#allocation9] sm:$0xff] }
 0x423   : > { %v6084_v41 = vpop.eup %6083  ;;  %v3897_v42 = vadd.f32 %v3896_v6, %v3639_v43  ;;  %v3461_v38 = vmul.f32 %v6082_v58, %v9237_v27  ;;  %v1892_v34 = vsub.f32 0.0, %v9287_v21  ;;  %v4065_v6 = vld [vmem:[#allocation9 + $0x8] sm:$0xff]  ;;  %4122 = vmatpush.xpose.msrb.mxu2 %v4064_v51 }
 0x424   : > { %v6086_v30 = vpop.eup %6085  ;;  %v3934_v28 = vadd.f32 %v3933_v62, %v3640_v23  ;;  %v2831_v8 = vadd.f32 1.0, %v6084_v41  ;;  %v2379_v47 = vmul.f32 1.442695, %v1891_v26  ;;  %4142 = vmatpush.xpose.msrb.mxu3 %v4065_v6 }
 0x425   : > { %v6088_v53 = vpop.eup %6087  ;;  %v3898_v15 = vrot.slane %v3897_v42, 4  ;;  %v3953_v32 = vadd.f32 %v3952_v24, %v3461_v38  ;;  %v3462_v12 = vmul.f32 %v6086_v30, %v9243_v18  ;;  %v2381_v10 = vmul.f32 1.442695, %v1892_v34 }
 0x426   : > { %v3935_v52 = vrot.slane %v3934_v28, 4  ;;  %6093 = vrcp.f32 %v2831_v8  ;;  %v2832_v27 = vadd.f32 1.0, %v6088_v53  ;;  %v6090_v17 = vpop.eup %6089 }
 0x427   : > { %v3899_v1 = vadd.f32 %v3898_v15, %v3897_v42  ;;  %v3990_v56 = vadd.f32 %v3989_v45, %v3462_v12  ;;  %v6092_v50 = vpop.eup %6091  ;;  %v2841_v13 = vadd.f32 1.0, %v6090_v17  ;;  %v1565_v25 = vpop.f32.mrf.mxu0 }
 0x428   : > { %v3936_v2 = vadd.f32 %v3935_v52, %v3934_v28  ;;  %6095 = vrcp.f32 %v2832_v27  ;;  %v2842_v37 = vadd.f32 1.0, %v6092_v50  ;;  %v1678_v49 = vpop.f32.mrf.mxu1  ;;  %v9293_v14 = vadd.f32 %v1565_v25, %v8869_v19 }
 0x429   : > { %v3900_v40 = vrot.slane %v3899_v1, 2  ;;  %6097 = vpow2.f32 %v2379_v47  ;;  %v9296_v63 = vadd.f32 %v1678_v49, %v8872_v4 }
 0x42a   : > { %v3937_v7 = vrot.slane %v3936_v2, 2  ;;  %6099 = vrcp.f32 %v2841_v13  ;;  %v1901_v9 = vsub.f32 0.0, %v9293_v14 }
 0x42b   : > { %v3901_v18 = vadd.f32 %v3900_v40, %v3899_v1  ;;  %6101 = vrcp.f32 %v2842_v37  ;;  %v1902_v11 = vsub.f32 0.0, %v9296_v63  ;;  %v4077_v40 = vld [vmem:[#allocation9 + $0x68] sm:$0x3] }
 0x42c   : > { %v6094_v46 = vpop.eup %6093  ;;  %v3938_v31 = vadd.f32 %v3937_v7, %v3936_v2  ;;  %6103 = vpow2.f32 %v2381_v10  ;;  %v2399_v57 = vmul.f32 1.442695, %v1901_v9  ;;  %4181 = vmatpush.xpose.msra.mxu3 %v4077_v40 }
 0x42d   : > { %v3902_v35 = vrot.slane %v3901_v18, 1  ;;  %v3471_v20 = vmul.f32 %v6094_v46, %v9255_v61  ;;  %v2401_v39 = vmul.f32 1.442695, %v1902_v11 }
 0x42e   : > { %v6096_v0 = vpop.eup %6095  ;;  %v3939_v22 = vrot.slane %v3938_v31, 1  ;;  %6105 = vpow2.f32 %v2399_v57  ;;  %v4079_v57 = vld [vmem:[#allocation9 + $0x78] sm:$0x3] }
 0x42f   : > { %v3903_v16 = vadd.f32 %v3902_v35, %v3901_v18  ;;  %v3954_v24 = vadd.f32 %v3953_v32, %v3471_v20  ;;  %v3472_v3 = vmul.f32 %v6096_v0, %v9259_v60  ;;  %v6098_v48 = vpop.eup %6097  ;;  %v1568_v38 = vpop.f32.mrf.mxu0  ;;  %v4066_v35 = vld [vmem:[#allocation9 + $0x10] sm:$0xff]  ;;  %v4067_v20 = vld [vmem:[#allocation9 + $0x18] sm:$0xff] }
 0x430   : > { %v3940_v29 = vadd.f32 %v3939_v22, %v3938_v31  ;;  %v6100_v45 = vpop.eup %6099  ;;  %v2851_v58 = vadd.f32 1.0, %v6098_v48  ;;  %v1681_v33 = vpop.f32.mrf.mxu1  ;;  %v9306_v15 = vadd.f32 %v1568_v38, %v8869_v19  ;;  %4182 = vmatpush.xpose.msra.mxu3 %v4067_v20 }
 0x431   : > { %v4030_v43 = vrot.slane %v3903_v16, 2  ;;  %v3991_v61 = vadd.f32 %v3990_v56, %v3472_v3  ;;  %v6102_v62 = vpop.eup %6101  ;;  %v3481_v41 = vmul.f32 %v6100_v45, %v9269_v54  ;;  %v9309_v32 = vadd.f32 %v1681_v33, %v8872_v4 }
 0x432   : > { %v4031_v23 = vrot.slane %v3940_v29, 1  ;;  %v6104_v60 = vpop.eup %6103  ;;  %v3482_v42 = vmul.f32 %v6102_v62, %v9272_v59  ;;  %6107 = vrcp.f32 %v2851_v58  ;;  %v1911_v59 = vsub.f32 0.0, %v9306_v15  ;;  %v4078_v29 = vld [vmem:[#allocation9 + $0x70] sm:$0x3] }
 0x433   : > { %v3955_v30 = vadd.f32 %v3954_v24, %v3481_v41  ;;  %v2852_v28 = vadd.f32 1.0, %v6104_v60  ;;  %6109 = vpow2.f32 %v2401_v39  ;;  %v1912_v12 = vsub.f32 0.0, %v9309_v32  ;;  %v4069_v60 = vld [vmem:[#allocation9 + $0x28] sm:$0xff] }
 0x434   : > { %v4042_v36 = vsel %vm4041_vm6, %v4030_v43, %v4031_v23  ;;  %v3992_v53 = vadd.f32 %v3991_v61, %v3482_v42  ;;  %v6106_v52 = vpop.eup %6105  ;;  %v2419_v1 = vmul.f32 1.442695, %v1911_v59  ;;  %v4080_v59 = vld [vmem:[#allocation9 + $0x80] sm:$0x3] }
 0x435   : > { %v4044_v8 = vsel %vm4043_vm7, %v8967_v44, %v4042_v36  ;;  %6111 = vrcp.f32 %v2852_v28  ;;  %v2861_v26 = vadd.f32 1.0, %v6106_v52  ;;  %v2421_v34 = vmul.f32 1.442695, %v1912_v12  ;;  %v4081_v12 = vld [vmem:[#allocation9 + $0x88] sm:$0x3] }
 0x436   : > { %v4045_v54 = vsel %vm572_vm0, %v8442_v5, %v4044_v8  ;;  %v4076_v5 = vld [vmem:[#allocation9 + $0x60] sm:$0x3] }
 0x437   : > { %v9316_v17 = vmul.f32 0.00390625, %v4045_v54  ;;  %6113 = vrcp.f32 %v2861_v26  ;;  %v1571_v47 = vpop.f32.mrf.mxu0  ;;  %4161 = vmatpush.xpose.msra.mxu2 %v4076_v5 }
 0x438   : > { %v6108_v27 = vpop.eup %6107  ;;  %v1684_v50 = vpop.f32.mrf.mxu1  ;;  %6115 = vpow2.f32 %v2419_v1  ;;  %v9319_v7 = vadd.f32 %v1571_v47, %v8869_v19 }
 0x439   : > { %v6110_v44 = vpop.eup %6109  ;;  %v3491_v56 = vmul.f32 %v6108_v27, %v9284_v55  ;;  %v9322_v37 = vadd.f32 %v1684_v50, %v8872_v4  ;;  %v4087_v18 = vperm.slane %v9316_v17, 0  ;;  %v4088_v25 = vperm.slane %v9316_v17, 1 }
 0x43a   : > { %v2862_v2 = vadd.f32 1.0, %v6110_v44  ;;  %v1921_v49 = vsub.f32 0.0, %v9319_v7  ;;  %v4089_v61 = vperm.slane %v9316_v17, 2  ;;  %v4090_v58 = vperm.slane %v9316_v17, 3 }
 0x43b   : > { %v6112_v13 = vpop.eup %6111  ;;  %v3956_v10 = vadd.f32 %v3955_v30, %v3491_v56  ;;  %v1922_v46 = vsub.f32 0.0, %v9322_v37  ;;  %4123 = vmatmul.f32.vlgmr.msrb.gmra.mxu2 %v4087_v18  ;;  %4143 = vmatmul.f32.vlgmr.msrb.gmra.mxu3 %v4088_v25  ;;  %v4091_v26 = vperm.slane %v9316_v17, 4  ;;  %v4092_v1 = vperm.slane %v9316_v17, 5 }
 0x43c   : > { %v3492_v55 = vmul.f32 %v6112_v13, %v9287_v21  ;;  %6117 = vrcp.f32 %v2862_v2  ;;  %v2439_v0 = vmul.f32 1.442695, %v1921_v49  ;;  %4162 = vmatpush.xpose.msra.mxu2 %v4066_v35  ;;  %4221 = vmatpush.xpose.msrb.mxu3 %v4079_v57  ;;  %v4071_v2 = vld [vmem:[#allocation9 + $0x38] sm:$0xff]  ;;  %v4094_v35 = vperm.slane %v9316_v17, 7 }
 0x43d   : > { %6119 = vpow2.f32 %v2421_v34  ;;  %v2441_v22 = vmul.f32 1.442695, %v1922_v46  ;;  %v6114_v21 = vpop.eup %6113  ;;  %v4070_v34 = vld [vmem:[#allocation9 + $0x30] sm:$0xff] }
 0x43e   : > { %v3993_v31 = vadd.f32 %v3992_v53, %v3492_v55  ;;  %v6116_v9 = vpop.eup %6115  ;;  %v3501_v11 = vmul.f32 %v6114_v21, %v9293_v14  ;;  %6121 = vpow2.f32 %v2439_v0 }
 0x43f   : > { %v2871_v24 = vadd.f32 1.0, %v6116_v9  ;;  %6123 = vpow2.f32 %v2441_v22  ;;  %v1574_v3 = vpop.f32.mrf.mxu0 }
 0x440   : > { %v1687_v48 = vpop.f32.mrf.mxu1  ;;  %v3957_v51 = vadd.f32 %v3956_v10, %v3501_v11  ;;  %v9332_v45 = vadd.f32 %v1574_v3, %v8869_v19  ;;  %4201 = vmatpush.xpose.msrb.mxu2 %v4078_v29  ;;  %4222 = vmatpush.xpose.msrb.mxu3 %v4069_v60 }
 0x441   : > { %v9335_v43 = vadd.f32 %v1687_v48, %v8872_v4  ;;  %6125 = vrcp.f32 %v2871_v24 }
 0x442   : > { %v6118_v16 = vpop.eup %6117  ;;  %v1931_v23 = vsub.f32 0.0, %v9332_v45 }
 0x443   : > { %v6120_v39 = vpop.eup %6119  ;;  %v3502_v6 = vmul.f32 %v6118_v16, %v9296_v63  ;;  %v1932_v41 = vsub.f32 0.0, %v9335_v43  ;;  %v4068_v63 = vld [vmem:[#allocation9 + $0x20] sm:$0xff]  ;;  %4163 = vmatmul.f32.vlgmr.msra.gmra.mxu2 %v4089_v61  ;;  %4183 = vmatmul.f32.vlgmr.msra.gmra.mxu3 %v4090_v58 }
 0x444   : > { %v2872_v14 = vadd.f32 1.0, %v6120_v39  ;;  %v6122_v42 = vpop.eup %6121  ;;  %v2459_v38 = vmul.f32 1.442695, %v1931_v23  ;;  %4202 = vmatpush.xpose.msrb.mxu2 %v4068_v63  ;;  %4261 = vmatpush.xpose.msra.mxu3 %v4081_v12 }
 0x445   : > { %v3994_v62 = vadd.f32 %v3993_v31, %v3502_v6  ;;  %v6124_v33 = vpop.eup %6123  ;;  %v2881_v36 = vadd.f32 1.0, %v6122_v42  ;;  %v2461_v30 = vmul.f32 1.442695, %v1932_v41  ;;  %v4093_v31 = vperm.slane %v9316_v17, 6 }
 0x446   : > { %6127 = vrcp.f32 %v2872_v14  ;;  %v2882_v28 = vadd.f32 1.0, %v6124_v33 }
 0x447   : > { %6129 = vpow2.f32 %v2459_v38  ;;  %v6126_v8 = vpop.eup %6125  ;;  %v1577_v53 = vpop.f32.mrf.mxu0 }
 0x448   : > { %6131 = vrcp.f32 %v2881_v36  ;;  %v1690_v54 = vpop.f32.mrf.mxu1  ;;  %v3511_v52 = vmul.f32 %v6126_v8, %v9306_v15  ;;  %4241 = vmatpush.xpose.msra.mxu2 %v4080_v59  ;;  %4262 = vmatpush.xpose.msra.mxu3 %v4071_v2  ;;  %v9356_v3 = vadd.f32 %v1577_v53, %v8869_v19 }
 0x449   : > { %6133 = vrcp.f32 %v2882_v28  ;;  %v9359_v29 = vadd.f32 %v1690_v54, %v8872_v4 }
 0x44a   : > { %6135 = vpow2.f32 %v2461_v30  ;;  %v3958_v44 = vadd.f32 %v3957_v51, %v3511_v52  ;;  %v1941_v51 = vsub.f32 0.0, %v9356_v3 }
 0x44b   : > { %4203 = vmatmul.f32.vlgmr.msrb.gmra.mxu2 %v4091_v26  ;;  %4223 = vmatmul.f32.vlgmr.msrb.gmra.mxu3 %v4092_v1  ;;  %v1942_v6 = vsub.f32 0.0, %v9359_v29 }
 0x44c   : > { %v6128_v27 = vpop.eup %6127  ;;  %4242 = vmatpush.xpose.msra.mxu2 %v4070_v34  ;;  %v2479_v61 = vmul.f32 1.442695, %v1941_v51 }
 0x44d   : > { %v3512_v56 = vmul.f32 %v6128_v27, %v9309_v32  ;;  %v6130_v47 = vpop.eup %6129  ;;  %v2481_v23 = vmul.f32 1.442695, %v1942_v6 }
 0x44e   : > { %v6132_v15 = vpop.eup %6131  ;;  %v2891_v5 = vadd.f32 1.0, %v6130_v47 }
 0x44f   : > { %v3995_v50 = vadd.f32 %v3994_v62, %v3512_v56  ;;  %v6134_v40 = vpop.eup %6133  ;;  %v3521_v13 = vmul.f32 %v6132_v15, %v9319_v7  ;;  %v1580_v18 = vpop.f32.mrf.mxu0 }
 0x450   : > { %v6136_v10 = vpop.eup %6135  ;;  %v3522_v55 = vmul.f32 %v6134_v40, %v9322_v37  ;;  %6137 = vrcp.f32 %v2891_v5  ;;  %v1693_v25 = vpop.f32.mrf.mxu1  ;;  %v9362_v57 = vadd.f32 %v1580_v18, %v8869_v19 }
 0x451   : > { %v3959_v32 = vadd.f32 %v3958_v44, %v3521_v13  ;;  %v2892_v49 = vadd.f32 1.0, %v6136_v10  ;;  %v9365_v39 = vadd.f32 %v1693_v25, %v8872_v4 }
 0x452   : > { %v3996_v46 = vadd.f32 %v3995_v50, %v3522_v55 }
 0x453   : > { %6139 = vrcp.f32 %v2892_v49  ;;  %4243 = vmatmul.f32.vlgmr.msra.gmra.mxu2 %v4093_v31  ;;  %4263 = vmatmul.f32.vlgmr.msra.gmra.mxu3 %v4094_v35  ;;  %v1952_v14 = vsub.f32 0.0, %v9365_v39 }
 0x454   : > { %6141 = vpow2.f32 %v2479_v61 }
 0x455   : > { %v2501_v42 = vmul.f32 1.442695, %v1952_v14  ;;  %6143 = vpow2.f32 %v2481_v23 }
 0x456   : > { %v6138_v20 = vpop.eup %6137 }
 0x457   : > { %v3531_v0 = vmul.f32 %v6138_v20, %v9332_v45  ;;  %v1583_v7 = vpop.f32.mrf.mxu0 }
 0x458   : > { %v1696_v22 = vpop.f32.mrf.mxu1  ;;  %v9370_v45 = vadd.f32 %v1583_v7, %v8869_v19 }
 0x459   : > { %v6140_v21 = vpop.eup %6139  ;;  %v9350_v37 = vadd.f32 %v3959_v32, %v3531_v0  ;;  %v9376_v63 = vadd.f32 %v1696_v22, %v8872_v4 }
 0x45a   : > { %v3532_v9 = vmul.f32 %v6140_v21, %v9335_v43  ;;  %v1951_v43 = vsub.f32 0.0, %v9362_v57  ;;  %v1961_v41 = vsub.f32 0.0, %v9370_v45  ;;  %v6142_v59 = vpop.eup %6141 }
 0x45b   : > { %v1962_v36 = vsub.f32 0.0, %v9376_v63  ;;  %v6144_v12 = vpop.eup %6143  ;;  %v2901_v56 = vadd.f32 1.0, %v6142_v59 }
 0x45c   : > { %v9353_v11 = vadd.f32 %v3996_v46, %v3532_v9  ;;  %v2499_v60 = vmul.f32 1.442695, %v1951_v43  ;;  %v2519_v33 = vmul.f32 1.442695, %v1961_v41  ;;  %v2902_v47 = vadd.f32 1.0, %v6144_v12 }
 0x45d   : > { %v2521_v53 = vmul.f32 1.442695, %v1962_v36 }
 0x45e   : > { %6145 = vpow2.f32 %v2499_v60 }
 0x45f   : > { %v1586_v16 = vpop.f32.mrf.mxu0  ;;  %6147 = vpow2.f32 %v2501_v42 }
 0x460   : > { %v1699_v24 = vpop.f32.mrf.mxu1  ;;  %v9379_v38 = vadd.f32 %v1586_v16, %v8869_v19  ;;  %6149 = vpow2.f32 %v2519_v33 }
 0x461   : > { %v9384_v54 = vadd.f32 %v1699_v24, %v8872_v4  ;;  %6151 = vpow2.f32 %v2521_v53 }
 0x462   : > { %v1971_v30 = vsub.f32 0.0, %v9379_v38 }
 0x463   : > { %v1972_v34 = vsub.f32 0.0, %v9384_v54 }
 0x464   : > { %v2539_v52 = vmul.f32 1.442695, %v1971_v30  ;;  %v6146_v26 = vpop.eup %6145 }
 0x465   : > { %v6148_v44 = vpop.eup %6147  ;;  %v2911_v15 = vadd.f32 1.0, %v6146_v26  ;;  %v2541_v25 = vmul.f32 1.442695, %v1972_v34 }
 0x466   : > { %v6150_v50 = vpop.eup %6149  ;;  %6153 = vpow2.f32 %v2539_v52  ;;  %v2912_v13 = vadd.f32 1.0, %v6148_v44 }
 0x467   : > { %v1589_v17 = vpop.f32.mrf.mxu0  ;;  %6155 = vrcp.f32 %v2901_v56  ;;  %v2921_v46 = vadd.f32 1.0, %v6150_v50  ;;  %v6152_v35 = vpop.eup %6151 }
 0x468   : > { %v1702_v48 = vpop.f32.mrf.mxu1  ;;  %v9387_v27 = vadd.f32 %v1589_v17, %v8869_v19  ;;  %6157 = vrcp.f32 %v2902_v47  ;;  %v2922_v17 = vadd.f32 1.0, %v6152_v35 }
 0x469   : > { %v9390_v1 = vadd.f32 %v1702_v48, %v8872_v4  ;;  %6159 = vrcp.f32 %v2911_v15 }
 0x46a   : > { %v1981_v5 = vsub.f32 0.0, %v9387_v27  ;;  %6161 = vrcp.f32 %v2912_v13 }
 0x46b   : > { %v1982_v10 = vsub.f32 0.0, %v9390_v1  ;;  %6163 = vpow2.f32 %v2541_v25 }
 0x46c   : > { %v2559_v20 = vmul.f32 1.442695, %v1981_v5  ;;  %v6154_v9 = vpop.eup %6153  ;;  %6165 = vrcp.f32 %v2921_v46 }
 0x46d   : > { %v2561_v22 = vmul.f32 1.442695, %v1982_v10  ;;  %v9417_v51 = vpop.eup %6155  ;;  %v2931_v61 = vadd.f32 1.0, %v6154_v9 }
 0x46e   : > { %6167 = vpow2.f32 %v2559_v20  ;;  %v6158_v14 = vpop.eup %6157 }
 0x46f   : > { %v1592_v58 = vpop.f32.mrf.mxu0  ;;  %6169 = vpow2.f32 %v2561_v22  ;;  %v9421_v41 = vpop.eup %6159 }
 0x470   : > { %v1705_v62 = vpop.f32.mrf.mxu1  ;;  %v9394_v2 = vadd.f32 %v1592_v58, %v8869_v19  ;;  %v9426_v33 = vpop.eup %6161 }
 0x471   : > { %v9398_v40 = vadd.f32 %v1705_v62, %v8872_v4 }
 0x472   : > { %v1991_v32 = vsub.f32 0.0, %v9394_v2 }
 0x473   : > { %v1992_v0 = vsub.f32 0.0, %v9398_v40 }
 0x474   : > { %v2579_v16 = vmul.f32 1.442695, %v1991_v32 }
 0x475   : > { %v2581_v6 = vmul.f32 1.442695, %v1992_v0 }
 0x476   : > { %6171 = vpow2.f32 %v2579_v16 }
 0x477   : > { %v1595_v28 = vpop.f32.mrf.mxu0  ;;  %6173 = vrcp.f32 %v2922_v17 }
 0x478   : > { %v1708_v8 = vpop.f32.mrf.mxu1  ;;  %v9403_v49 = vadd.f32 %v1595_v28, %v8869_v19  ;;  %v6164_v28 = vpop.eup %6163  ;;  %6175 = vpow2.f32 %v2581_v6 }
 0x479   : > { %v9406_v31 = vadd.f32 %v1708_v8, %v8872_v4  ;;  %v9432_v59 = vpop.eup %6165  ;;  %6177 = vrcp.f32 %v2931_v61  ;;  %v2932_v34 = vadd.f32 1.0, %v6164_v28 }
 0x47a   : > { %v2001_v24 = vsub.f32 0.0, %v9403_v49  ;;  %v6168_v26 = vpop.eup %6167 }
 0x47b   : > { %v2002_v48 = vsub.f32 0.0, %v9406_v31  ;;  %v6170_v56 = vpop.eup %6169  ;;  %v2941_v5 = vadd.f32 1.0, %v6168_v26 }
 0x47c   : > { %v2599_v60 = vmul.f32 1.442695, %v2001_v24  ;;  %v6172_v47 = vpop.eup %6171 }
 0x47d   : > { %v2601_v36 = vmul.f32 1.442695, %v2002_v48  ;;  %v9435_v15 = vpop.eup %6173  ;;  %v2951_v46 = vadd.f32 1.0, %v6172_v47 }
 0x47e   : > { %6179 = vpow2.f32 %v2599_v60 }
 0x47f   : > { %v1598_v55 = vpop.f32.mrf.mxu0  ;;  %6181 = vpow2.f32 %v2601_v36 }
 0x480   : > { %v1711_v18 = vpop.f32.mrf.mxu1  ;;  %v9410_v7 = vadd.f32 %v1598_v55, %v8869_v19  ;;  %v6176_v55 = vpop.eup %6175 }
 0x481   : > { %v9413_v21 = vadd.f32 %v1711_v18, %v8872_v4  ;;  %v2942_v18 = vadd.f32 1.0, %v6170_v56  ;;  %v6178_v32 = vpop.eup %6177  ;;  %v2952_v9 = vadd.f32 1.0, %v6176_v55 }
 0x482   : > { %v2011_v43 = vsub.f32 0.0, %v9410_v7 }
 0x483   : > { %v2012_v58 = vsub.f32 0.0, %v9413_v21 }
 0x484   : > { %v2619_v8 = vmul.f32 1.442695, %v2011_v43  ;;  %v6180_v20 = vpop.eup %6179 }
 0x485   : > { %v2621_v12 = vmul.f32 1.442695, %v2012_v58  ;;  %v6182_v22 = vpop.eup %6181  ;;  %v2961_v6 = vadd.f32 1.0, %v6180_v20  ;;  %v3541_v58 = vmul.f32 %v9417_v51, %v9356_v3 }
 0x486   : > { %6183 = vpow2.f32 %v2619_v8 }
 0x487   : > { %v1601_v62 = vpop.f32.mrf.mxu0  ;;  %6185 = vpow2.f32 %v2621_v12 }
 0x488   : > { %v1714_v23 = vpop.f32.mrf.mxu1  ;;  %v9424_v42 = vadd.f32 %v1601_v62, %v8869_v19  ;;  %v3542_v62 = vmul.f32 %v6158_v14, %v9359_v29  ;;  %v3961_v14 = vadd.f32 %v9350_v37, %v3541_v58  ;;  %v347_v37 = vlaneseq }
 0x489   : > { %v9429_v30 = vadd.f32 %v1714_v23, %v8872_v4  ;;  %v2962_v23 = vadd.f32 1.0, %v6182_v22 }
 0x48a   : > { %v2021_v53 = vsub.f32 0.0, %v9424_v42  ;;  %v3998_v56 = vadd.f32 %v9353_v11, %v3542_v62  ;;  %vm9467_vm8 = vcmp.lt.s32.totalorder %v347_v37, 256 }
 0x48b   : > { %v2022_v52 = vsub.f32 0.0, %v9429_v30 }
 0x48c   : > { %v2639_v44 = vmul.f32 1.442695, %v2021_v53  ;;  %v6184_v24 = vpop.eup %6183 }
 0x48d   : > { %v2641_v50 = vmul.f32 1.442695, %v2022_v52  ;;  %v6186_v48 = vpop.eup %6185  ;;  %v2971_v36 = vadd.f32 1.0, %v6184_v24 }
 0x48e   : > { %6187 = vpow2.f32 %v2639_v44  ;;  %v2972_v12 = vadd.f32 1.0, %v6186_v48  ;;  %v3551_v44 = vmul.f32 %v9421_v41, %v9362_v57 }
 0x48f   : > { %v1604_v13 = vpop.f32.mrf.mxu0  ;;  %6189 = vrcp.f32 %v2932_v34 }
 0x490   : > { %v1717_v10 = vpop.f32.mrf.mxu1  ;;  %v9438_v25 = vadd.f32 %v1604_v13, %v8869_v19  ;;  %6191 = vpow2.f32 %v2641_v50  ;;  %v3962_v11 = vadd.f32 %v3961_v14, %v3551_v44  ;;  %v4072_v14 = vld [vmem:[#allocation9 + $0x40] sm:$0xff] }
 0x491   : > { %v9441_v35 = vadd.f32 %v1717_v10, %v8872_v4  ;;  %6193 = vrcp.f32 %v2941_v5 }
 0x492   : > { %v2031_v0 = vsub.f32 0.0, %v9438_v25  ;;  %6195 = vrcp.f32 %v2942_v18 }
 0x493   : > { %v2032_v16 = vsub.f32 0.0, %v9441_v35  ;;  %6197 = vrcp.f32 %v2951_v46 }
 0x494   : > { %v2659_v17 = vmul.f32 1.442695, %v2031_v0  ;;  %v6188_v61 = vpop.eup %6187  ;;  %v6484_v0 = vmov 0.0  }
 0x495   : > { %v2661_v43 = vmul.f32 1.442695, %v2032_v16  ;;  %v6190_v60 = vpop.eup %6189  ;;  %v2981_v3 = vadd.f32 1.0, %v6188_v61  ;;  %351 = vst.msk [vmem:[#allocation2 + $0x8] sm:$0x3] %vm9467_vm8, %v6484_v0 }
 0x496   : > { %6199 = vpow2.f32 %v2659_v17  ;;  %v6192_v53 = vpop.eup %6191  ;;  %v3572_v16 = vmul.f32 %v6190_v60, %v9384_v54  ;;  %v4082_v60 = vld [vmem:[#allocation9 + $0x90] sm:$0x3] }
 0x497   : > { %6201 = vrcp.f32 %v2952_v9  ;;  %v1607_v28 = vpop.f32.mrf.mxu0  ;;  %v6194_v26 = vpop.eup %6193  ;;  %v2982_v50 = vadd.f32 1.0, %v6192_v53  ;;  %4281 = vmatpush.xpose.msrb.mxu2 %v4082_v60 }
 0x498   : > { %v1720_v8 = vpop.f32.mrf.mxu1  ;;  %6203 = vpow2.f32 %v2661_v43  ;;  %v9449_v52 = vadd.f32 %v1607_v28, %v8869_v19  ;;  %v6196_v51 = vpop.eup %6195  ;;  %v3552_v19 = vmul.f32 %v9426_v33, %v9365_v39  ;;  %v3562_v39 = vmul.f32 %v9435_v15, %v9376_v63 }
 0x499   : > { %6205 = vrcp.f32 %v2961_v6  ;;  %v9454_v29 = vadd.f32 %v1720_v8, %v8872_v4  ;;  %v6198_v47 = vpop.eup %6197  ;;  %v3561_v4 = vmul.f32 %v9432_v59, %v9370_v45  ;;  %v3571_v33 = vmul.f32 %v6178_v32, %v9379_v38 }
 0x49a   : > { %6207 = vrcp.f32 %v2962_v23  ;;  %v2041_v34 = vsub.f32 0.0, %v9449_v52  ;;  %v3999_v59 = vadd.f32 %v3998_v56, %v3552_v19  ;;  %v3581_v63 = vmul.f32 %v6194_v26, %v9387_v27  ;;  %v4073_v56 = vld [vmem:[#allocation9 + $0x48] sm:$0xff] }
 0x49b   : > { %6209 = vrcp.f32 %v2971_v36  ;;  %v2042_v57 = vsub.f32 0.0, %v9454_v29  ;;  %v3963_v9 = vadd.f32 %v3962_v11, %v3561_v4  ;;  %v3582_v17 = vmul.f32 %v6196_v51, %v9390_v1  ;;  %4282 = vmatpush.xpose.msrb.mxu2 %v4072_v14 }
 0x49c   : > { %v6200_v41 = vpop.eup %6199  ;;  %6211 = vrcp.f32 %v2972_v12  ;;  %v2679_v5 = vmul.f32 1.442695, %v2041_v34  ;;  %v4000_v32 = vadd.f32 %v3999_v59, %v3562_v39  ;;  %v3591_v48 = vmul.f32 %v6198_v47, %v9394_v2  ;;  %v4083_v2 = vld [vmem:[#allocation9 + $0x98] sm:$0x3] }
 0x49d   : > { %v6202_v13 = vpop.eup %6201  ;;  %6213 = vrcp.f32 %v2981_v3  ;;  %v2991_v10 = vadd.f32 1.0, %v6200_v41  ;;  %v2681_v55 = vmul.f32 1.442695, %v2042_v57  ;;  %v3964_v24 = vadd.f32 %v3963_v9, %v3571_v33  ;;  %4301 = vmatpush.xpose.msrb.mxu3 %v4083_v2  ;;  %v3644_v9 = vld [vmem:[#allocation2 + $0x8] sm:$0x3] }
 0x49e   : > { %v6204_v18 = vpop.eup %6203  ;;  %6215 = vpow2.f32 %v2679_v5  ;;  %v4001_v61 = vadd.f32 %v4000_v32, %v3572_v16  ;;  %v3592_v62 = vmul.f32 %v6202_v13, %v9398_v40 }
 0x49f   : > { %v6206_v45 = vpop.eup %6205  ;;  %6217 = vrcp.f32 %v2982_v50  ;;  %v2992_v20 = vadd.f32 1.0, %v6204_v18  ;;  %v3965_v58 = vadd.f32 %v3964_v24, %v3581_v63 }
 0x4a0   : > { %v6208_v22 = vpop.eup %6207  ;;  %6219 = vpow2.f32 %v2681_v55  ;;  %v3601_v54 = vmul.f32 %v6206_v45, %v9403_v49  ;;  %v4002_v28 = vadd.f32 %v4001_v61, %v3582_v17 }
 0x4a1   : > { %v6210_v38 = vpop.eup %6209  ;;  %6221 = vrcp.f32 %v2991_v10  ;;  %v3966_v8 = vadd.f32 %v3965_v58, %v3591_v48  ;;  %v3602_v53 = vmul.f32 %v6208_v22, %v9406_v31  ;;  %4302 = vmatpush.xpose.msrb.mxu3 %v4073_v56 }
 0x4a2   : > { %v6212_v15 = vpop.eup %6211  ;;  %6223 = vrcp.f32 %v2992_v20  ;;  %v3611_v1 = vmul.f32 %v6210_v38, %v9410_v7  ;;  %v4003_v44 = vadd.f32 %v4002_v28, %v3592_v62 }
 0x4a3   : > { %v6214_v6 = vpop.eup %6213  ;;  %v3967_v40 = vadd.f32 %v3966_v8, %v3601_v54  ;;  %v3612_v49 = vmul.f32 %v6212_v15, %v9413_v21 }
 0x4a4   : > { %v6216_v43 = vpop.eup %6215  ;;  %v3621_v3 = vmul.f32 %v6214_v6, %v9424_v42  ;;  %v4004_v34 = vadd.f32 %v4003_v44, %v3602_v53  ;;  %v4084_v6 = vld [vmem:[%s9557_s4] sm:$0x1] }
 0x4a5   : > { %v6218_v27 = vpop.eup %6217  ;;  %v3001_v23 = vadd.f32 1.0, %v6216_v43  ;;  %v3968_v31 = vadd.f32 %v3967_v40, %v3611_v1 }
 0x4a6   : > { %v6220_v36 = vpop.eup %6219  ;;  %v3622_v7 = vmul.f32 %v6218_v27, %v9429_v30  ;;  %v4005_v19 = vadd.f32 %v4004_v34, %v3612_v49 }
 0x4a7   : > { %v6222_v12 = vpop.eup %6221  ;;  %6225 = vrcp.f32 %v3001_v23  ;;  %v3002_v26 = vadd.f32 1.0, %v6220_v36  ;;  %v3969_v50 = vadd.f32 %v3968_v31, %v3621_v3 }
 0x4a8   : > { %v6224_v51 = vpop.eup %6223  ;;  %v3631_v47 = vmul.f32 %v6222_v12, %v9438_v25  ;;  %v4006_v21 = vadd.f32 %v4005_v19, %v3622_v7 }
 0x4a9   : > { %6227 = vrcp.f32 %v3002_v26  ;;  %v3632_v57 = vmul.f32 %v6224_v51, %v9441_v35 }
 0x4aa   : > { %v3970_v4 = vadd.f32 %v3969_v50, %v3631_v47 }
 0x4ab   : > { %v4007_v37 = vadd.f32 %v4006_v21, %v3632_v57 }
 0x4ad   : > { %v6226_v41 = vpop.eup %6225 }
 0x4ae   : > { %v3641_v42 = vmul.f32 %v6226_v41, %v9449_v52 }
 0x4af   : > { %v6228_v5 = vpop.eup %6227 }
 0x4b0   : > { %v3971_v13 = vadd.f32 %v3970_v4, %v3641_v42  ;;  %v3642_v11 = vmul.f32 %v6228_v5, %v9454_v29 }
 0x4b2   : > { %v3972_v10 = vrot.slane %v3971_v13, 4  ;;  %v4008_v30 = vadd.f32 %v4007_v37, %v3642_v11 }
 0x4b4   : > { %v3973_v55 = vadd.f32 %v3972_v10, %v3971_v13  ;;  %v4009_v25 = vrot.slane %v4008_v30, 4 }
 0x4b6   : > { %v3974_v18 = vrot.slane %v3973_v55, 2  ;;  %v4010_v39 = vadd.f32 %v4009_v25, %v4008_v30 }
 0x4b8   : > { %v3975_v33 = vadd.f32 %v3974_v18, %v3973_v55  ;;  %v4011_v45 = vrot.slane %v4010_v39, 2 }
 0x4ba   : > { %v4012_v59 = vadd.f32 %v4011_v45, %v4010_v39  ;;  %v3976_v35 = vrot.slane %v3975_v33, 1 }
 0x4bc   : > { %v4013_v20 = vrot.slane %v4012_v59, 1  ;;  %v3977_v22 = vadd.f32 %v3976_v35, %v3975_v33 }
 0x4be   : > { %v4014_v0 = vadd.f32 %v4013_v20, %v4012_v59  ;;  %v4124_v24 = vpop.f32.mrf.mxu2  ;;  %v4144_v17 = vpop.f32.mrf.mxu3 }
 0x4bf   : > { %v4125_v61 = vadd.f32 %v4124_v24, %v4084_v6 }
 0x4c0   : > { %v4032_v52 = vrot.slane %v4014_v0, 7 }
 0x4c1   : > { %v4145_v58 = vadd.f32 %v4144_v17, %v4125_v61 }
 0x4c2   : > { %v4046_v16 = vsel %vm4033_vm2, %v3977_v22, %v4032_v52 }
 0x4c3   : > { %v4050_v63 = vadd.f32 %v4046_v16, %v3644_v9 }
 0x4c5   : > { %4056 = vst.msk [vmem:[#allocation2 + $0x8] sm:$0x3] %vm9467_vm8, %v4050_v63 }
 0x4c6   : > { %v4164_v48 = vpop.f32.mrf.mxu2  ;;  %v4184_v43 = vpop.f32.mrf.mxu3 }
 0x4c7   : > { %v4165_v46 = vadd.f32 %v4164_v48, %v4145_v58 }
 0x4c9   : > { %v4185_v27 = vadd.f32 %v4184_v43, %v4165_v46 }
 0x4cc   : > { %v4061_v29 = vld [vmem:[#allocation2 + $0x8] sm:$0x3] }
 0x4cd   : > { %v4063_v38 = vmul.f32 0.00390625, %v4061_v29 }
 0x4ce   : > { %v4204_v62 = vpop.f32.mrf.mxu2  ;;  %v4224_v54 = vpop.f32.mrf.mxu3 }
 0x4cf   : > { %v4095_v15 = vperm.slane %v4063_v38, 0  ;;  %v4096_v32 = vperm.slane %v4063_v38, 1  ;;  %v4205_v23 = vadd.f32 %v4204_v62, %v4185_v27 }
 0x4d1   : > { %4283 = vmatmul.f32.vlgmr.msrb.gmra.mxu2 %v4095_v15  ;;  %4303 = vmatmul.f32.vlgmr.msrb.gmra.mxu3 %v4096_v32  ;;  %v4225_v36 = vadd.f32 %v4224_v54, %v4205_v23 }
 0x4d6   : > { %v4244_v60 = vpop.f32.mrf.mxu2  ;;  %v4264_v28 = vpop.f32.mrf.mxu3 }
 0x4d7   : > { %v4245_v8 = vadd.f32 %v4244_v60, %v4225_v36 }
 0x4d9   : > { %v4265_v53 = vadd.f32 %v4264_v28, %v4245_v8 }
 0x554   : > { %v4284_v1 = vpop.f32.mrf.mxu2  ;;  %v4304_v12 = vpop.f32.mrf.mxu3 }
 0x555   : > { %v4285_v2 = vadd.f32 %v4284_v1, %v4265_v53 }
 0x557   : > { %v4305_v26 = vadd.f32 %v4304_v12, %v4285_v2 }
 0x559   : > { %v4309_v44 = vsel %vm4307_vm9, %v4305_v26, -inf  ;;  %4308 = vst.msk [vmem:[%s340_s29] sm:$0x1] %vm4307_vm9, %v4305_v26 }
 0x55a   : > { %4310 = vmax.xlane.f32.xlu1 %v4309_v44 }
 0x5cd   : > { %v4311_v40 = vpop.xlane.xlu1 %4310 }
 0x5ce   : > { %v4312_v49 = vsub.f32 %v4305_v26, %v4311_v40 }
 0x5d0   : > { %v4313_v3 = vmul.f32 1.442695, %v4312_v49 }
 0x5d2   : > { %6229 = vpow2.f32 %v4313_v3 }
 0x5d8   : > { %v6230_v51 = vpop.eup %6229 }
 0x5d9   : > { %v4315_v14 = vsel %vm4307_vm9, %v6230_v51, 0.0 }
 0x5da   : > { %4316 = vadd.xlane.f32.xlu1 %v4315_v14 }
 0x5db   : > { %6382 = shalt.err (!%p6379_p0)
}
 0x5dc   : > { %4863 = dma.vmem_to_hbm [thread:$0]  (%p6609_p3), %s4363_s17, 16, %s4365_s9, %s4339_s10  }
 0x5dd   : > { %s4347_s7 = scalar_lea.hbm %s9558_s5, %s6469_s24  ;;  %s334_s12 = scalar_lea.vmem [#allocation11], %s6637_s19 }
 0x5de   : > { %s4349_s14 = sshll.u32 %s334_s12, 4  ;;  %s4351_s17 = sshll.u32 %s4347_s7, 4  ;;  %s4350_s14 = int_to_ptr.vmem [resolvable:$true] %s4349_s14  ;;  %s4352_s17 = int_to_ptr.hbm [resolvable:$true] %s4351_s17 }
 0x5df   : > { %s4335_s9 = scalar_lea.sflag [#allocation5], %s6637_s19  ;;  %s6397_s10 = sshra.s32 %s4352_s17, 4  ;;  %s6398_s10 = int_to_ptr.hbm [resolvable:$true] %s6397_s10 }
 0x5e0   : > { %s6399_s24 = scalar_lea.hbm %s6398_s10, 1  ;;  %s6403_s16 = scalar_lea.hbm %s9558_s5, 2 }
 0x5e1   : > { %p6400_p5 = scmp.ne.s32.totalorder %s6398_s10, %s6399_s24  ;;  %p6404_p2 = scmp.lt.s32.totalorder %s6398_s10, %s9558_s5 }
 0x5e2   : > { %p6405_p1 = scmp.lt.s32.totalorder %s6403_s16, %s6399_s24 }
 0x5e3   : > { %p6401_p7 = pnand %p6400_p5, %p6609_p3 }
 0x5e4   : > { %p6406_p4 = por %p6405_p1, %p6404_p2 }
 0x5e5   : > { %p6402_p10 = pneg %p6401_p7 }
 0x5e7   : > { %p6407_p8 = pnand %p6406_p4, %p6402_p10 }
 0x64d   : > { %v4317_v56 = vpop.xlane.xlu1 %4316 }
 0x64e   : > { %6231 = vrcp.f32 %v4317_v56  ;;  %v4329_v47 = vand.u32 2147483648, %v4317_v56  ;;  %v4327_v50 = vand.u32 2147483647, %v4317_v56  ;;  %vm4323_vm11 = vweird.f32 %v4317_v56 }
 0x650   : > { %v4330_v41 = vor.u32 1.1754944e-38, %v4329_v47  ;;  %vm4328_vm13 = vcmp.eq.f32.partialorder %v4327_v50, 8.507059e+37 }
 0x654   : > { %v6232_v34 = vpop.eup %6231 }
 0x655   : > { %v4319_v31 = vmul.f32 %v6232_v34, %v4317_v56  ;;  %vm4324_vm10 = vweird.f32 %v6232_v34 }
 0x656   : > { %vm4325_vm12 = vmor %vm4323_vm11, %vm4324_vm10 }
 0x657   : > { %v4320_v7 = vsub.f32 1.0, %v4319_v31 }
 0x659   : > { %v4321_v19 = vmul.f32 %v6232_v34, %v4320_v7 }
 0x65b   : > { %v4322_v57 = vadd.f32 %v6232_v34, %v4321_v19 }
 0x65d   : > { %v4326_v21 = vsel %vm4325_vm12, %v6232_v34, %v4322_v57 }
 0x65e   : > { %v4331_v4 = vsel %vm4328_vm13, %v4330_v41, %v4326_v21 }
 0x65f   : > { %v4332_v42 = vmul.f32 %v6230_v51, %v4331_v4 }
 0x661   : > { %4333 = vst.msk [vmem:[%s334_s12] sm:$0x1] %vm4307_vm9, %v4332_v42 }
 0x662   : > { %6410 = shalt.err (!%p6407_p8)
}
 0x663   : > { %4862 = dma.vmem_to_hbm [thread:$0]  (%p6609_p3), %s4350_s14, 16, %s4352_s17, %s4335_s9  }
 0x664 PF: > { %s4376_s19 = sand.u32 1, %s6457_s21   ;;  %p4881_p11 = pnand %p4504_p9, %p6569_p6 }
 0x665   : > { %s4377_s28 = scalar_lea.sflag [#allocation5], %s4376_s19 }
 0x666   : > { %p4882_p12 = pneg %p4881_p11 }
 0x668   : > { %6448 = dma.done.wait (%p4882_p12), %s4377_s28, 16  }
 0x669   : > { %6450 = vsyncadd (%p4882_p12), %s4377_s28, 4294967280  ;;  %s4386_s1 = scalar_lea.sflag [#allocation13], %s4376_s19 }
 0x66a   : > { %6452 = dma.done.wait (%p4882_p12), %s4386_s1, 16  }
 0x66b   : > { %6454 = vsyncadd (%p4882_p12), %s4386_s1, 4294967280  ;;  %s28_s26 = sadd.s32 1, %s6477_s26   ;;  %s9840_s21 = smov %s6461_s22 }
 0x66c   : > { %p25_p13 = scmp.ge.s32.totalorder %s28_s26, 4   ;;  %s9841_s22 = smov %s6465_s23 }
 0x66d   : > { %s9842_s23 = smov %s6625_s30  ;;  %s9843_s24 = smov %s6473_s25 }
 0x66e   : > { %s9844_s25 = smov %s9846_s20  ;;  %27 = sbr.rel (!%p25_p13) target bundleno = 13 (0xd), region = 125 }
 0x673   :  { %4391 = vsyncpa [#allocation4], 1 }
 0x674   :  { %4393 = vsyncpa [#allocation4 + $0x1], 1 }
 0x675   :  { %4394 = vsyncpa [#allocation7], 1 }
 0x676   :  { %4395 = vsyncpa [#allocation10], 1 }
 0x677   :  { %4396 = vsyncpa [#allocation5], 1 }
 0x678   :  { %4398 = vsyncpa [#allocation5 + $0x1], 1 }
 0x679   :  { %4399 = vsyncpa [#allocation13], 1 }
 0x67a   :  { %4401 = vsyncpa [#allocation13 + $0x1], 1 }

</bundles_post_ra>
